<compile_context>
chip_gen: v5e
topology: v5e:2x2
jax: 0.10.0
libtpu: 0.0.40
codegen_flags: <defaults>
</compile_context>

<pallas_src>
import functools
import math

import jax
import jax.numpy as jnp
from jax import lax
from jax.experimental import pallas as pl
from jax.experimental.pallas import tpu as pltpu

NUM_HEADS = 4
BN_EPS = 1e-5


def sa_mh_kernel(x_ref, wqkv_ref, wt_ref, bt_ref, gamma_ref, beta_ref,
                 o_ref, logits_sc, attn_out_sc, *, bs, p, heads):
    """Fused SA_MH_Layer forward on a lane-dense (C, BS*P) slab.

    x_ref        : (C, BS*P)   input slab (column b*P + pp == point pp of batch b)
    wqkv_ref     : (3C, C)     packed [wq * 1/sqrt(D); wk; wv]
    wt_ref       : (C, C)      trans_conv weight
    bt/gamma/beta: (C, 1)
    o_ref        : (C, BS*P)   output slab
    logits_sc    : (BS*H, P, P) VMEM scratch — stacked attention logits
    attn_out_sc  : (C, BS*P)    VMEM scratch — concatenated head outputs
    """
    c, _ = x_ref.shape
    d = c // heads

    x = x_ref[...]                                                     # (C, BS*P)

    # --- fused QKV projection: one MXU call for the whole batch ------------
    qkv = jnp.dot(wqkv_ref[...], x, preferred_element_type=jnp.float32)  # (3C, BS*P)
    xq = qkv[0:c, :]          # already scaled by 1/sqrt(D) (folded on host)
    xk = qkv[c:2 * c, :]
    xv = qkv[2 * c:3 * c, :]

    # --- per-(batch, head) QK^T logits into one stacked scratch -------------
    for b in range(bs):
        for h in range(heads):
            qh = xq[h * d:(h + 1) * d, b * p:(b + 1) * p]              # (D, P)
            kh = xk[h * d:(h + 1) * d, b * p:(b + 1) * p]              # (D, P)
            # logits[pq, pk] = sum_d qh[d, pq] * kh[d, pk]  (q^T k, no transpose)
            logits_sc[b * heads + h] = lax.dot_general(
                qh, kh, (((0,), (0,)), ((), ())),
                preferred_element_type=jnp.float32)                    # (P, P)

    # --- single batched, numerically-stable softmax over all BS*H tiles -----
    logits = logits_sc[...]                                            # (BS*H, P, P)
    m = jnp.max(logits, axis=-1, keepdims=True)
    e = jnp.exp(logits - m)
    s = jnp.sum(e, axis=-1, keepdims=True)
    attn = e * pl.reciprocal(s, approx=False)                          # (BS*H, P, P)

    # --- attn @ V per (batch, head), written directly into the slab scratch -
    for b in range(bs):
        for h in range(heads):
            vh = xv[h * d:(h + 1) * d, b * p:(b + 1) * p]              # (D, P)
            # oh[dd, pq] = sum_pk vh[dd, pk] * attn[pq, pk]
            oh = lax.dot_general(
                vh, attn[b * heads + h], (((1,), (1,)), ((), ())),
                preferred_element_type=jnp.float32)                    # (D, P)
            attn_out_sc[h * d:(h + 1) * d, b * p:(b + 1) * p] = oh

    # --- trans_conv(attn_out - x) + bias  (1x1 conv == channel matmul) ------
    z = jnp.dot(wt_ref[...], attn_out_sc[...] - x,
                preferred_element_type=jnp.float32) + bt_ref[...]      # (C, BS*P)

    # --- BatchNorm1d (training mode): biased per-channel stats over all slab
    #     columns == over (batch, points) ------------------------------------
    mean = jnp.mean(z, axis=1, keepdims=True)                          # (C, 1)
    var = jnp.mean(jnp.square(z - mean), axis=1, keepdims=True)        # (C, 1)
    z_hat = (z - mean) * lax.rsqrt(var + BN_EPS)
    y = jnp.maximum(z_hat * gamma_ref[...] + beta_ref[...], 0.0)       # ReLU(BN(.))

    o_ref[...] = (x + y).astype(o_ref.dtype)                           # residual


def sa_mh_layer(x, params):
    """Pallas wrapper. x: (BS, C, P) float32 (PyTorch NCL layout)."""
    bs, c, p = x.shape
    assert c % NUM_HEADS == 0
    d = c // NUM_HEADS
    wq, wk, wv, wt, bt, gamma, beta = params

    # Fold the 1/sqrt(D) attention scale into wq and pack QKV into one matrix.
    wqkv = jnp.concatenate([wq * (1.0 / math.sqrt(d)), wk, wv], axis=0)  # (3C, C)

    # Lane-dense slab: (BS, C, P) -> (C, BS*P); last dim is a multiple of 128.
    x_slab = jnp.transpose(x, (1, 0, 2)).reshape(c, bs * p)

    vmem = pl.BlockSpec(memory_space=pltpu.MemorySpace.VMEM)
    kernel = functools.partial(sa_mh_kernel, bs=bs, p=p, heads=NUM_HEADS)

    out_slab = pl.pallas_call(
        kernel,
        out_shape=jax.ShapeDtypeStruct((c, bs * p), jnp.float32),
        in_specs=[vmem] * 6,
        out_specs=vmem,
        scratch_shapes=[
            pltpu.VMEM((bs * NUM_HEADS, p, p), jnp.float32),   # stacked logits
            pltpu.VMEM((c, bs * p), jnp.float32),              # head outputs
        ],
    )(x_slab, wqkv, wt,
      bt.reshape(c, 1), gamma.reshape(c, 1), beta.reshape(c, 1))

    # TODO(synk): at production point counts (P >= 1024) the dense (P,P) logits no
    # longer fit VMEM (esp. v7x's 64 MiB); switch to a flash-style grid (query x key
    # tiles, online softmax), bf16 matmul inputs on v6e/v7x, and a two-pass /
    # cross-core BN reduction before sharding the batch over v7x's two TensorCores.
    return jnp.transpose(out_slab.reshape(c, bs, p), (1, 0, 2))


def sa_mh_reference(x, params):
    """Pure-JAX mirror of the PyTorch forward (training-mode BN), for validation."""
    wq, wk, wv, wt, bt, gamma, beta = params
    bs, c, p = x.shape
    d = c // NUM_HEADS
    xq = jnp.einsum('oc,bcp->bop', wq, x).reshape(bs, NUM_HEADS, d, p).transpose(0, 1, 3, 2)
    xk = jnp.einsum('oc,bcp->bop', wk, x).reshape(bs, NUM_HEADS, d, p)
    xv = jnp.einsum('oc,bcp->bop', wv, x).reshape(bs, NUM_HEADS, d, p).transpose(0, 1, 3, 2)
    attn = jax.nn.softmax(jnp.matmul(xq, xk) / math.sqrt(d), axis=-1)
    xyz = jnp.matmul(attn, xv).transpose(0, 1, 3, 2).reshape(bs, c, p)
    z = jnp.einsum('oc,bcp->bop', wt, xyz - x) + bt.reshape(1, c, 1)
    mean = z.mean(axis=(0, 2), keepdims=True)
    var = jnp.square(z - mean).mean(axis=(0, 2), keepdims=True)
    zh = (z - mean) / jnp.sqrt(var + BN_EPS)
    y = jax.nn.relu(zh * gamma.reshape(1, c, 1) + beta.reshape(1, c, 1))
    return x + y


if __name__ == "__main__":
    BS, C, P = 2, 32, 64          # channels divisible by 4 heads; BS*P = 128 lanes

    key = jax.random.PRNGKey(0)
    ks = jax.random.split(key, 8)
    s = 1.0 / math.sqrt(C)
    wq = jax.random.normal(ks[0], (C, C), jnp.float32) * s
    wk = jax.random.normal(ks[1], (C, C), jnp.float32) * s
    wv = jax.random.normal(ks[2], (C, C), jnp.float32) * s
    wt = jax.random.normal(ks[3], (C, C), jnp.float32) * s
    bt = jax.random.normal(ks[4], (C,), jnp.float32) * 0.05
    gamma = 1.0 + 0.1 * jax.random.normal(ks[5], (C,), jnp.float32)
    beta = 0.1 * jax.random.normal(ks[6], (C,), jnp.float32)
    x = jax.random.normal(ks[7], (BS, C, P), jnp.float32)

    params = (wq, wk, wv, wt, bt, gamma, beta)

    out = sa_mh_layer(x, params)
    out = jax.block_until_ready(out)

    ref = sa_mh_reference(x, params)
    assert out.shape == (BS, C, P)
    assert jnp.allclose(out, ref, rtol=1e-4, atol=1e-4), "mismatch vs JAX reference"

    # TODO(synk): if the PyTorch module is run in .eval() mode, BatchNorm should use
    # running statistics instead of batch statistics; swap mean/var for stored buffers.
    print("KERNEL_OK")
</pallas_src>

<mosaic_0001>
module attributes {stable_mosaic.version = 11 : i64} {
  func.func @sa_mh_kernel(%arg0: memref<32x128xf32, #tpu.memory_space<vmem>>, %arg1: memref<96x32xf32, #tpu.memory_space<vmem>>, %arg2: memref<32x32xf32, #tpu.memory_space<vmem>>, %arg3: memref<32x1xf32, #tpu.memory_space<vmem>>, %arg4: memref<32x1xf32, #tpu.memory_space<vmem>>, %arg5: memref<32x1xf32, #tpu.memory_space<vmem>>, %arg6: memref<32x128xf32, #tpu.memory_space<vmem>>, %arg7: memref<8x64x64xf32, #tpu.memory_space<vmem>>, %arg8: memref<32x128xf32, #tpu.memory_space<vmem>>) attributes {dimension_semantics = [], scalar_prefetch = 0 : i64, scratch_operands = 2 : i64, tpu.core_type = #tpu.core_type<tc>} {
    %c0 = arith.constant 0 : index
    %c0_0 = arith.constant 0 : index
    %0 = vector.load %arg0[%c0, %c0_0] : memref<32x128xf32, #tpu.memory_space<vmem>>, vector<32x128xf32>
    %c0_1 = arith.constant 0 : index
    %c0_2 = arith.constant 0 : index
    %1 = vector.load %arg1[%c0_1, %c0_2] : memref<96x32xf32, #tpu.memory_space<vmem>>, vector<96x32xf32>
    %cst = arith.constant dense<0.000000e+00> : vector<96x128xf32>
    %2 = tpu.matmul %1, %0, %cst {dimension_numbers = #tpu.dot_dimension_numbers<[1], [0], [0], [1], [0, 0, 1, 1], [], []>} : vector<96x32xf32>, vector<32x128xf32>, vector<96x128xf32> -> vector<96x128xf32>
    %3 = vector.extract_strided_slice %2 {offsets = [0, 0], sizes = [32, 128], strides = [1, 1]} : vector<96x128xf32> to vector<32x128xf32>
    %4 = vector.extract_strided_slice %2 {offsets = [32, 0], sizes = [32, 128], strides = [1, 1]} : vector<96x128xf32> to vector<32x128xf32>
    %5 = vector.extract_strided_slice %2 {offsets = [64, 0], sizes = [32, 128], strides = [1, 1]} : vector<96x128xf32> to vector<32x128xf32>
    %6 = vector.extract_strided_slice %3 {offsets = [0, 0], sizes = [8, 64], strides = [1, 1]} : vector<32x128xf32> to vector<8x64xf32>
    %7 = vector.extract_strided_slice %4 {offsets = [0, 0], sizes = [8, 64], strides = [1, 1]} : vector<32x128xf32> to vector<8x64xf32>
    %cst_3 = arith.constant dense<0.000000e+00> : vector<64x64xf32>
    %8 = tpu.matmul %6, %7, %cst_3 {dimension_numbers = #tpu.dot_dimension_numbers<[0], [0], [1], [1], [0, 1, 1, 1], [], []>} : vector<8x64xf32>, vector<8x64xf32>, vector<64x64xf32> -> vector<64x64xf32>
    %c0_4 = arith.constant 0 : index
    %c0_5 = arith.constant 0 : index
    %c0_6 = arith.constant 0 : index
    %9 = vector.load %arg7[%c0_4, %c0_5, %c0_6] : memref<8x64x64xf32, #tpu.memory_space<vmem>>, vector<1x64x64xf32>
    %10 = vector.shape_cast %9 : vector<1x64x64xf32> to vector<64x64xf32>
    %11 = vector.shape_cast %8 : vector<64x64xf32> to vector<1x64x64xf32>
    tpu.vector_store %arg7[%c0_4, %c0_5, %c0_6], %11 {strides = array<i32>} : memref<8x64x64xf32, #tpu.memory_space<vmem>>, vector<1x64x64xf32>,
    %12 = vector.extract_strided_slice %3 {offsets = [8, 0], sizes = [8, 64], strides = [1, 1]} : vector<32x128xf32> to vector<8x64xf32>
    %13 = vector.extract_strided_slice %4 {offsets = [8, 0], sizes = [8, 64], strides = [1, 1]} : vector<32x128xf32> to vector<8x64xf32>
    %cst_7 = arith.constant dense<0.000000e+00> : vector<64x64xf32>
    %14 = tpu.matmul %12, %13, %cst_7 {dimension_numbers = #tpu.dot_dimension_numbers<[0], [0], [1], [1], [0, 1, 1, 1], [], []>} : vector<8x64xf32>, vector<8x64xf32>, vector<64x64xf32> -> vector<64x64xf32>
    %c1 = arith.constant 1 : index
    %c0_8 = arith.constant 0 : index
    %c0_9 = arith.constant 0 : index
    %15 = vector.load %arg7[%c1, %c0_8, %c0_9] : memref<8x64x64xf32, #tpu.memory_space<vmem>>, vector<1x64x64xf32>
    %16 = vector.shape_cast %15 : vector<1x64x64xf32> to vector<64x64xf32>
    %17 = vector.shape_cast %14 : vector<64x64xf32> to vector<1x64x64xf32>
    tpu.vector_store %arg7[%c1, %c0_8, %c0_9], %17 {strides = array<i32>} : memref<8x64x64xf32, #tpu.memory_space<vmem>>, vector<1x64x64xf32>,
    %18 = vector.extract_strided_slice %3 {offsets = [16, 0], sizes = [8, 64], strides = [1, 1]} : vector<32x128xf32> to vector<8x64xf32>
    %19 = vector.extract_strided_slice %4 {offsets = [16, 0], sizes = [8, 64], strides = [1, 1]} : vector<32x128xf32> to vector<8x64xf32>
    %cst_10 = arith.constant dense<0.000000e+00> : vector<64x64xf32>
    %20 = tpu.matmul %18, %19, %cst_10 {dimension_numbers = #tpu.dot_dimension_numbers<[0], [0], [1], [1], [0, 1, 1, 1], [], []>} : vector<8x64xf32>, vector<8x64xf32>, vector<64x64xf32> -> vector<64x64xf32>
    %c2 = arith.constant 2 : index
    %c0_11 = arith.constant 0 : index
    %c0_12 = arith.constant 0 : index
    %21 = vector.load %arg7[%c2, %c0_11, %c0_12] : memref<8x64x64xf32, #tpu.memory_space<vmem>>, vector<1x64x64xf32>
    %22 = vector.shape_cast %21 : vector<1x64x64xf32> to vector<64x64xf32>
    %23 = vector.shape_cast %20 : vector<64x64xf32> to vector<1x64x64xf32>
    tpu.vector_store %arg7[%c2, %c0_11, %c0_12], %23 {strides = array<i32>} : memref<8x64x64xf32, #tpu.memory_space<vmem>>, vector<1x64x64xf32>,
    %24 = vector.extract_strided_slice %3 {offsets = [24, 0], sizes = [8, 64], strides = [1, 1]} : vector<32x128xf32> to vector<8x64xf32>
    %25 = vector.extract_strided_slice %4 {offsets = [24, 0], sizes = [8, 64], strides = [1, 1]} : vector<32x128xf32> to vector<8x64xf32>
    %cst_13 = arith.constant dense<0.000000e+00> : vector<64x64xf32>
    %26 = tpu.matmul %24, %25, %cst_13 {dimension_numbers = #tpu.dot_dimension_numbers<[0], [0], [1], [1], [0, 1, 1, 1], [], []>} : vector<8x64xf32>, vector<8x64xf32>, vector<64x64xf32> -> vector<64x64xf32>
    %c3 = arith.constant 3 : index
    %c0_14 = arith.constant 0 : index
    %c0_15 = arith.constant 0 : index
    %27 = vector.load %arg7[%c3, %c0_14, %c0_15] : memref<8x64x64xf32, #tpu.memory_space<vmem>>, vector<1x64x64xf32>
    %28 = vector.shape_cast %27 : vector<1x64x64xf32> to vector<64x64xf32>
    %29 = vector.shape_cast %26 : vector<64x64xf32> to vector<1x64x64xf32>
    tpu.vector_store %arg7[%c3, %c0_14, %c0_15], %29 {strides = array<i32>} : memref<8x64x64xf32, #tpu.memory_space<vmem>>, vector<1x64x64xf32>,
    %30 = vector.extract_strided_slice %3 {offsets = [0, 64], sizes = [8, 64], strides = [1, 1]} : vector<32x128xf32> to vector<8x64xf32>
    %31 = vector.extract_strided_slice %4 {offsets = [0, 64], sizes = [8, 64], strides = [1, 1]} : vector<32x128xf32> to vector<8x64xf32>
    %cst_16 = arith.constant dense<0.000000e+00> : vector<64x64xf32>
    %32 = tpu.matmul %30, %31, %cst_16 {dimension_numbers = #tpu.dot_dimension_numbers<[0], [0], [1], [1], [0, 1, 1, 1], [], []>} : vector<8x64xf32>, vector<8x64xf32>, vector<64x64xf32> -> vector<64x64xf32>
    %c4 = arith.constant 4 : index
    %c0_17 = arith.constant 0 : index
    %c0_18 = arith.constant 0 : index
    %33 = vector.load %arg7[%c4, %c0_17, %c0_18] : memref<8x64x64xf32, #tpu.memory_space<vmem>>, vector<1x64x64xf32>
    %34 = vector.shape_cast %33 : vector<1x64x64xf32> to vector<64x64xf32>
    %35 = vector.shape_cast %32 : vector<64x64xf32> to vector<1x64x64xf32>
    tpu.vector_store %arg7[%c4, %c0_17, %c0_18], %35 {strides = array<i32>} : memref<8x64x64xf32, #tpu.memory_space<vmem>>, vector<1x64x64xf32>,
    %36 = vector.extract_strided_slice %3 {offsets = [8, 64], sizes = [8, 64], strides = [1, 1]} : vector<32x128xf32> to vector<8x64xf32>
    %37 = vector.extract_strided_slice %4 {offsets = [8, 64], sizes = [8, 64], strides = [1, 1]} : vector<32x128xf32> to vector<8x64xf32>
    %cst_19 = arith.constant dense<0.000000e+00> : vector<64x64xf32>
    %38 = tpu.matmul %36, %37, %cst_19 {dimension_numbers = #tpu.dot_dimension_numbers<[0], [0], [1], [1], [0, 1, 1, 1], [], []>} : vector<8x64xf32>, vector<8x64xf32>, vector<64x64xf32> -> vector<64x64xf32>
    %c5 = arith.constant 5 : index
    %c0_20 = arith.constant 0 : index
    %c0_21 = arith.constant 0 : index
    %39 = vector.load %arg7[%c5, %c0_20, %c0_21] : memref<8x64x64xf32, #tpu.memory_space<vmem>>, vector<1x64x64xf32>
    %40 = vector.shape_cast %39 : vector<1x64x64xf32> to vector<64x64xf32>
    %41 = vector.shape_cast %38 : vector<64x64xf32> to vector<1x64x64xf32>
    tpu.vector_store %arg7[%c5, %c0_20, %c0_21], %41 {strides = array<i32>} : memref<8x64x64xf32, #tpu.memory_space<vmem>>, vector<1x64x64xf32>,
    %42 = vector.extract_strided_slice %3 {offsets = [16, 64], sizes = [8, 64], strides = [1, 1]} : vector<32x128xf32> to vector<8x64xf32>
    %43 = vector.extract_strided_slice %4 {offsets = [16, 64], sizes = [8, 64], strides = [1, 1]} : vector<32x128xf32> to vector<8x64xf32>
    %cst_22 = arith.constant dense<0.000000e+00> : vector<64x64xf32>
    %44 = tpu.matmul %42, %43, %cst_22 {dimension_numbers = #tpu.dot_dimension_numbers<[0], [0], [1], [1], [0, 1, 1, 1], [], []>} : vector<8x64xf32>, vector<8x64xf32>, vector<64x64xf32> -> vector<64x64xf32>
    %c6 = arith.constant 6 : index
    %c0_23 = arith.constant 0 : index
    %c0_24 = arith.constant 0 : index
    %45 = vector.load %arg7[%c6, %c0_23, %c0_24] : memref<8x64x64xf32, #tpu.memory_space<vmem>>, vector<1x64x64xf32>
    %46 = vector.shape_cast %45 : vector<1x64x64xf32> to vector<64x64xf32>
    %47 = vector.shape_cast %44 : vector<64x64xf32> to vector<1x64x64xf32>
    tpu.vector_store %arg7[%c6, %c0_23, %c0_24], %47 {strides = array<i32>} : memref<8x64x64xf32, #tpu.memory_space<vmem>>, vector<1x64x64xf32>,
    %48 = vector.extract_strided_slice %3 {offsets = [24, 64], sizes = [8, 64], strides = [1, 1]} : vector<32x128xf32> to vector<8x64xf32>
    %49 = vector.extract_strided_slice %4 {offsets = [24, 64], sizes = [8, 64], strides = [1, 1]} : vector<32x128xf32> to vector<8x64xf32>
    %cst_25 = arith.constant dense<0.000000e+00> : vector<64x64xf32>
    %50 = tpu.matmul %48, %49, %cst_25 {dimension_numbers = #tpu.dot_dimension_numbers<[0], [0], [1], [1], [0, 1, 1, 1], [], []>} : vector<8x64xf32>, vector<8x64xf32>, vector<64x64xf32> -> vector<64x64xf32>
    %c7 = arith.constant 7 : index
    %c0_26 = arith.constant 0 : index
    %c0_27 = arith.constant 0 : index
    %51 = vector.load %arg7[%c7, %c0_26, %c0_27] : memref<8x64x64xf32, #tpu.memory_space<vmem>>, vector<1x64x64xf32>
    %52 = vector.shape_cast %51 : vector<1x64x64xf32> to vector<64x64xf32>
    %53 = vector.shape_cast %50 : vector<64x64xf32> to vector<1x64x64xf32>
    tpu.vector_store %arg7[%c7, %c0_26, %c0_27], %53 {strides = array<i32>} : memref<8x64x64xf32, #tpu.memory_space<vmem>>, vector<1x64x64xf32>,
    %c0_28 = arith.constant 0 : index
    %c0_29 = arith.constant 0 : index
    %c0_30 = arith.constant 0 : index
    %54 = vector.load %arg7[%c0_28, %c0_29, %c0_30] : memref<8x64x64xf32, #tpu.memory_space<vmem>>, vector<8x64x64xf32>
    %cst_31 = arith.constant dense<0xFF800000> : vector<8x64xf32>
    %55 = vector.multi_reduction <maximumf>, %54, %cst_31 [2] : vector<8x64x64xf32> to vector<8x64xf32>
    %56 = vector.shape_cast %55 : vector<8x64xf32> to vector<8x64x1xf32>
    %57 = vector.broadcast %56 : vector<8x64x1xf32> to vector<8x64x64xf32>
    %58 = arith.subf %54, %57 : vector<8x64x64xf32>
    %59 = math.exp %58 : vector<8x64x64xf32>
    %cst_32 = arith.constant dense<0.000000e+00> : vector<8x64xf32>
    %60 = vector.multi_reduction <add>, %59, %cst_32 [2] : vector<8x64x64xf32> to vector<8x64xf32>
    %61 = vector.shape_cast %60 : vector<8x64xf32> to vector<8x64x1xf32>
    %62 = tpu.reciprocal %61 : vector<8x64x1xf32> -> vector<8x64x1xf32>
    %63 = vector.broadcast %62 : vector<8x64x1xf32> to vector<8x64x64xf32>
    %64 = arith.mulf %59, %63 : vector<8x64x64xf32>
    %65 = vector.extract_strided_slice %5 {offsets = [0, 0], sizes = [8, 64], strides = [1, 1]} : vector<32x128xf32> to vector<8x64xf32>
    %66 = vector.extract_strided_slice %64 {offsets = [0, 0, 0], sizes = [1, 64, 64], strides = [1, 1, 1]} : vector<8x64x64xf32> to vector<1x64x64xf32>
    %67 = vector.shape_cast %66 : vector<1x64x64xf32> to vector<64x64xf32>
    %cst_33 = arith.constant dense<0.000000e+00> : vector<8x64xf32>
    %68 = tpu.matmul %65, %67, %cst_33 {dimension_numbers = #tpu.dot_dimension_numbers<[1], [1], [0], [0], [0, 0, 1, 0], [], []>} : vector<8x64xf32>, vector<64x64xf32>, vector<8x64xf32> -> vector<8x64xf32>
    %c0_34 = arith.constant 0 : index
    %c0_35 = arith.constant 0 : index
    %69 = vector.load %arg8[%c0_34, %c0_35] : memref<32x128xf32, #tpu.memory_space<vmem>>, vector<8x64xf32>
    tpu.vector_store %arg8[%c0_34, %c0_35], %68 {strides = array<i32>} : memref<32x128xf32, #tpu.memory_space<vmem>>, vector<8x64xf32>,
    %70 = vector.extract_strided_slice %5 {offsets = [8, 0], sizes = [8, 64], strides = [1, 1]} : vector<32x128xf32> to vector<8x64xf32>
    %71 = vector.extract_strided_slice %64 {offsets = [1, 0, 0], sizes = [1, 64, 64], strides = [1, 1, 1]} : vector<8x64x64xf32> to vector<1x64x64xf32>
    %72 = vector.shape_cast %71 : vector<1x64x64xf32> to vector<64x64xf32>
    %cst_36 = arith.constant dense<0.000000e+00> : vector<8x64xf32>
    %73 = tpu.matmul %70, %72, %cst_36 {dimension_numbers = #tpu.dot_dimension_numbers<[1], [1], [0], [0], [0, 0, 1, 0], [], []>} : vector<8x64xf32>, vector<64x64xf32>, vector<8x64xf32> -> vector<8x64xf32>
    %c8 = arith.constant 8 : index
    %c0_37 = arith.constant 0 : index
    %74 = vector.load %arg8[%c8, %c0_37] : memref<32x128xf32, #tpu.memory_space<vmem>>, vector<8x64xf32>
    tpu.vector_store %arg8[%c8, %c0_37], %73 {strides = array<i32>} : memref<32x128xf32, #tpu.memory_space<vmem>>, vector<8x64xf32>,
    %75 = vector.extract_strided_slice %5 {offsets = [16, 0], sizes = [8, 64], strides = [1, 1]} : vector<32x128xf32> to vector<8x64xf32>
    %76 = vector.extract_strided_slice %64 {offsets = [2, 0, 0], sizes = [1, 64, 64], strides = [1, 1, 1]} : vector<8x64x64xf32> to vector<1x64x64xf32>
    %77 = vector.shape_cast %76 : vector<1x64x64xf32> to vector<64x64xf32>
    %cst_38 = arith.constant dense<0.000000e+00> : vector<8x64xf32>
    %78 = tpu.matmul %75, %77, %cst_38 {dimension_numbers = #tpu.dot_dimension_numbers<[1], [1], [0], [0], [0, 0, 1, 0], [], []>} : vector<8x64xf32>, vector<64x64xf32>, vector<8x64xf32> -> vector<8x64xf32>
    %c16 = arith.constant 16 : index
    %c0_39 = arith.constant 0 : index
    %79 = vector.load %arg8[%c16, %c0_39] : memref<32x128xf32, #tpu.memory_space<vmem>>, vector<8x64xf32>
    tpu.vector_store %arg8[%c16, %c0_39], %78 {strides = array<i32>} : memref<32x128xf32, #tpu.memory_space<vmem>>, vector<8x64xf32>,
    %80 = vector.extract_strided_slice %5 {offsets = [24, 0], sizes = [8, 64], strides = [1, 1]} : vector<32x128xf32> to vector<8x64xf32>
    %81 = vector.extract_strided_slice %64 {offsets = [3, 0, 0], sizes = [1, 64, 64], strides = [1, 1, 1]} : vector<8x64x64xf32> to vector<1x64x64xf32>
    %82 = vector.shape_cast %81 : vector<1x64x64xf32> to vector<64x64xf32>
    %cst_40 = arith.constant dense<0.000000e+00> : vector<8x64xf32>
    %83 = tpu.matmul %80, %82, %cst_40 {dimension_numbers = #tpu.dot_dimension_numbers<[1], [1], [0], [0], [0, 0, 1, 0], [], []>} : vector<8x64xf32>, vector<64x64xf32>, vector<8x64xf32> -> vector<8x64xf32>
    %c24 = arith.constant 24 : index
    %c0_41 = arith.constant 0 : index
    %84 = vector.load %arg8[%c24, %c0_41] : memref<32x128xf32, #tpu.memory_space<vmem>>, vector<8x64xf32>
    tpu.vector_store %arg8[%c24, %c0_41], %83 {strides = array<i32>} : memref<32x128xf32, #tpu.memory_space<vmem>>, vector<8x64xf32>,
    %85 = vector.extract_strided_slice %5 {offsets = [0, 64], sizes = [8, 64], strides = [1, 1]} : vector<32x128xf32> to vector<8x64xf32>
    %86 = vector.extract_strided_slice %64 {offsets = [4, 0, 0], sizes = [1, 64, 64], strides = [1, 1, 1]} : vector<8x64x64xf32> to vector<1x64x64xf32>
    %87 = vector.shape_cast %86 : vector<1x64x64xf32> to vector<64x64xf32>
    %cst_42 = arith.constant dense<0.000000e+00> : vector<8x64xf32>
    %88 = tpu.matmul %85, %87, %cst_42 {dimension_numbers = #tpu.dot_dimension_numbers<[1], [1], [0], [0], [0, 0, 1, 0], [], []>} : vector<8x64xf32>, vector<64x64xf32>, vector<8x64xf32> -> vector<8x64xf32>
    %c0_43 = arith.constant 0 : index
    %c64 = arith.constant 64 : index
    %89 = vector.load %arg8[%c0_43, %c64] : memref<32x128xf32, #tpu.memory_space<vmem>>, vector<8x64xf32>
    tpu.vector_store %arg8[%c0_43, %c64], %88 {strides = array<i32>} : memref<32x128xf32, #tpu.memory_space<vmem>>, vector<8x64xf32>,
    %90 = vector.extract_strided_slice %5 {offsets = [8, 64], sizes = [8, 64], strides = [1, 1]} : vector<32x128xf32> to vector<8x64xf32>
    %91 = vector.extract_strided_slice %64 {offsets = [5, 0, 0], sizes = [1, 64, 64], strides = [1, 1, 1]} : vector<8x64x64xf32> to vector<1x64x64xf32>
    %92 = vector.shape_cast %91 : vector<1x64x64xf32> to vector<64x64xf32>
    %cst_44 = arith.constant dense<0.000000e+00> : vector<8x64xf32>
    %93 = tpu.matmul %90, %92, %cst_44 {dimension_numbers = #tpu.dot_dimension_numbers<[1], [1], [0], [0], [0, 0, 1, 0], [], []>} : vector<8x64xf32>, vector<64x64xf32>, vector<8x64xf32> -> vector<8x64xf32>
    %c8_45 = arith.constant 8 : index
    %c64_46 = arith.constant 64 : index
    %94 = vector.load %arg8[%c8_45, %c64_46] : memref<32x128xf32, #tpu.memory_space<vmem>>, vector<8x64xf32>
    tpu.vector_store %arg8[%c8_45, %c64_46], %93 {strides = array<i32>} : memref<32x128xf32, #tpu.memory_space<vmem>>, vector<8x64xf32>,
    %95 = vector.extract_strided_slice %5 {offsets = [16, 64], sizes = [8, 64], strides = [1, 1]} : vector<32x128xf32> to vector<8x64xf32>
    %96 = vector.extract_strided_slice %64 {offsets = [6, 0, 0], sizes = [1, 64, 64], strides = [1, 1, 1]} : vector<8x64x64xf32> to vector<1x64x64xf32>
    %97 = vector.shape_cast %96 : vector<1x64x64xf32> to vector<64x64xf32>
    %cst_47 = arith.constant dense<0.000000e+00> : vector<8x64xf32>
    %98 = tpu.matmul %95, %97, %cst_47 {dimension_numbers = #tpu.dot_dimension_numbers<[1], [1], [0], [0], [0, 0, 1, 0], [], []>} : vector<8x64xf32>, vector<64x64xf32>, vector<8x64xf32> -> vector<8x64xf32>
    %c16_48 = arith.constant 16 : index
    %c64_49 = arith.constant 64 : index
    %99 = vector.load %arg8[%c16_48, %c64_49] : memref<32x128xf32, #tpu.memory_space<vmem>>, vector<8x64xf32>
    tpu.vector_store %arg8[%c16_48, %c64_49], %98 {strides = array<i32>} : memref<32x128xf32, #tpu.memory_space<vmem>>, vector<8x64xf32>,
    %100 = vector.extract_strided_slice %5 {offsets = [24, 64], sizes = [8, 64], strides = [1, 1]} : vector<32x128xf32> to vector<8x64xf32>
    %101 = vector.extract_strided_slice %64 {offsets = [7, 0, 0], sizes = [1, 64, 64], strides = [1, 1, 1]} : vector<8x64x64xf32> to vector<1x64x64xf32>
    %102 = vector.shape_cast %101 : vector<1x64x64xf32> to vector<64x64xf32>
    %cst_50 = arith.constant dense<0.000000e+00> : vector<8x64xf32>
    %103 = tpu.matmul %100, %102, %cst_50 {dimension_numbers = #tpu.dot_dimension_numbers<[1], [1], [0], [0], [0, 0, 1, 0], [], []>} : vector<8x64xf32>, vector<64x64xf32>, vector<8x64xf32> -> vector<8x64xf32>
    %c24_51 = arith.constant 24 : index
    %c64_52 = arith.constant 64 : index
    %104 = vector.load %arg8[%c24_51, %c64_52] : memref<32x128xf32, #tpu.memory_space<vmem>>, vector<8x64xf32>
    tpu.vector_store %arg8[%c24_51, %c64_52], %103 {strides = array<i32>} : memref<32x128xf32, #tpu.memory_space<vmem>>, vector<8x64xf32>,
    %c0_53 = arith.constant 0 : index
    %c0_54 = arith.constant 0 : index
    %105 = vector.load %arg2[%c0_53, %c0_54] : memref<32x32xf32, #tpu.memory_space<vmem>>, vector<32x32xf32>
    %c0_55 = arith.constant 0 : index
    %c0_56 = arith.constant 0 : index
    %106 = vector.load %arg8[%c0_55, %c0_56] : memref<32x128xf32, #tpu.memory_space<vmem>>, vector<32x128xf32>
    %107 = arith.subf %106, %0 : vector<32x128xf32>
    %cst_57 = arith.constant dense<0.000000e+00> : vector<32x128xf32>
    %108 = tpu.matmul %105, %107, %cst_57 {dimension_numbers = #tpu.dot_dimension_numbers<[1], [0], [0], [1], [0, 0, 1, 1], [], []>} : vector<32x32xf32>, vector<32x128xf32>, vector<32x128xf32> -> vector<32x128xf32>
    %c0_58 = arith.constant 0 : index
    %c0_59 = arith.constant 0 : index
    %109 = vector.load %arg3[%c0_58, %c0_59] : memref<32x1xf32, #tpu.memory_space<vmem>>, vector<32x1xf32>
    %110 = vector.broadcast %109 : vector<32x1xf32> to vector<32x128xf32>
    %111 = arith.addf %108, %110 : vector<32x128xf32>
    %cst_60 = arith.constant dense<0.000000e+00> : vector<32xf32>
    %112 = vector.multi_reduction <add>, %111, %cst_60 [1] : vector<32x128xf32> to vector<32xf32>
    %113 = vector.shape_cast %112 : vector<32xf32> to vector<32x1xf32>
    %cst_61 = arith.constant 1.280000e+02 : f32
    %114 = vector.broadcast %cst_61 : f32 to vector<32x1xf32>
    %115 = arith.divf %113, %114 : vector<32x1xf32>
    %116 = vector.broadcast %115 : vector<32x1xf32> to vector<32x128xf32>
    %117 = arith.subf %111, %116 : vector<32x128xf32>
    %118 = arith.mulf %117, %117 : vector<32x128xf32>
    %cst_62 = arith.constant dense<0.000000e+00> : vector<32xf32>
    %119 = vector.multi_reduction <add>, %118, %cst_62 [1] : vector<32x128xf32> to vector<32xf32>
    %120 = vector.shape_cast %119 : vector<32xf32> to vector<32x1xf32>
    %cst_63 = arith.constant 1.280000e+02 : f32
    %121 = vector.broadcast %cst_63 : f32 to vector<32x1xf32>
    %122 = arith.divf %120, %121 : vector<32x1xf32>
    %123 = vector.broadcast %115 : vector<32x1xf32> to vector<32x128xf32>
    %124 = arith.subf %111, %123 : vector<32x128xf32>
    %cst_64 = arith.constant 9.99999974E-6 : f32
    %125 = vector.broadcast %cst_64 : f32 to vector<32x1xf32>
    %126 = arith.addf %122, %125 : vector<32x1xf32>
    %127 = math.rsqrt %126 : vector<32x1xf32>
    %128 = vector.broadcast %127 : vector<32x1xf32> to vector<32x128xf32>
    %129 = arith.mulf %124, %128 : vector<32x128xf32>
    %c0_65 = arith.constant 0 : index
    %c0_66 = arith.constant 0 : index
    %130 = vector.load %arg4[%c0_65, %c0_66] : memref<32x1xf32, #tpu.memory_space<vmem>>, vector<32x1xf32>
    %131 = vector.broadcast %130 : vector<32x1xf32> to vector<32x128xf32>
    %132 = arith.mulf %129, %131 : vector<32x128xf32>
    %c0_67 = arith.constant 0 : index
    %c0_68 = arith.constant 0 : index
    %133 = vector.load %arg5[%c0_67, %c0_68] : memref<32x1xf32, #tpu.memory_space<vmem>>, vector<32x1xf32>
    %134 = vector.broadcast %133 : vector<32x1xf32> to vector<32x128xf32>
    %135 = arith.addf %132, %134 : vector<32x128xf32>
    %cst_69 = arith.constant 0.000000e+00 : f32
    %136 = vector.broadcast %cst_69 : f32 to vector<32x128xf32>
    %137 = arith.maximumf %135, %136 : vector<32x128xf32>
    %138 = arith.addf %0, %137 : vector<32x128xf32>
    %c0_70 = arith.constant 0 : index
    %c0_71 = arith.constant 0 : index
    %139 = vector.load %arg6[%c0_70, %c0_71] : memref<32x128xf32, #tpu.memory_space<vmem>>, vector<32x128xf32>
    tpu.vector_store %arg6[%c0_70, %c0_71], %138 {strides = array<i32>} : memref<32x128xf32, #tpu.memory_space<vmem>>, vector<32x128xf32>,
    return
  }
}

</mosaic_0001>

<bundles_post_ra>
// kernel: tpu_custom_call.1
= control target key start
LH: loop header
LB: loop body
LE: loop exit
PB: predicated region body
PF: predicated region fallthrough
CT: control target
= control target key end

     0   :  { %s6915_s0 = inlined_call_operand.vmem [shape: f32[32,128], index: 0, kind: input, shape index: {}]   ;;  %s6916_s1 = inlined_call_operand.vmem [shape: f32[96,32], index: 1, kind: input, shape index: {}]   ;;  %s6917_s2 = inlined_call_operand.vmem [shape: f32[32,32], index: 2, kind: input, shape index: {}]   ;;  %s6918_s3 = inlined_call_operand.vmem [shape: f32[32,1], index: 3, kind: input, shape index: {}]   ;;  %s6919_s4 = inlined_call_operand.vmem [shape: f32[32,1], index: 4, kind: input, shape index: {}]   ;;  %s6920_s5 = inlined_call_operand.vmem [shape: f32[32,1], index: 5, kind: input, shape index: {}]   ;;  %s6921_s6 = inlined_call_operand.hbm [shape: f32[32,128], index: 6, kind: output, shape index: {}]  }
   0x1   :  { %v27_v0 = vld [vmem:[%s6915_s0 + $0x18] sm:$0xff]  ;;  %v26_v1 = vld [vmem:[%s6915_s0 + $0x10] sm:$0xff]  ;;  %v25_v2 = vld [vmem:[%s6915_s0 + $0x8] sm:$0xff] }
   0x2   :  { %89 = vmatpush.msra.mxu0 %v27_v0 }
   0x4   :  { %90 = vmatpush.msra.mxu0 %v26_v1 }
   0x5   :  { %11 = vsyncpa [#allocation5], 0  ;;  %v24_v3 = vld [vmem:[%s6915_s0] sm:$0xff]  ;;  %vm6986_vm0 = vcmask 261120   ;;  %v29_v5 = vld [vmem:[%s6916_s1 + $0x8] sm:$0xff]  ;;  %s3736_s21 = smov 64  }
   0x6   :  { %91 = vmatpush.msra.mxu0 %v25_v2  ;;  %v28_v4 = vld [vmem:[%s6916_s1] sm:$0xff]  ;;  %v30_v6 = vld [vmem:[%s6916_s1 + $0x10] sm:$0xff]  ;;  %v31_v7 = vld [vmem:[%s6916_s1 + $0x18] sm:$0xff]  ;;  %vm162_vm1 = vcmask 64512   ;;  %vm7010_vm2 = vcmask 523264   ;;  %s3254_s19 = sshll.u32 %s6921_s6, 4  ;;  %s3255_s19 = int_to_ptr.hbm [resolvable:$true] %s3254_s19 }
   0x7   :  { %v32_v8 = vld [vmem:[%s6916_s1 + $0x20] sm:$0xff]  ;;  %v33_v9 = vld [vmem:[%s6916_s1 + $0x28] sm:$0xff]  ;;  %v34_v10 = vld [vmem:[%s6916_s1 + $0x30] sm:$0xff]  ;;  %s3740_s20 = smov 128  }
   0x8   :  { %92 = vmatpush.msra.mxu0 %v24_v3  ;;  %v35_v11 = vld [vmem:[%s6916_s1 + $0x38] sm:$0xff]  ;;  %v36_v56 = vld [vmem:[%s6916_s1 + $0x40] sm:$0xff]  ;;  %v37_v60 = vld [vmem:[%s6916_s1 + $0x48] sm:$0xff] }
   0x9   :  { %3266 = vmatmul.msk.f32.vlgmr.msra.gmra.mxu0 %vm6986_vm0, %v28_v4  ;;  %v38_v0 = vld [vmem:[%s6916_s1 + $0x50] sm:$0xff]  ;;  %v39_v4 = vld [vmem:[%s6916_s1 + $0x58] sm:$0xff] }
  0x11   :  { %3267 = vmatmul.msk.f32.gmra.mxu0 %vm6986_vm0, %v29_v5 }
  0x19   :  { %3268 = vmatmul.msk.f32.gmra.mxu0 %vm6986_vm0, %v30_v6 }
  0x21   :  { %3269 = vmatmul.msk.f32.gmra.mxu0 %vm6986_vm0, %v31_v7 }
  0x29   :  { %3270 = vmatmul.msk.f32.gmra.mxu0 %vm6986_vm0, %v32_v8 }
  0x31   :  { %3271 = vmatmul.msk.f32.gmra.mxu0 %vm6986_vm0, %v33_v9 }
  0x39   :  { %3272 = vmatmul.msk.f32.gmra.mxu0 %vm6986_vm0, %v34_v10 }
  0x41   :  { %3273 = vmatmul.msk.f32.gmra.mxu0 %vm6986_vm0, %v35_v11 }
  0x49   :  { %3274 = vmatmul.msk.f32.gmra.mxu0 %vm6986_vm0, %v36_v56 }
  0x51   :  { %3275 = vmatmul.msk.f32.gmra.mxu0 %vm6986_vm0, %v37_v60 }
  0x59   :  { %3276 = vmatmul.msk.f32.gmra.mxu0 %vm6986_vm0, %v38_v0 }
  0x61   :  { %3277 = vmatmul.msk.f32.gmra.mxu0 %vm6986_vm0, %v39_v4 }
  0x86   :  { %v94_v12 = vpop.f32.mrf.mxu0 }
  0x87   :  { %556 = vrot.lane.b32.xlu2 %v94_v12, %s3736_s21  ;;  %130 = vxpose.xlu0.b32.start.end [1/1] (short) (narrow) %v94_v12, 64 }
  0x8e   :  { %v97_v13 = vpop.f32.mrf.mxu0 }
  0x8f   :  { %670 = vrot.lane.b32.xlu2 %v97_v13, %s3736_s21 }
  0x96   :  { %v100_v14 = vpop.f32.mrf.mxu0 }
  0x97   :  { %343 = vxpose.xlu1.b32.start.end [1/1] (short) (narrow) %v100_v14, 64  ;;  %784 = vrot.lane.b32.xlu2 %v100_v14, %s3736_s21 }
  0x9e   :  { %v103_v15 = vpop.f32.mrf.mxu0 }
  0x9f   :  { %898 = vrot.lane.b32.xlu2 %v103_v15, %s3736_s21 }
  0xa6   :  { %v106_v16 = vpop.f32.mrf.mxu0 }
  0xa7   :  { %202 = vmatpush.msra.mxu1 %v106_v16 }
  0xae   :  { %v109_v17 = vpop.f32.mrf.mxu0 }
  0xaf   :  { %v3425_v18 = vpack.i.bf16 %v106_v16, %v109_v17  ;;  %308 = vmatpush.msra.mxu2 %v109_v17 }
  0xb1   :  { %3426 = vrot.lane.b32.xlu2 %v3425_v18, %s3736_s21 }
  0xb6   :  { %v112_v19 = vpop.f32.mrf.mxu0 }
  0xb7   :  { %414 = vmatpush.msra.mxu3 %v112_v19 }
  0xbe   :  { %v115_v20 = vpop.f32.mrf.mxu0 }
  0xbf   :  { %v3430_v21 = vpack.i.bf16 %v112_v19, %v115_v20  ;;  %520 = vmatpush.msrb.mxu1 %v115_v20 }
  0xc1   :  { %3431 = vrot.lane.b32.xlu2 %v3430_v21, %s3736_s21 }
  0xc7   :  { %237 = vxpose.xlu0.b32.start.end [1/1] (short) (narrow) %v97_v13, 64 }
  0xd7   :  { %449 = vxpose.xlu1.b32.start.end [1/1] (short) (narrow) %v103_v15, 64 }
  0xe1   :  { %v557_v22 = vpop.permute.xlu2 %556 }
  0xe7   :  { %559 = vxpose.xlu2.b32.start.end [1/1] (short) (narrow) %v557_v22, 64 }
  0xe9   :  { %v671_v23 = vpop.permute.xlu2 %670 }
  0xf1   :  { %v785_v24 = vpop.permute.xlu2 %784 }
  0xf9   :  { %v899_v25 = vpop.permute.xlu2 %898 }
 0x107   :  { %787 = vxpose.xlu0.b32.start.end [1/1] (short) (narrow) %v785_v24, 64 }
 0x10b   :  { %v3427_v26 = vpop.permute.xlu2 %3426 }
 0x10c   :  { %v3429_v27 = vunpack.i.h.bf16 %v3427_v26  ;;  %v3428_v28 = vunpack.i.l.bf16 %v3427_v26 }
 0x10e   :  { %634 = vmatpush.msrb.mxu2 %v3429_v27  ;;  %748 = vmatpush.msrb.mxu3 %v3428_v28 }
 0x117   :  { %673 = vxpose.xlu1.b32.start.end [1/1] (short) (narrow) %v671_v23, 64 }
 0x11b   :  { %v3432_v29 = vpop.permute.xlu2 %3431 }
 0x11c   :  { %v3434_v30 = vunpack.i.h.bf16 %v3432_v29  ;;  %v3433_v31 = vunpack.i.l.bf16 %v3432_v29 }
 0x11e   :  { %862 = vmatpush.msrb.mxu0 %v3434_v30 }
 0x127   :  { %901 = vxpose.xlu2.b32.start.end [1/1] (short) (narrow) %v899_v25, 64 }
 0x12b   :  { %v146_v32 = vpop.trf.xlu0 }
 0x12c   :  { %3278 = vmatmul.msk.f32.vlgmr.msra.gmra.mxu1 %vm162_vm1, %v146_v32 }
 0x12d   :  { %976 = vmatpush.msra.mxu1 %v3433_v31 }
 0x133   :  { %v147_v33 = vpop.trf.xlu0 }
 0x134   :  { %3279 = vmatmul.msk.f32.gmra.mxu1 %vm162_vm1, %v147_v33 }
 0x13b   :  { %v148_v34 = vpop.trf.xlu0  ;;  %v359_v35 = vpop.trf.xlu1 }
 0x13c   :  { %3280 = vmatmul.msk.f32.gmra.mxu1 %vm162_vm1, %v148_v34  ;;  %3294 = vmatmul.msk.f32.vlgmr.msra.gmra.mxu3 %vm162_vm1, %v359_v35 }
 0x143   :  { %v149_v36 = vpop.trf.xlu0  ;;  %v360_v37 = vpop.trf.xlu1 }
 0x144   :  { %3281 = vmatmul.msk.f32.gmra.mxu1 %vm162_vm1, %v149_v36  ;;  %3295 = vmatmul.msk.f32.gmra.mxu3 %vm162_vm1, %v360_v37 }
 0x14b   :  { %v150_v38 = vpop.trf.xlu0  ;;  %v361_v39 = vpop.trf.xlu1 }
 0x14c   :  { %3282 = vmatmul.msk.f32.gmra.mxu1 %vm162_vm1, %v150_v38  ;;  %3296 = vmatmul.msk.f32.gmra.mxu3 %vm162_vm1, %v361_v39 }
 0x153   :  { %v151_v40 = vpop.trf.xlu0  ;;  %v362_v41 = vpop.trf.xlu1 }
 0x154   :  { %3283 = vmatmul.msk.f32.gmra.mxu1 %vm162_vm1, %v151_v40  ;;  %3297 = vmatmul.msk.f32.gmra.mxu3 %vm162_vm1, %v362_v41 }
 0x15b   :  { %v152_v42 = vpop.trf.xlu0  ;;  %v363_v43 = vpop.trf.xlu1 }
 0x15c   :  { %3284 = vmatmul.msk.f32.gmra.mxu1 %vm162_vm1, %v152_v42  ;;  %3298 = vmatmul.msk.f32.gmra.mxu3 %vm162_vm1, %v363_v43 }
 0x163   :  { %v153_v44 = vpop.trf.xlu0  ;;  %v364_v45 = vpop.trf.xlu1 }
 0x164   :  { %3285 = vmatmul.msk.f32.gmra.mxu1 %vm162_vm1, %v153_v44  ;;  %3299 = vmatmul.msk.f32.gmra.mxu3 %vm162_vm1, %v364_v45 }
 0x16b   :  { %v253_v46 = vpop.trf.xlu0  ;;  %v365_v47 = vpop.trf.xlu1 }
 0x16c   :  { %3286 = vmatmul.msk.f32.vlgmr.msra.gmra.mxu2 %vm162_vm1, %v253_v46  ;;  %3300 = vmatmul.msk.f32.gmra.mxu3 %vm162_vm1, %v365_v47 }
 0x173   :  { %v254_v48 = vpop.trf.xlu0  ;;  %v366_v49 = vpop.trf.xlu1 }
 0x174   :  { %3287 = vmatmul.msk.f32.gmra.mxu2 %vm162_vm1, %v254_v48  ;;  %3301 = vmatmul.msk.f32.gmra.mxu3 %vm162_vm1, %v366_v49 }
 0x17b   :  { %v255_v50 = vpop.trf.xlu0  ;;  %v465_v51 = vpop.trf.xlu1 }
 0x17c   :  { %3288 = vmatmul.msk.f32.gmra.mxu2 %vm162_vm1, %v255_v50  ;;  %3302 = vmatmul.msk.f32.vlgmr.msrb.gmra.mxu1 %vm162_vm1, %v465_v51 }
 0x180   :  { %v575_v52 = vpop.trf.xlu2 }
 0x183   :  { %v256_v53 = vpop.trf.xlu0  ;;  %v466_v54 = vpop.trf.xlu1 }
 0x184   :  { %3289 = vmatmul.msk.f32.gmra.mxu2 %vm162_vm1, %v256_v53  ;;  %3303 = vmatmul.msk.f32.gmra.mxu1 %vm162_vm1, %v466_v54 }
 0x188   :  { %v576_v55 = vpop.trf.xlu2 }
 0x18b   :  { %v257_v57 = vpop.trf.xlu0  ;;  %v467_v58 = vpop.trf.xlu1 }
 0x18c   :  { %3290 = vmatmul.msk.f32.gmra.mxu2 %vm162_vm1, %v257_v57  ;;  %3304 = vmatmul.msk.f32.gmra.mxu1 %vm162_vm1, %v467_v58 }
 0x190   :  { %v577_v59 = vpop.trf.xlu2 }
 0x193   :  { %v258_v61 = vpop.trf.xlu0  ;;  %v468_v62 = vpop.trf.xlu1 }
 0x194   :  { %3291 = vmatmul.msk.f32.gmra.mxu2 %vm162_vm1, %v258_v61  ;;  %3305 = vmatmul.msk.f32.gmra.mxu1 %vm162_vm1, %v468_v62 }
 0x198   :  { %v578_v63 = vpop.trf.xlu2 }
 0x19b   :  { %v259_v1 = vpop.trf.xlu0  ;;  %v469_v2 = vpop.trf.xlu1 }
 0x19c   :  { %3292 = vmatmul.msk.f32.gmra.mxu2 %vm162_vm1, %v259_v1  ;;  %3306 = vmatmul.msk.f32.gmra.mxu1 %vm162_vm1, %v469_v2 }
 0x1a0   :  { %v579_v3 = vpop.trf.xlu2 }
 0x1a3   :  { %v260_v5 = vpop.trf.xlu0  ;;  %v470_v6 = vpop.trf.xlu1 }
 0x1a4   :  { %3293 = vmatmul.msk.f32.gmra.mxu2 %vm162_vm1, %v260_v5  ;;  %3307 = vmatmul.msk.f32.gmra.mxu1 %vm162_vm1, %v470_v6 }
 0x1a8   :  { %v580_v7 = vpop.trf.xlu2 }
 0x1a9   :  { %v204_v8 = vpop.f32.mrf.mxu1 }
 0x1aa   :  { %229 = vst.msk [vmem:[#allocation2] sm:$0xff] %vm7010_vm2, %v204_v8 }
 0x1ab   :  { %v471_v9 = vpop.trf.xlu1  ;;  %v803_v10 = vpop.trf.xlu0 }
 0x1ac   :  { %3310 = vmatmul.msk.f32.vlgmr.msrb.gmra.mxu2 %vm162_vm1, %v575_v52  ;;  %3308 = vmatmul.msk.f32.gmra.mxu1 %vm162_vm1, %v471_v9 }
 0x1ad   :  { %3326 = vmatmul.msk.f32.vlgmr.msrb.gmra.mxu0 %vm162_vm1, %v803_v10 }
 0x1b0   :  { %v581_v11 = vpop.trf.xlu2 }
 0x1b1   :  { %v207_v12 = vpop.f32.mrf.mxu1  ;;  %v3877_v13 = vld [vmem:[#allocation2] sm:$0xff] }
 0x1b2   :  { %230 = vst.msk [vmem:[#allocation2 + $0x8] sm:$0xff] %vm7010_vm2, %v207_v12  ;;  %v1075_v14 = vsel %vm7010_vm2, %v3877_v13, -inf }
 0x1b3   :  { %1076 = vmax.xlane.f32.xlu0 %v1075_v14  ;;  %v472_v15 = vpop.trf.xlu1  ;;  %v804_v16 = vpop.trf.xlu0 }
 0x1b4   :  { %3311 = vmatmul.msk.f32.gmra.mxu2 %vm162_vm1, %v576_v55  ;;  %3309 = vmatmul.msk.f32.gmra.mxu1 %vm162_vm1, %v472_v15 }
 0x1b5   :  { %3327 = vmatmul.msk.f32.gmra.mxu0 %vm162_vm1, %v804_v16 }
 0x1b8   :  { %v582_v17 = vpop.trf.xlu2 }
 0x1b9   :  { %v210_v18 = vpop.f32.mrf.mxu1  ;;  %v3885_v19 = vld [vmem:[#allocation2 + $0x8] sm:$0xff] }
 0x1ba   :  { %231 = vst.msk [vmem:[#allocation2 + $0x10] sm:$0xff] %vm7010_vm2, %v210_v18  ;;  %v1078_v20 = vsel %vm7010_vm2, %v3885_v19, -inf }
 0x1bb   :  { %1079 = vmax.xlane.f32.xlu1 %v1078_v20  ;;  %v689_v21 = vpop.trf.xlu1  ;;  %v805_v25 = vpop.trf.xlu0 }
 0x1bc   :  { %3312 = vmatmul.msk.f32.gmra.mxu2 %vm162_vm1, %v577_v59  ;;  %3318 = vmatmul.msk.f32.vlgmr.msrb.gmra.mxu3 %vm162_vm1, %v689_v21 }
 0x1bd   :  { %3328 = vmatmul.msk.f32.gmra.mxu0 %vm162_vm1, %v805_v25 }
 0x1bf   :  { %v416_v22 = vpop.f32.mrf.mxu3 }
 0x1c0   :  { %441 = vst.msk [vmem:[#allocation2 + $0x80] sm:$0xff] %vm7010_vm2, %v416_v22  ;;  %v917_v23 = vpop.trf.xlu2 }
 0x1c1   :  { %v213_v24 = vpop.f32.mrf.mxu1  ;;  %3334 = vmatmul.msk.f32.vlgmr.msra.gmra.mxu1 %vm162_vm1, %v917_v23  ;;  %v3901_v32 = vld [vmem:[#allocation2 + $0x10] sm:$0xff] }
 0x1c2   :  { %232 = vst.msk [vmem:[#allocation2 + $0x18] sm:$0xff] %vm7010_vm2, %v213_v24  ;;  %v1081_v34 = vsel %vm7010_vm2, %v3901_v32, -inf }
 0x1c3   :  { %v690_v26 = vpop.trf.xlu1  ;;  %v806_v41 = vpop.trf.xlu0 }
 0x1c4   :  { %3313 = vmatmul.msk.f32.gmra.mxu2 %vm162_vm1, %v578_v63  ;;  %3319 = vmatmul.msk.f32.gmra.mxu3 %vm162_vm1, %v690_v26 }
 0x1c5   :  { %3329 = vmatmul.msk.f32.gmra.mxu0 %vm162_vm1, %v806_v41 }
 0x1c7   :  { %v1027_v27 = vld [vmem:[#allocation2 + $0x80] sm:$0xff]  ;;  %v419_v28 = vpop.f32.mrf.mxu3 }
 0x1c8   :  { %v1123_v29 = vsel %vm7010_vm2, %v1027_v27, -inf  ;;  %442 = vst.msk [vmem:[#allocation2 + $0x88] sm:$0xff] %vm7010_vm2, %v419_v28  ;;  %v918_v37 = vpop.trf.xlu2 }
 0x1c9   :  { %v216_v30 = vpop.f32.mrf.mxu1  ;;  %1124 = vmax.xlane.f32.xlu1 %v1123_v29  ;;  %v3905_v33 = vld [vmem:[#allocation2 + $0x18] sm:$0xff]  ;;  %3335 = vmatmul.msk.f32.gmra.mxu1 %vm162_vm1, %v918_v37 }
 0x1ca   :  { %233 = vst.msk [vmem:[#allocation2 + $0x20] sm:$0xff] %vm7010_vm2, %v216_v30  ;;  %v1084_v36 = vsel %vm7010_vm2, %v3905_v33, -inf }
 0x1cb   :  { %v691_v31 = vpop.trf.xlu1  ;;  %v807_v44 = vpop.trf.xlu0 }
 0x1cc   :  { %3314 = vmatmul.msk.f32.gmra.mxu2 %vm162_vm1, %v579_v3  ;;  %3320 = vmatmul.msk.f32.gmra.mxu3 %vm162_vm1, %v691_v31 }
 0x1cd   :  { %3330 = vmatmul.msk.f32.gmra.mxu0 %vm162_vm1, %v807_v44 }
 0x1cf   :  { %v422_v35 = vpop.f32.mrf.mxu3  ;;  %v1028_v62 = vld [vmem:[#allocation2 + $0x88] sm:$0xff] }
 0x1d0   :  { %1082 = vmax.xlane.f32.xlu2 %v1081_v34  ;;  %443 = vst.msk [vmem:[#allocation2 + $0x90] sm:$0xff] %vm7010_vm2, %v422_v35  ;;  %v919_v46 = vpop.trf.xlu2  ;;  %v1126_v1 = vsel %vm7010_vm2, %v1028_v62, -inf }
 0x1d1   :  { %v219_v38 = vpop.f32.mrf.mxu1  ;;  %1085 = vmax.xlane.f32.xlu1 %v1084_v36  ;;  %3336 = vmatmul.msk.f32.gmra.mxu1 %vm162_vm1, %v919_v46  ;;  %v3964_v15 = vld [vmem:[#allocation2 + $0x20] sm:$0xff] }
 0x1d2   :  { %234 = vst.msk [vmem:[#allocation2 + $0x28] sm:$0xff] %vm7010_vm2, %v219_v38  ;;  %v1087_v18 = vsel %vm7010_vm2, %v3964_v15, -inf }
 0x1d3   :  { %v692_v39 = vpop.trf.xlu1  ;;  %v808_v50 = vpop.trf.xlu0 }
 0x1d4   :  { %3315 = vmatmul.msk.f32.gmra.mxu2 %vm162_vm1, %v580_v7  ;;  %3321 = vmatmul.msk.f32.gmra.mxu3 %vm162_vm1, %v692_v39 }
 0x1d5   :  { %3331 = vmatmul.msk.f32.gmra.mxu0 %vm162_vm1, %v808_v50 }
 0x1d7   :  { %v425_v40 = vpop.f32.mrf.mxu3  ;;  %v3979_v25 = vld [vmem:[#allocation2 + $0x90] sm:$0xff] }
 0x1d8   :  { %444 = vst.msk [vmem:[#allocation2 + $0x98] sm:$0xff] %vm7010_vm2, %v425_v40  ;;  %v920_v48 = vpop.trf.xlu2  ;;  %v1129_v28 = vsel %vm7010_vm2, %v3979_v25, -inf }
 0x1d9   :  { %v222_v42 = vpop.f32.mrf.mxu1  ;;  %3337 = vmatmul.msk.f32.gmra.mxu1 %vm162_vm1, %v920_v48  ;;  %v3977_v24 = vld [vmem:[#allocation2 + $0x28] sm:$0xff] }
 0x1da   :  { %235 = vst.msk [vmem:[#allocation2 + $0x30] sm:$0xff] %vm7010_vm2, %v222_v42  ;;  %v1090_v27 = vsel %vm7010_vm2, %v3977_v24, -inf }
 0x1db   :  { %v693_v49 = vpop.trf.xlu1  ;;  %v809_v54 = vpop.trf.xlu0 }
 0x1dc   :  { %3316 = vmatmul.msk.f32.gmra.mxu2 %vm162_vm1, %v581_v11  ;;  %3322 = vmatmul.msk.f32.gmra.mxu3 %vm162_vm1, %v693_v49  ;;  %v3960_v11 = vpop.f32.mrf.mxu0 }
 0x1dd   :  { %3332 = vmatmul.msk.f32.gmra.mxu0 %vm162_vm1, %v809_v54  ;;  %7011 = vst [vmem:[#allocation7_spill] sm:$0xff] %v3960_v11 }
 0x1df   :  { %v428_v43 = vpop.f32.mrf.mxu3  ;;  %v4008_v44 = vld [vmem:[#allocation2 + $0x98] sm:$0xff] }
 0x1e0   :  { %445 = vst.msk [vmem:[#allocation2 + $0xa0] sm:$0xff] %vm7010_vm2, %v428_v43  ;;  %v921_v4 = vpop.trf.xlu2  ;;  %v1132_v49 = vsel %vm7010_vm2, %v4008_v44, -inf }
 0x1e1   :  { %v225_v45 = vpop.f32.mrf.mxu1  ;;  %3338 = vmatmul.msk.f32.gmra.mxu1 %vm162_vm1, %v921_v4  ;;  %v3951_v6 = vld [vmem:[#allocation2 + $0x30] sm:$0xff] }
 0x1e2   :  { %236 = vst.msk [vmem:[#allocation2 + $0x38] sm:$0xff] %vm7010_vm2, %v225_v45  ;;  %v1093_v10 = vsel %vm7010_vm2, %v3951_v6, -inf }
 0x1e3   :  { %v694_v53 = vpop.trf.xlu1  ;;  %v810_v61 = vpop.trf.xlu0 }
 0x1e4   :  { %3317 = vmatmul.msk.f32.gmra.mxu2 %vm162_vm1, %v582_v17  ;;  %3323 = vmatmul.msk.f32.gmra.mxu3 %vm162_vm1, %v694_v53  ;;  %v3973_v21 = vpop.f32.mrf.mxu0 }
 0x1e5   :  { %3333 = vmatmul.msk.f32.gmra.mxu0 %vm162_vm1, %v810_v61  ;;  %7012 = vst [vmem:[#allocation8_spill] sm:$0xff] %v3973_v21 }
 0x1e7   :  { %v431_v47 = vpop.f32.mrf.mxu3  ;;  %v4006_v43 = vld [vmem:[#allocation2 + $0xa0] sm:$0xff] }
 0x1e8   :  { %446 = vst.msk [vmem:[#allocation2 + $0xa8] sm:$0xff] %vm7010_vm2, %v431_v47  ;;  %v922_v14 = vpop.trf.xlu2  ;;  %v1135_v48 = vsel %vm7010_vm2, %v4006_v43, -inf }
 0x1e9   :  { %3339 = vmatmul.msk.f32.gmra.mxu1 %vm162_vm1, %v922_v14  ;;  %v3992_v35 = vld [vmem:[#allocation2 + $0x38] sm:$0xff] }
 0x1ea   :  { %v1096_v39 = vsel %vm7010_vm2, %v3992_v35, -inf }
 0x1eb   :  { %v695_v60 = vpop.trf.xlu1 }
 0x1ec   :  { %3324 = vmatmul.msk.f32.gmra.mxu3 %vm162_vm1, %v695_v60  ;;  %v3986_v29 = vpop.f32.mrf.mxu0 }
 0x1ed   :  { %7013 = vst [vmem:[#allocation9_spill] sm:$0xff] %v3986_v29 }
 0x1ef   :  { %v310_v51 = vpop.f32.mrf.mxu2  ;;  %v434_v52 = vpop.f32.mrf.mxu3 }
 0x1f0   :  { %335 = vst.msk [vmem:[#allocation2 + $0x40] sm:$0xff] %vm7010_vm2, %v310_v51  ;;  %v923_v23 = vpop.trf.xlu2 }
 0x1f1   :  { %447 = vst.msk [vmem:[#allocation2 + $0xb0] sm:$0xff] %vm7010_vm2, %v434_v52  ;;  %3340 = vmatmul.msk.f32.gmra.mxu1 %vm162_vm1, %v923_v23  ;;  %v4021_v52 = vld [vmem:[#allocation2 + $0xa8] sm:$0xff] }
 0x1f3   :  { %v696_v5 = vpop.trf.xlu1 }
 0x1f4   :  { %3325 = vmatmul.msk.f32.gmra.mxu3 %vm162_vm1, %v696_v5  ;;  %v4003_v41 = vpop.f32.mrf.mxu0 }
 0x1f5   :  { %7014 = vst [vmem:[#allocation10_spill] sm:$0xff] %v4003_v41 }
 0x1f7   :  { %v313_v55 = vpop.f32.mrf.mxu2  ;;  %v3933_v56 = vld [vmem:[#allocation2 + $0x40] sm:$0xff]  ;;  %v437_v57 = vpop.f32.mrf.mxu3 }
 0x1f8   :  { %336 = vst.msk [vmem:[#allocation2 + $0x48] sm:$0xff] %vm7010_vm2, %v313_v55  ;;  %v1099_v58 = vsel %vm7010_vm2, %v3933_v56, -inf  ;;  %v924_v31 = vpop.trf.xlu2 }
 0x1f9   :  { %1100 = vmax.xlane.f32.xlu0 %v1099_v58  ;;  %v522_v59 = vpop.f32.mrf.mxu1  ;;  %448 = vst.msk [vmem:[#allocation2 + $0xb8] sm:$0xff] %vm7010_vm2, %v437_v57  ;;  %3341 = vmatmul.msk.f32.gmra.mxu1 %vm162_vm1, %v924_v31  ;;  %v1138_v58 = vsel %vm7010_vm2, %v4021_v52, -inf }
 0x1fa   :  { %547 = vst.msk [vmem:[#allocation2 + $0xc0] sm:$0xff] %vm7010_vm2, %v522_v59 }
 0x1ff   :  { %v316_v63 = vpop.f32.mrf.mxu2  ;;  %v3942_v0 = vld [vmem:[#allocation2 + $0x48] sm:$0xff] }
 0x200   :  { %337 = vst.msk [vmem:[#allocation2 + $0x50] sm:$0xff] %vm7010_vm2, %v316_v63  ;;  %v1102_v2 = vsel %vm7010_vm2, %v3942_v0, -inf }
 0x201   :  { %1127 = vmax.xlane.f32.xlu0 %v1126_v1  ;;  %1103 = vmax.xlane.f32.xlu2 %v1102_v2  ;;  %v525_v3 = vpop.f32.mrf.mxu1  ;;  %v4038_v63 = vld [vmem:[#allocation2 + $0xc0] sm:$0xff] }
 0x202   :  { %548 = vst.msk [vmem:[#allocation2 + $0xc8] sm:$0xff] %vm7010_vm2, %v525_v3  ;;  %v1147_v4 = vsel %vm7010_vm2, %v4038_v63, -inf }
 0x207   :  { %v319_v7 = vpop.f32.mrf.mxu2  ;;  %v3953_v8 = vld [vmem:[#allocation2 + $0x50] sm:$0xff] }
 0x208   :  { %338 = vst.msk [vmem:[#allocation2 + $0x58] sm:$0xff] %vm7010_vm2, %v319_v7  ;;  %v1105_v9 = vsel %vm7010_vm2, %v3953_v8, -inf }
 0x209   :  { %1106 = vmax.xlane.f32.xlu1 %v1105_v9  ;;  %1094 = vmax.xlane.f32.xlu0 %v1093_v10  ;;  %v528_v12 = vpop.f32.mrf.mxu1  ;;  %v4040_v1 = vld [vmem:[#allocation2 + $0xc8] sm:$0xff]  ;;  %v4051_v9 = vld [vmem:[#allocation2 + $0xb0] sm:$0xff]  ;;  %v4053_v10 = vld [vmem:[#allocation2 + $0xb8] sm:$0xff] }
 0x20a   :  { %549 = vst.msk [vmem:[#allocation2 + $0xd0] sm:$0xff] %vm7010_vm2, %v528_v12  ;;  %v1150_v5 = vsel %vm7010_vm2, %v4040_v1, -inf }
 0x20f   :  { %v322_v16 = vpop.f32.mrf.mxu2  ;;  %v3966_v17 = vld [vmem:[#allocation2 + $0x58] sm:$0xff] }
 0x210   :  { %339 = vst.msk [vmem:[#allocation2 + $0x60] sm:$0xff] %vm7010_vm2, %v322_v16  ;;  %v1108_v20 = vsel %vm7010_vm2, %v3966_v17, -inf }
 0x211   :  { %1088 = vmax.xlane.f32.xlu1 %v1087_v18  ;;  %1109 = vmax.xlane.f32.xlu2 %v1108_v20  ;;  %v531_v22 = vpop.f32.mrf.mxu1  ;;  %v4023_v53 = vld [vmem:[#allocation2 + $0xd0] sm:$0xff]  ;;  %v1141_v20 = vsel %vm7010_vm2, %v4051_v9, -inf }
 0x212   :  { %550 = vst.msk [vmem:[#allocation2 + $0xd8] sm:$0xff] %vm7010_vm2, %v531_v22  ;;  %v1153_v59 = vsel %vm7010_vm2, %v4023_v53, -inf  ;;  %v1144_v22 = vsel %vm7010_vm2, %v4053_v10, -inf }
 0x217   :  { %v325_v26 = vpop.f32.mrf.mxu2  ;;  %v3990_v34 = vld [vmem:[#allocation2 + $0x60] sm:$0xff] }
 0x218   :  { %340 = vst.msk [vmem:[#allocation2 + $0x68] sm:$0xff] %vm7010_vm2, %v325_v26  ;;  %v1111_v38 = vsel %vm7010_vm2, %v3990_v34, -inf }
 0x219   :  { %1091 = vmax.xlane.f32.xlu1 %v1090_v27  ;;  %1130 = vmax.xlane.f32.xlu2 %v1129_v28  ;;  %v534_v30 = vpop.f32.mrf.mxu1  ;;  %v4065_v26 = vld [vmem:[#allocation2 + $0xd8] sm:$0xff] }
 0x21a   :  { %551 = vst.msk [vmem:[#allocation2 + $0xe0] sm:$0xff] %vm7010_vm2, %v534_v30 }
 0x21f   :  { %v328_v36 = vpop.f32.mrf.mxu2  ;;  %v3994_v37 = vld [vmem:[#allocation2 + $0x68] sm:$0xff] }
 0x220   :  { %341 = vst.msk [vmem:[#allocation2 + $0x70] sm:$0xff] %vm7010_vm2, %v328_v36  ;;  %v1114_v40 = vsel %vm7010_vm2, %v3994_v37, -inf  ;;  %v1156_v36 = vsel %vm7010_vm2, %v4065_v26, -inf }
 0x221   :  { %1097 = vmax.xlane.f32.xlu1 %v1096_v39  ;;  %1115 = vmax.xlane.f32.xlu0 %v1114_v40  ;;  %v537_v42 = vpop.f32.mrf.mxu1  ;;  %v4036_v62 = vld [vmem:[#allocation2 + $0xe0] sm:$0xff] }
 0x222   :  { %1112 = vmax.xlane.f32.xlu2 %v1111_v38  ;;  %552 = vst.msk [vmem:[#allocation2 + $0xe8] sm:$0xff] %vm7010_vm2, %v537_v42  ;;  %v1159_v2 = vsel %vm7010_vm2, %v4036_v62, -inf }
 0x227   :  { %v331_v45 = vpop.f32.mrf.mxu2  ;;  %v4010_v46 = vld [vmem:[#allocation2 + $0x70] sm:$0xff] }
 0x228   :  { %342 = vst.msk [vmem:[#allocation2 + $0x78] sm:$0xff] %vm7010_vm2, %v331_v45  ;;  %v1117_v47 = vsel %vm7010_vm2, %v4010_v46, -inf }
 0x229   :  { %1118 = vmax.xlane.f32.xlu1 %v1117_v47  ;;  %1136 = vmax.xlane.f32.xlu0 %v1135_v48  ;;  %v540_v50 = vpop.f32.mrf.mxu1  ;;  %v4067_v27 = vld [vmem:[#allocation2 + $0xe8] sm:$0xff] }
 0x22a   :  { %1133 = vmax.xlane.f32.xlu2 %v1132_v49  ;;  %553 = vst.msk [vmem:[#allocation2 + $0xf0] sm:$0xff] %vm7010_vm2, %v540_v50  ;;  %v864_v51 = vpop.f32.mrf.mxu0  ;;  %v1162_v38 = vsel %vm7010_vm2, %v4067_v27, -inf }
 0x22b   :  { %889 = vst.msk [vmem:[#allocation2 + $0x180] sm:$0xff] %vm7010_vm2, %v864_v51 }
 0x22f   :  { %v4025_v54 = vld [vmem:[#allocation2 + $0x78] sm:$0xff]  ;;  %v636_v55 = vpop.f32.mrf.mxu2 }
 0x230   :  { %v1120_v57 = vsel %vm7010_vm2, %v4025_v54, -inf  ;;  %661 = vst.msk [vmem:[#allocation2 + $0x100] sm:$0xff] %vm7010_vm2, %v636_v55 }
 0x231   :  { %1121 = vmax.xlane.f32.xlu0 %v1120_v57  ;;  %1139 = vmax.xlane.f32.xlu1 %v1138_v58  ;;  %v543_v60 = vpop.f32.mrf.mxu1  ;;  %v4049_v7 = vld [vmem:[#allocation2 + $0xf0] sm:$0xff] }
 0x232   :  { %1154 = vmax.xlane.f32.xlu2 %v1153_v59  ;;  %554 = vst.msk [vmem:[#allocation2 + $0xf8] sm:$0xff] %vm7010_vm2, %v543_v60  ;;  %v867_v61 = vpop.f32.mrf.mxu0  ;;  %v1165_v14 = vsel %vm7010_vm2, %v4049_v7, -inf  ;;  %v4083_v45 = vld [vmem:[#allocation2 + $0x180] sm:$0xff] }
 0x233   :  { %890 = vst.msk [vmem:[#allocation2 + $0x188] sm:$0xff] %vm7010_vm2, %v867_v61  ;;  %v1219_v49 = vsel %vm7010_vm2, %v4083_v45, -inf }
 0x237   :  { %v639_v3 = vpop.f32.mrf.mxu2  ;;  %v4098_v60 = vld [vmem:[#allocation2 + $0x100] sm:$0xff] }
 0x238   :  { %662 = vst.msk [vmem:[#allocation2 + $0x108] sm:$0xff] %vm7010_vm2, %v639_v3 }
 0x239   :  { %1148 = vmax.xlane.f32.xlu1 %v1147_v4  ;;  %1151 = vmax.xlane.f32.xlu0 %v1150_v5  ;;  %v4081_v42 = vld [vmem:[#allocation2 + $0xf8] sm:$0xff] }
 0x23a   :  { %1160 = vmax.xlane.f32.xlu2 %v1159_v2  ;;  %v870_v23 = vpop.f32.mrf.mxu0  ;;  %v1168_v48 = vsel %vm7010_vm2, %v4081_v42, -inf  ;;  %v4094_v57 = vld [vmem:[#allocation2 + $0x188] sm:$0xff] }
 0x23b   :  { %891 = vst.msk [vmem:[#allocation2 + $0x190] sm:$0xff] %vm7010_vm2, %v870_v23  ;;  %v1222_v61 = vsel %vm7010_vm2, %v4094_v57, -inf }
 0x23e   :  { %v978_v12 = vpop.f32.mrf.mxu1 }
 0x23f   :  { %v642_v16 = vpop.f32.mrf.mxu2  ;;  %v750_v18 = vpop.f32.mrf.mxu3  ;;  %1003 = vst.msk [vmem:[#allocation2 + $0x1c0] sm:$0xff] %vm7010_vm2, %v978_v12  ;;  %v4069_v28 = vld [vmem:[#allocation2 + $0x108] sm:$0xff]  ;;  %v1171_v12 = vsel %vm7010_vm2, %v4098_v60, -inf }
 0x240   :  { %663 = vst.msk [vmem:[#allocation2 + $0x110] sm:$0xff] %vm7010_vm2, %v642_v16  ;;  %v1174_v39 = vsel %vm7010_vm2, %v4069_v28, -inf  ;;  %v4110_v16 = vpop.xlane.xlu1 %1079 }
 0x241   :  { %1142 = vmax.xlane.f32.xlu1 %v1141_v20  ;;  %1145 = vmax.xlane.f32.xlu0 %v1144_v22  ;;  %775 = vst.msk [vmem:[#allocation2 + $0x140] sm:$0xff] %vm7010_vm2, %v750_v18 }
 0x242   :  { %1166 = vmax.xlane.f32.xlu2 %v1165_v14  ;;  %v873_v14 = vpop.f32.mrf.mxu0 }
 0x243   :  { %v1083_v58 = vpop.xlane.xlu2 %1082  ;;  %892 = vst.msk [vmem:[#allocation2 + $0x198] sm:$0xff] %vm7010_vm2, %v873_v14 }
 0x244   :  { %v1269_v4 = vsub.f32 %v3901_v32, %v1083_v58 }
 0x246   :  { %v981_v55 = vpop.f32.mrf.mxu1  ;;  %v1335_v32 = vmul.f32 1.442695, %v1269_v4  ;;  %v4114_v20 = vld [vmem:[#allocation2 + $0x1c0] sm:$0xff] }
 0x247   :  { %v645_v30 = vpop.f32.mrf.mxu2  ;;  %v753_v31 = vpop.f32.mrf.mxu3  ;;  %1004 = vst.msk [vmem:[#allocation2 + $0x1c8] sm:$0xff] %vm7010_vm2, %v981_v55  ;;  %v4096_v59 = vld [vmem:[#allocation2 + $0x110] sm:$0xff] }
 0x248   :  { %664 = vst.msk [vmem:[#allocation2 + $0x118] sm:$0xff] %vm7010_vm2, %v645_v30  ;;  %v4079_v40 = vld [vmem:[#allocation2 + $0x140] sm:$0xff]  ;;  %v1177_v5 = vsel %vm7010_vm2, %v4096_v59, -inf  ;;  %v1243_v30 = vsel %vm7010_vm2, %v4114_v20, -inf  ;;  %3438 = vpow2.f32 %v1335_v32 }
 0x249   :  { %1157 = vmax.xlane.f32.xlu1 %v1156_v36  ;;  %1163 = vmax.xlane.f32.xlu0 %v1162_v38  ;;  %776 = vst.msk [vmem:[#allocation2 + $0x148] sm:$0xff] %vm7010_vm2, %v753_v31  ;;  %v1195_v47 = vsel %vm7010_vm2, %v4079_v40, -inf }
 0x24a   :  { %1175 = vmax.xlane.f32.xlu2 %v1174_v39  ;;  %v876_v38 = vpop.f32.mrf.mxu0 }
 0x24b   :  { %893 = vst.msk [vmem:[#allocation2 + $0x1a0] sm:$0xff] %vm7010_vm2, %v876_v38 }
 0x24e   :  { %v984_v39 = vpop.f32.mrf.mxu1 }
 0x24f   :  { %v648_v50 = vpop.f32.mrf.mxu2  ;;  %v756_v51 = vpop.f32.mrf.mxu3  ;;  %v4116_v22 = vld [vmem:[#allocation2 + $0x118] sm:$0xff]  ;;  %1005 = vst.msk [vmem:[#allocation2 + $0x1d0] sm:$0xff] %vm7010_vm2, %v984_v39 }
 0x250   :  { %665 = vst.msk [vmem:[#allocation2 + $0x120] sm:$0xff] %vm7010_vm2, %v648_v50  ;;  %v4112_v18 = vld [vmem:[#allocation2 + $0x148] sm:$0xff]  ;;  %v1180_v36 = vsel %vm7010_vm2, %v4116_v22, -inf }
 0x251   :  { %1196 = vmax.xlane.f32.xlu0 %v1195_v47  ;;  %1169 = vmax.xlane.f32.xlu1 %v1168_v48  ;;  %777 = vst.msk [vmem:[#allocation2 + $0x150] sm:$0xff] %vm7010_vm2, %v756_v51  ;;  %v1198_v23 = vsel %vm7010_vm2, %v4112_v18, -inf  ;;  %v4127_v47 = vpop.xlane.xlu1 %1124 }
 0x252   :  { %1220 = vmax.xlane.f32.xlu2 %v1219_v49  ;;  %7015 = vst [vmem:[#allocation11_spill] sm:$0xff] %v4112_v18  ;;  %v4131_v49 = vpop.eup %3438 }
 0x253   :  { %7017 = vst [vmem:[#allocation13_spill] sm:$0xff] %v4131_v49  ;;  %v1465_v58 = vsel %vm7010_vm2, %v4131_v49, 0.0 }
 0x256   :  { %v987_v55 = vpop.f32.mrf.mxu1 }
 0x257   :  { %v651_v2 = vpop.f32.mrf.mxu2  ;;  %v759_v3 = vpop.f32.mrf.mxu3  ;;  %1006 = vst.msk [vmem:[#allocation2 + $0x1d8] sm:$0xff] %vm7010_vm2, %v987_v55 }
 0x258   :  { %666 = vst.msk [vmem:[#allocation2 + $0x128] sm:$0xff] %vm7010_vm2, %v651_v2  ;;  %v4129_v48 = vld [vmem:[#allocation2 + $0x150] sm:$0xff] }
 0x259   :  { %1178 = vmax.xlane.f32.xlu0 %v1177_v5  ;;  %1172 = vmax.xlane.f32.xlu1 %v1171_v12  ;;  %778 = vst.msk [vmem:[#allocation2 + $0x158] sm:$0xff] %vm7010_vm2, %v759_v3  ;;  %v1201_v50 = vsel %vm7010_vm2, %v4129_v48, -inf  ;;  %v1086_v2 = vpop.xlane.xlu1 %1085  ;;  %v4141_v3 = vld [vmem:[#allocation2 + $0x120] sm:$0xff]  ;;  %v4145_v5 = vpop.xlane.xlu0 %1076 }
 0x25a   :  { %1223 = vmax.xlane.f32.xlu2 %v1222_v61  ;;  %7016 = vst [vmem:[#allocation12_spill] sm:$0xff] %v4129_v48  ;;  %v4139_v61 = vld [vmem:[#allocation2 + $0x190] sm:$0xff]  ;;  %v1270_v12 = vsub.f32 %v3905_v33, %v1086_v2  ;;  %v1183_v14 = vsel %vm7010_vm2, %v4141_v3, -inf }
 0x25b   :  { %7018 = vst [vmem:[#allocation14_spill] sm:$0xff] %v4141_v3  ;;  %v1225_v4 = vsel %vm7010_vm2, %v4139_v61, -inf }
 0x25f   :  { %v654_v31 = vpop.f32.mrf.mxu2  ;;  %v762_v32 = vpop.f32.mrf.mxu3 }
 0x260   :  { %667 = vst.msk [vmem:[#allocation2 + $0x130] sm:$0xff] %vm7010_vm2, %v654_v31 }
 0x261   :  { %1181 = vmax.xlane.f32.xlu0 %v1180_v36  ;;  %1199 = vmax.xlane.f32.xlu1 %v1198_v23  ;;  %779 = vst.msk [vmem:[#allocation2 + $0x160] sm:$0xff] %vm7010_vm2, %v762_v32  ;;  %v4151_v23 = vld [vmem:[#allocation2 + $0x158] sm:$0xff]  ;;  %v4153_v36 = vld [vmem:[#allocation2 + $0x1c8] sm:$0xff] }
 0x262   :  { %1244 = vmax.xlane.f32.xlu2 %v1243_v30  ;;  %v1337_v30 = vmul.f32 1.442695, %v1270_v12  ;;  %v1204_v39 = vsel %vm7010_vm2, %v4151_v23, -inf }
 0x264   :  { %3440 = vpow2.f32 %v1337_v30 }
 0x267   :  { %v657_v51 = vpop.f32.mrf.mxu2  ;;  %v765_v55 = vpop.f32.mrf.mxu3 }
 0x268   :  { %668 = vst.msk [vmem:[#allocation2 + $0x138] sm:$0xff] %vm7010_vm2, %v657_v51 }
 0x269   :  { %1202 = vmax.xlane.f32.xlu0 %v1201_v50  ;;  %v1246_v50 = vsel %vm7010_vm2, %v4153_v36, -inf  ;;  %780 = vst.msk [vmem:[#allocation2 + $0x168] sm:$0xff] %vm7010_vm2, %v765_v55 }
 0x26a   :  { %1466 = vadd.xlane.f32.xlu2 %v1465_v58 }
 0x26c   :  { %v4160_v51 = vpop.xlane.xlu0 %1100 }
 0x26f   :  { %v768_v30 = vpop.f32.mrf.mxu3 }
 0x270   :  { %781 = vst.msk [vmem:[#allocation2 + $0x170] sm:$0xff] %vm7010_vm2, %v768_v30 }
 0x271   :  { %1184 = vmax.xlane.f32.xlu0 %v1183_v14 }
 0x272   :  { %1226 = vmax.xlane.f32.xlu2 %v1225_v4 }
 0x274   :  { %v1104_v31 = vpop.xlane.xlu2 %1103 }
 0x275   :  { %v1276_v38 = vsub.f32 %v3942_v0, %v1104_v31  ;;  %v4164_v0 = vpop.eup %3440  ;;  %v879_v31 = vpop.f32.mrf.mxu0 }
 0x276   :  { %7019 = vst [vmem:[#allocation15_spill] sm:$0xff] %v4164_v0  ;;  %v1468_v32 = vsel %vm7010_vm2, %v4164_v0, 0.0 }
 0x277   :  { %v1349_v33 = vmul.f32 1.442695, %v1276_v38  ;;  %v4172_v38 = vpop.xlane.xlu0 %1127  ;;  %894 = vst.msk [vmem:[#allocation2 + $0x1a8] sm:$0xff] %vm7010_vm2, %v879_v31  ;;  %v771_v49 = vpop.f32.mrf.mxu3 }
 0x278   :  { %782 = vst.msk [vmem:[#allocation2 + $0x178] sm:$0xff] %vm7010_vm2, %v771_v49  ;;  %v1275_v49 = vsub.f32 %v3933_v56, %v4160_v51 }
 0x279   :  { %1205 = vmax.xlane.f32.xlu0 %v1204_v39  ;;  %3442 = vpow2.f32 %v1349_v33 }
 0x27a   :  { %1247 = vmax.xlane.f32.xlu2 %v1246_v50  ;;  %v4176_v50 = vld [vmem:[#allocation2 + $0x1a0] sm:$0xff] }
 0x27c   :  { %v1107_v58 = vpop.xlane.xlu1 %1106 }
 0x27d   :  { %v1277_v2 = vsub.f32 %v3953_v8, %v1107_v58  ;;  %v990_v8 = vpop.f32.mrf.mxu1  ;;  %v4180_v58 = vld [vmem:[#allocation2 + $0x198] sm:$0xff] }
 0x27e   :  { %1007 = vst.msk [vmem:[#allocation2 + $0x1e0] sm:$0xff] %vm7010_vm2, %v990_v8  ;;  %v1228_v31 = vsel %vm7010_vm2, %v4180_v58, -inf  ;;  %v882_v8 = vpop.f32.mrf.mxu0  ;;  %v4267_v48 = vld [vmem:[#allocation2 + $0x1a8] sm:$0xff] }
 0x27f   :  { %v1351_v4 = vmul.f32 1.442695, %v1277_v2  ;;  %v4166_v12 = vpop.eup %3442  ;;  %895 = vst.msk [vmem:[#allocation2 + $0x1b0] sm:$0xff] %vm7010_vm2, %v882_v8 }
 0x280   :  { %7020 = vst [vmem:[#allocation16_spill] sm:$0xff] %v4166_v12  ;;  %v1486_v14 = vsel %vm7010_vm2, %v4166_v12, 0.0  ;;  %v4211_v12 = vld [vmem:[#allocation2 + $0x128] sm:$0xff] }
 0x281   :  { %3444 = vpow2.f32 %v1351_v4  ;;  %1487 = vadd.xlane.f32.xlu1 %v1486_v14  ;;  %v1231_v14 = vsel %vm7010_vm2, %v4176_v50, -inf }
 0x282   :  { %1469 = vadd.xlane.f32.xlu2 %v1468_v32 }
 0x284   :  { %v1089_v39 = vpop.xlane.xlu1 %1088  ;;  %v1110_v33 = vpop.xlane.xlu2 %1109 }
 0x285   :  { %v1271_v55 = vsub.f32 %v3964_v15, %v1089_v39  ;;  %v1278_v32 = vsub.f32 %v3966_v17, %v1110_v33  ;;  %v993_v15 = vpop.f32.mrf.mxu1  ;;  %v1095_v39 = vpop.xlane.xlu0 %1094  ;;  %v4195_v17 = vld [vmem:[#allocation2 + $0x1d8] sm:$0xff] }
 0x286   :  { %1008 = vst.msk [vmem:[#allocation2 + $0x1e8] sm:$0xff] %vm7010_vm2, %v993_v15  ;;  %v885_v3 = vpop.f32.mrf.mxu0 }
 0x287   :  { %v4182_v2 = vpop.eup %3444  ;;  %v1339_v4 = vmul.f32 1.442695, %v1271_v55  ;;  %v1353_v55 = vmul.f32 1.442695, %v1278_v32  ;;  %896 = vst.msk [vmem:[#allocation2 + $0x1b8] sm:$0xff] %vm7010_vm2, %v885_v3 }
 0x288   :  { %7021 = vst [vmem:[#allocation17_spill] sm:$0xff] %v4182_v2  ;;  %v1489_v30 = vsel %vm7010_vm2, %v4182_v2, 0.0  ;;  %v4250_v2 = vld [vmem:[#allocation2 + $0x170] sm:$0xff] }
 0x289   :  { %3446 = vpow2.f32 %v1339_v4  ;;  %1490 = vadd.xlane.f32.xlu0 %v1489_v30  ;;  %1232 = vmax.xlane.f32.xlu1 %v1231_v14  ;;  %v4197_v4 = vld [vmem:[#allocation2 + $0x1d0] sm:$0xff]  ;;  %7026 = vst [vmem:[#allocation22_spill] sm:$0xff] %v4250_v2 }
 0x28a   :  { %1229 = vmax.xlane.f32.xlu2 %v1228_v31  ;;  %v1252_v31 = vsel %vm7010_vm2, %v4195_v17, -inf  ;;  %3448 = vpow2.f32 %v1353_v55  ;;  %v1249_v32 = vsel %vm7010_vm2, %v4197_v4, -inf }
 0x28c   :  { %v4193_v21 = vpop.xlane.xlu2 %1130  ;;  %v1092_v33 = vpop.xlane.xlu1 %1091 }
 0x28d   :  { %v1272_v14 = vsub.f32 %v3977_v24, %v1092_v33  ;;  %v996_v15 = vpop.f32.mrf.mxu1  ;;  %v4216_v33 = vld [vmem:[#allocation2 + $0x130] sm:$0xff] }
 0x28e   :  { %1009 = vst.msk [vmem:[#allocation2 + $0x1f0] sm:$0xff] %vm7010_vm2, %v996_v15 }
 0x28f   :  { %v4199_v30 = vpop.eup %3446  ;;  %v1341_v41 = vmul.f32 1.442695, %v1272_v14  ;;  %v1189_v14 = vsel %vm7010_vm2, %v4216_v33, -inf }
 0x290   :  { %7022 = vst [vmem:[#allocation18_spill] sm:$0xff] %v4199_v30  ;;  %v1471_v8 = vsel %vm7010_vm2, %v4199_v30, 0.0  ;;  %v4213_v55 = vpop.eup %3448 }
 0x291   :  { %1472 = vadd.xlane.f32.xlu0 %v1471_v8  ;;  %1253 = vmax.xlane.f32.xlu1 %v1252_v31  ;;  %7023 = vst [vmem:[#allocation19_spill] sm:$0xff] %v4213_v55  ;;  %v1273_v8 = vsub.f32 %v3951_v6, %v1095_v39  ;;  %3450 = vpow2.f32 %v1341_v41  ;;  %v1186_v31 = vsel %vm7010_vm2, %v4211_v12, -inf  ;;  %v1492_v15 = vsel %vm7010_vm2, %v4213_v55, 0.0 }
 0x292   :  { %1250 = vmax.xlane.f32.xlu2 %v1249_v32 }
 0x293   :  { %v1343_v6 = vmul.f32 1.442695, %v1273_v8  ;;  %v4244_v8 = vld [vmem:[#allocation2 + $0x168] sm:$0xff] }
 0x294   :  { %v4209_v29 = vpop.xlane.xlu0 %1115 }
 0x295   :  { %v1113_v11 = vpop.xlane.xlu2 %1112  ;;  %v999_v30 = vpop.f32.mrf.mxu1  ;;  %v1280_v3 = vsub.f32 %v3994_v37, %v4209_v29 }
 0x296   :  { %v1279_v24 = vsub.f32 %v3990_v34, %v1113_v11  ;;  %v4225_v11 = vld [vmem:[#allocation2 + $0x160] sm:$0xff]  ;;  %1010 = vst.msk [vmem:[#allocation2 + $0x1f8] sm:$0xff] %vm7010_vm2, %v999_v30  ;;  %v4228_v34 = vpop.xlane.xlu1 %1097 }
 0x297   :  { %v1357_v56 = vmul.f32 1.442695, %v1280_v3 }
 0x298   :  { %v1355_v32 = vmul.f32 1.442695, %v1279_v24  ;;  %v4234_v24 = vpop.eup %3450 }
 0x299   :  { %1187 = vmax.xlane.f32.xlu0 %v1186_v31  ;;  %1493 = vadd.xlane.f32.xlu1 %v1492_v15  ;;  %7024 = vst [vmem:[#allocation20_spill] sm:$0xff] %v4234_v24  ;;  %v1207_v31 = vsel %vm7010_vm2, %v4225_v11, -inf }
 0x29a   :  { %1190 = vmax.xlane.f32.xlu2 %v1189_v14  ;;  %3452 = vpow2.f32 %v1355_v32  ;;  %v1474_v32 = vsel %vm7010_vm2, %v4234_v24, 0.0 }
 0x29b   :  { %3454 = vpow2.f32 %v1343_v6 }
 0x29c   :  { %v4230_v41 = vpop.xlane.xlu0 %1136 }
 0x29d   :  { %v4232_v39 = vpop.xlane.xlu2 %1133 }
 0x29e   :  { %v4254_v0 = vpop.xlane.xlu1 %1118 }
 0x2a0   :  { %v4238_v14 = vpop.eup %3452 }
 0x2a1   :  { %7025 = vst [vmem:[#allocation21_spill] sm:$0xff] %v4238_v14  ;;  %1208 = vmax.xlane.f32.xlu0 %v1207_v31  ;;  %v1495_v30 = vsel %vm7010_vm2, %v4238_v14, 0.0  ;;  %1475 = vadd.xlane.f32.xlu1 %v1474_v32  ;;  %v4252_v6 = vpop.eup %3454  ;;  %v1210_v31 = vsel %vm7010_vm2, %v4244_v8, -inf  ;;  %v1267_v14 = vsub.f32 %v3877_v13, %v4145_v5  ;;  %v1213_v32 = vsel %vm7010_vm2, %v4250_v2, -inf }
 0x2a2   :  { %1496 = vadd.xlane.f32.xlu2 %v1495_v30  ;;  %7027 = vst [vmem:[#allocation23_spill] sm:$0xff] %v4252_v6  ;;  %v1268_v30 = vsub.f32 %v3885_v19, %v4110_v16  ;;  %v1477_v24 = vsel %vm7010_vm2, %v4252_v6, 0.0  ;;  %v4274_v19 = vld [vmem:[#allocation2 + $0x1b0] sm:$0xff]  ;;  %v4276_v16 = vld [vmem:[#allocation2 + $0x138] sm:$0xff]  ;;  %v4290_v6 = vld [vmem:[#allocation2 + $0x1e0] sm:$0xff] }
 0x2a3   :  { %v1331_v13 = vmul.f32 1.442695, %v1267_v14  ;;  %7028 = vst [vmem:[#allocation24_spill] sm:$0xff] %v4274_v19  ;;  %v1255_v37 = vsel %vm7010_vm2, %v4290_v6, -inf }
 0x2a4   :  { %v4246_v15 = vpop.xlane.xlu0 %1121  ;;  %v1333_v2 = vmul.f32 1.442695, %v1268_v30  ;;  %v1347_v30 = vmul.f32 1.442695, %v1275_v49  ;;  %7029 = vst [vmem:[#allocation25_spill] sm:$0xff] %v4290_v6 }
 0x2a5   :  { %v4248_v55 = vpop.xlane.xlu2 %1154  ;;  %3456 = vpow2.f32 %v1331_v13 }
 0x2a6   :  { %v4284_v14 = vpop.xlane.xlu1 %1139  ;;  %3458 = vpow2.f32 %v1333_v2  ;;  %v1274_v2 = vsub.f32 %v3992_v35, %v4228_v34 }
 0x2a7   :  { %3460 = vpow2.f32 %v1347_v30 }
 0x2a8   :  { %3462 = vpow2.f32 %v1357_v56  ;;  %v4314_v56 = vld [vmem:[#allocation2 + $0x1f8] sm:$0xff] }
 0x2a9   :  { %1211 = vmax.xlane.f32.xlu0 %v1210_v31  ;;  %1478 = vadd.xlane.f32.xlu1 %v1477_v24  ;;  %v1234_v24 = vsel %vm7010_vm2, %v4267_v48, -inf  ;;  %v1237_v31 = vsel %vm7010_vm2, %v4274_v19, -inf  ;;  %7033 = vst [vmem:[#allocation29_spill] sm:$0xff] %v4314_v56 }
 0x2aa   :  { %1214 = vmax.xlane.f32.xlu2 %v1213_v32  ;;  %v1192_v32 = vsel %vm7010_vm2, %v4276_v16, -inf }
 0x2ab   :  { %v4294_v29 = vpop.eup %3456 }
 0x2ac   :  { %v4270_v5 = vpop.xlane.xlu0 %1151  ;;  %7030 = vst [vmem:[#allocation26_spill] sm:$0xff] %v4294_v29  ;;  %v4298_v19 = vpop.eup %3458  ;;  %v1459_v49 = vsel %vm7010_vm2, %v4294_v29, 0.0 }
 0x2ad   :  { %v4272_v18 = vpop.xlane.xlu2 %1160  ;;  %7031 = vst [vmem:[#allocation27_spill] sm:$0xff] %v4298_v19  ;;  %v4310_v6 = vpop.eup %3460 }
 0x2ae   :  { %v4306_v3 = vpop.xlane.xlu1 %1148  ;;  %7032 = vst [vmem:[#allocation28_spill] sm:$0xff] %v4310_v6 }
 0x2b1   :  { %1235 = vmax.xlane.f32.xlu0 %v1234_v24  ;;  %1193 = vmax.xlane.f32.xlu1 %v1192_v32  ;;  %v1287_v24 = vsub.f32 %v4006_v43, %v4230_v41  ;;  %v1345_v32 = vmul.f32 1.442695, %v1274_v2  ;;  %v4316_v43 = vpop.eup %3462  ;;  %v1483_v41 = vsel %vm7010_vm2, %v4310_v6, 0.0 }
 0x2b2   :  { %1238 = vmax.xlane.f32.xlu2 %v1237_v31  ;;  %v1462_v31 = vsel %vm7010_vm2, %v4298_v19, 0.0  ;;  %7034 = vst [vmem:[#allocation30_spill] sm:$0xff] %v4316_v43  ;;  %v4329_v19 = vld [vmem:[#allocation2 + $0x1e8] sm:$0xff] }
 0x2b3   :  { %v1371_v35 = vmul.f32 1.442695, %v1287_v24  ;;  %3464 = vpow2.f32 %v1345_v32  ;;  %7035 = vst [vmem:[#allocation31_spill] sm:$0xff] %v4329_v19 }
 0x2b4   :  { %v4292_v51 = vpop.xlane.xlu0 %1145 }
 0x2b5   :  { %v1167_v13 = vpop.xlane.xlu2 %1166  ;;  %3466 = vpow2.f32 %v1371_v35 }
 0x2b6   :  { %v1143_v24 = vpop.xlane.xlu1 %1142  ;;  %v1297_v35 = vsub.f32 %v4049_v7, %v1167_v13 }
 0x2b9   :  { %1256 = vmax.xlane.f32.xlu0 %v1255_v37  ;;  %1460 = vadd.xlane.f32.xlu1 %v1459_v49  ;;  %v1264_v37 = vsel %vm7010_vm2, %v4314_v56, -inf  ;;  %v1498_v49 = vsel %vm7010_vm2, %v4316_v43, 0.0  ;;  %v4331_v6 = vpop.eup %3464 }
 0x2ba   :  { %1463 = vadd.xlane.f32.xlu2 %v1462_v31  ;;  %7036 = vst [vmem:[#allocation32_spill] sm:$0xff] %v4331_v6 }
 0x2bb   :  { %v4333_v56 = vpop.eup %3466 }
 0x2bc   :  { %v1164_v30 = vpop.xlane.xlu0 %1163  ;;  %7037 = vst [vmem:[#allocation33_spill] sm:$0xff] %v4333_v56 }
 0x2bd   :  { %v4312_v34 = vpop.xlane.xlu2 %1175  ;;  %v1296_v2 = vsub.f32 %v4067_v27, %v1164_v30  ;;  %v1289_v27 = vsub.f32 %v4051_v9, %v1143_v24  ;;  %v1258_v30 = vsel %vm7010_vm2, %v4329_v19, -inf  ;;  %v4347_v9 = vld [vmem:[#allocation2 + $0x178] sm:$0xff]  ;;  %v1391_v24 = vmul.f32 1.442695, %v1297_v35 }
 0x2be   :  { %7039 = vst [vmem:[#allocation35_spill] sm:$0xff] %v4347_v9 }
 0x2bf   :  { %v1389_v29 = vmul.f32 1.442695, %v1296_v2  ;;  %v1375_v2 = vmul.f32 1.442695, %v1289_v27  ;;  %v1158_v27 = vpop.xlane.xlu1 %1157 }
 0x2c1   :  { %1484 = vadd.xlane.f32.xlu0 %v1483_v41  ;;  %1499 = vadd.xlane.f32.xlu1 %v1498_v49  ;;  %3468 = vpow2.f32 %v1389_v29  ;;  %v1480_v41 = vsel %vm7010_vm2, %v4331_v6, 0.0  ;;  %v4343_v49 = vld [vmem:[#allocation2 + $0x1b8] sm:$0xff]  ;;  %v1288_v29 = vsub.f32 %v4021_v52, %v4284_v14 }
 0x2c2   :  { %1265 = vmax.xlane.f32.xlu2 %v1264_v37  ;;  %v1519_v37 = vsel %vm7010_vm2, %v4333_v56, 0.0  ;;  %7038 = vst [vmem:[#allocation34_spill] sm:$0xff] %v4343_v49  ;;  %v1240_v7 = vsel %vm7010_vm2, %v4343_v49, -inf  ;;  %3470 = vpow2.f32 %v1375_v2  ;;  %v4366_v2 = vld [vmem:[#allocation2 + $0x1f0] sm:$0xff] }
 0x2c3   :  { %3472 = vpow2.f32 %v1391_v24 }
 0x2c4   :  { %v4325_v31 = vpop.xlane.xlu0 %1196 }
 0x2c5   :  { %v4327_v32 = vpop.xlane.xlu2 %1220 }
 0x2c7   :  { %v4353_v13 = vpop.eup %3468 }
 0x2c8   :  { %7040 = vst [vmem:[#allocation36_spill] sm:$0xff] %v4353_v13  ;;  %v1546_v35 = vsel %vm7010_vm2, %v4353_v13, 0.0  ;;  %v4363_v49 = vpop.eup %3470 }
 0x2c9   :  { %1259 = vmax.xlane.f32.xlu0 %v1258_v30  ;;  %1481 = vadd.xlane.f32.xlu1 %v1480_v41  ;;  %v1216_v30 = vsel %vm7010_vm2, %v4347_v9, -inf  ;;  %v1281_v41 = vsub.f32 %v4010_v46, %v4254_v0  ;;  %v4368_v9 = vpop.eup %3472  ;;  %v1294_v46 = vsub.f32 %v4065_v26, %v1158_v27  ;;  %v1282_v0 = vsub.f32 %v4025_v54, %v4246_v15 }
 0x2ca   :  { %1520 = vadd.xlane.f32.xlu2 %v1519_v37  ;;  %v1373_v37 = vmul.f32 1.442695, %v1288_v29  ;;  %7041 = vst [vmem:[#allocation37_spill] sm:$0xff] %v4368_v9  ;;  %v1170_v29 = vpop.xlane.xlu1 %1169 }
 0x2cb   :  { %v1359_v56 = vmul.f32 1.442695, %v1281_v41  ;;  %v1385_v41 = vmul.f32 1.442695, %v1294_v46  ;;  %v1361_v26 = vmul.f32 1.442695, %v1282_v0 }
 0x2cc   :  { %v4345_v43 = vpop.xlane.xlu0 %1178  ;;  %3474 = vpow2.f32 %v1373_v37  ;;  %v1286_v37 = vsub.f32 %v4008_v44, %v4232_v39 }
 0x2cd   :  { %v4349_v19 = vpop.xlane.xlu2 %1223  ;;  %3476 = vpow2.f32 %v1359_v56 }
 0x2d1   :  { %1241 = vmax.xlane.f32.xlu0 %v1240_v7  ;;  %1217 = vmax.xlane.f32.xlu1 %v1216_v30  ;;  %v1525_v7 = vsel %vm7010_vm2, %v4363_v49, 0.0  ;;  %v1261_v30 = vsel %vm7010_vm2, %v4366_v2, -inf }
 0x2d2   :  { %1547 = vadd.xlane.f32.xlu2 %v1546_v35  ;;  %v4381_v54 = vpop.eup %3474  ;;  %v1298_v35 = vsub.f32 %v4081_v42, %v1170_v29  ;;  %v1369_v42 = vmul.f32 1.442695, %v1286_v37 }
 0x2d3   :  { %v4385_v27 = vpop.eup %3476 }
 0x2d4   :  { %v1182_v6 = vpop.xlane.xlu0 %1181  ;;  %v1501_v46 = vsel %vm7010_vm2, %v4385_v27, 0.0 }
 0x2d5   :  { %v1245_v52 = vpop.xlane.xlu2 %1244 }
 0x2d6   :  { %v1323_v14 = vsub.f32 %v4114_v20, %v1245_v52  ;;  %v1549_v20 = vsel %vm7010_vm2, %v4368_v9, 0.0  ;;  %v1522_v52 = vsel %vm7010_vm2, %v4381_v54, 0.0 }
 0x2d8   :  { %v1443_v24 = vmul.f32 1.442695, %v1323_v14 }
 0x2d9   :  { %1526 = vadd.xlane.f32.xlu0 %v1525_v7  ;;  %1262 = vmax.xlane.f32.xlu1 %v1261_v30  ;;  %v4398_v7 = vpop.xlane.xlu1 %1172 }
 0x2da   :  { %3478 = vpow2.f32 %v1443_v24  ;;  %1550 = vadd.xlane.f32.xlu2 %v1549_v20  ;;  %v1393_v24 = vmul.f32 1.442695, %v1298_v35 }
 0x2db   :  { %3480 = vpow2.f32 %v1385_v41  ;;  %v1302_v41 = vsub.f32 %v4116_v22, %v1182_v6 }
 0x2dc   :  { %v4379_v56 = vpop.xlane.xlu0 %1202  ;;  %3482 = vpow2.f32 %v1361_v26  ;;  %v1290_v26 = vsub.f32 %v4053_v10, %v4292_v51 }
 0x2dd   :  { %v4383_v15 = vpop.xlane.xlu2 %1466  ;;  %3484 = vpow2.f32 %v1393_v24 }
 0x2de   :  { %3486 = vpow2.f32 %v1369_v42  ;;  %vm1684_vm4 = vweird.f32 %v4383_v15 }
 0x2e0   :  { %v4392_v14 = vpop.eup %3478 }
 0x2e1   :  { %7042 = vst [vmem:[#allocation38_spill] sm:$0xff] %v4392_v14  ;;  %1523 = vadd.xlane.f32.xlu0 %v1522_v52  ;;  %1502 = vadd.xlane.f32.xlu1 %v1501_v46  ;;  %v1627_v0 = vsel %vm7010_vm2, %v4392_v14, 0.0  ;;  %v4402_v39 = vpop.eup %3480  ;;  %v1401_v46 = vmul.f32 1.442695, %v1302_v41  ;;  %v4416_v22 = vpop.xlane.xlu1 %1199  ;;  %v1293_v41 = vsub.f32 %v4023_v53, %v4248_v55 }
 0x2e2   :  { %1628 = vadd.xlane.f32.xlu2 %v1627_v0  ;;  %7043 = vst [vmem:[#allocation39_spill] sm:$0xff] %v4402_v39  ;;  %v4404_v30 = vpop.eup %3482  ;;  %v1540_v37 = vsel %vm7010_vm2, %v4402_v39, 0.0  ;;  %v1377_v0 = vmul.f32 1.442695, %v1290_v26  ;;  %v7094_v39 = vld [vmem:[#allocation35_spill] sm:$0xff] }
 0x2e3   :  { %v1504_v52 = vsel %vm7010_vm2, %v4404_v30, 0.0  ;;  %v4414_v24 = vpop.eup %3484 }
 0x2e4   :  { %v4400_v44 = vpop.xlane.xlu0 %1184  ;;  %v4419_v51 = vpop.eup %3486  ;;  %v1552_v26 = vsel %vm7010_vm2, %v4414_v24, 0.0 }
 0x2e5   :  { %v1227_v29 = vpop.xlane.xlu2 %1226 }
 0x2e6   :  { %v1317_v20 = vsub.f32 %v4139_v61, %v1227_v29 }
 0x2e8   :  { %v1431_v35 = vmul.f32 1.442695, %v1317_v20 }
 0x2e9   :  { %1541 = vadd.xlane.f32.xlu0 %v1540_v37  ;;  %1505 = vadd.xlane.f32.xlu1 %v1504_v52  ;;  %v1383_v37 = vmul.f32 1.442695, %v1293_v41 }
 0x2ea   :  { %3488 = vpow2.f32 %v1431_v35 }
 0x2eb   :  { %3490 = vpow2.f32 %v1401_v46 }
 0x2ec   :  { %v1206_v61 = vpop.xlane.xlu0 %1205  ;;  %3492 = vpow2.f32 %v1377_v0 }
 0x2ed   :  { %v1310_v6 = vsub.f32 %v4151_v23, %v1206_v61  ;;  %v1248_v10 = vpop.xlane.xlu2 %1247  ;;  %v1516_v23 = vsel %vm7010_vm2, %v4419_v51, 0.0  ;;  %v1295_v61 = vsub.f32 %v4036_v62, %v4272_v18 }
 0x2ee   :  { %v1324_v29 = vsub.f32 %v4153_v36, %v1248_v10 }
 0x2ef   :  { %v1417_v42 = vmul.f32 1.442695, %v1310_v6 }
 0x2f0   :  { %v4422_v20 = vpop.eup %3488  ;;  %v1445_v36 = vmul.f32 1.442695, %v1324_v29  ;;  %v1387_v29 = vmul.f32 1.442695, %v1295_v61 }
 0x2f1   :  { %7044 = vst [vmem:[#allocation40_spill] sm:$0xff] %v4422_v20  ;;  %3494 = vpow2.f32 %v1417_v42  ;;  %v1609_v35 = vsel %vm7010_vm2, %v4422_v20, 0.0  ;;  %1553 = vadd.xlane.f32.xlu0 %v1552_v26  ;;  %1517 = vadd.xlane.f32.xlu1 %v1516_v23  ;;  %v4432_v52 = vpop.eup %3490 }
 0x2f2   :  { %1610 = vadd.xlane.f32.xlu2 %v1609_v35  ;;  %7045 = vst [vmem:[#allocation41_spill] sm:$0xff] %v4432_v52  ;;  %v4438_v55 = vpop.eup %3492  ;;  %3496 = vpow2.f32 %v1445_v36  ;;  %v1564_v10 = vsel %vm7010_vm2, %v4432_v52, 0.0  ;;  %v1285_v36 = vsub.f32 %v3979_v25, %v4193_v21  ;;  %v1292_v25 = vsub.f32 %v4040_v1, %v4270_v5 }
 0x2f3   :  { %3498 = vpow2.f32 %v1383_v37  ;;  %v1528_v42 = vsel %vm7010_vm2, %v4438_v55, 0.0 }
 0x2f4   :  { %v4434_v46 = vpop.xlane.xlu1 %1487  ;;  %3500 = vpow2.f32 %v1387_v29 }
 0x2f5   :  { %v4436_v53 = vpop.xlane.xlu2 %1469  ;;  %vm1782_vm8 = vweird.f32 %v4434_v46 }
 0x2f6   :  { %vm1698_vm9 = vweird.f32 %v4436_v53 }
 0x2f7   :  { %v4440_v0 = vpop.eup %3494 }
 0x2f8   :  { %7046 = vst [vmem:[#allocation42_spill] sm:$0xff] %v4440_v0  ;;  %v1588_v6 = vsel %vm7010_vm2, %v4440_v0, 0.0  ;;  %v4452_v26 = vpop.eup %3496 }
 0x2f9   :  { %1565 = vadd.xlane.f32.xlu0 %v1564_v10  ;;  %1529 = vadd.xlane.f32.xlu1 %v1528_v42  ;;  %7047 = vst [vmem:[#allocation43_spill] sm:$0xff] %v4452_v26  ;;  %v4454_v62 = vpop.eup %3498  ;;  %v1630_v37 = vsel %vm7010_vm2, %v4452_v26, 0.0 }
 0x2fa   :  { %1589 = vadd.xlane.f32.xlu2 %v1588_v6  ;;  %7048 = vst [vmem:[#allocation44_spill] sm:$0xff] %v4454_v62  ;;  %v1537_v61 = vsel %vm7010_vm2, %v4454_v62, 0.0  ;;  %v1367_v6 = vmul.f32 1.442695, %v1285_v36  ;;  %v7093_v62 = vld [vmem:[#allocation34_spill] sm:$0xff] }
 0x2fc   :  { %v4450_v41 = vpop.xlane.xlu0 %1490  ;;  %v1233_v35 = vpop.xlane.xlu1 %1232 }
 0x2fd   :  { %v1230_v23 = vpop.xlane.xlu2 %1229  ;;  %v1319_v29 = vsub.f32 %v4176_v50, %v1233_v35  ;;  %v3704_v35 = vld [vmem:[#allocation2 + $0x88] sm:$0xff] }
 0x2fe   :  { %v1318_v18 = vsub.f32 %v4180_v58, %v1230_v23  ;;  %v4465_v58 = vpop.eup %3500 }
 0x2ff   :  { %7049 = vst [vmem:[#allocation45_spill] sm:$0xff] %v4465_v58  ;;  %v1543_v36 = vsel %vm7010_vm2, %v4465_v58, 0.0 }
 0x300   :  { %v1433_v10 = vmul.f32 1.442695, %v1318_v18 }
 0x301   :  { %1631 = vadd.xlane.f32.xlu0 %v1630_v37  ;;  %1538 = vadd.xlane.f32.xlu1 %v1537_v61 }
 0x302   :  { %3502 = vpow2.f32 %v1433_v10  ;;  %v1381_v10 = vmul.f32 1.442695, %v1292_v25 }
 0x303   :  { %3504 = vpow2.f32 %v1367_v6  ;;  %v1284_v6 = vsub.f32 %v3704_v35, %v4172_v38  ;;  %v1291_v35 = vsub.f32 %v4038_v63, %v4306_v3 }
 0x304   :  { %v4463_v42 = vpop.xlane.xlu0 %1472  ;;  %v1254_v20 = vpop.xlane.xlu1 %1253 }
 0x305   :  { %v1251_v14 = vpop.xlane.xlu2 %1250  ;;  %v1326_v25 = vsub.f32 %v4195_v17, %v1254_v20 }
 0x306   :  { %v1325_v21 = vsub.f32 %v4197_v4, %v1251_v14  ;;  %v1435_v4 = vmul.f32 1.442695, %v1319_v29 }
 0x308   :  { %v1447_v23 = vmul.f32 1.442695, %v1325_v21  ;;  %v4471_v18 = vpop.eup %3502 }
 0x309   :  { %7050 = vst [vmem:[#allocation46_spill] sm:$0xff] %v4471_v18  ;;  %1544 = vadd.xlane.f32.xlu1 %v1543_v36  ;;  %v1612_v37 = vsel %vm7010_vm2, %v4471_v18, 0.0  ;;  %v4480_v50 = vpop.eup %3504  ;;  %v1365_v36 = vmul.f32 1.442695, %v1284_v6 }
 0x30a   :  { %3506 = vpow2.f32 %v1447_v23  ;;  %1613 = vadd.xlane.f32.xlu2 %v1612_v37  ;;  %7051 = vst [vmem:[#allocation47_spill] sm:$0xff] %v4480_v50  ;;  %v1513_v29 = vsel %vm7010_vm2, %v4480_v50, 0.0  ;;  %v1449_v37 = vmul.f32 1.442695, %v1326_v25  ;;  %v3705_v25 = vld [vmem:[#allocation2 + $0x80] sm:$0xff] }
 0x30b   :  { %3508 = vpow2.f32 %v1381_v10 }
 0x30c   :  { %v1188_v14 = vpop.xlane.xlu0 %1187  ;;  %v4478_v61 = vpop.xlane.xlu1 %1493  ;;  %3510 = vpow2.f32 %v1435_v4 }
 0x30d   :  { %v1304_v1 = vsub.f32 %v4211_v12, %v1188_v14  ;;  %v1191_v5 = vpop.xlane.xlu2 %1190 }
 0x30f   :  { %v1405_v21 = vmul.f32 1.442695, %v1304_v1 }
 0x310   :  { %v4483_v23 = vpop.eup %3506 }
 0x311   :  { %7052 = vst [vmem:[#allocation48_spill] sm:$0xff] %v4483_v23  ;;  %3512 = vpow2.f32 %v1405_v21  ;;  %v1633_v12 = vsel %vm7010_vm2, %v4483_v23, 0.0  ;;  %1514 = vadd.xlane.f32.xlu1 %v1513_v29  ;;  %v4490_v38 = vpop.eup %3508  ;;  %v1305_v21 = vsub.f32 %v4216_v33, %v1191_v5  ;;  %v1283_v29 = vsub.f32 %v3705_v25, %v4127_v47 }
 0x312   :  { %1634 = vadd.xlane.f32.xlu2 %v1633_v12  ;;  %7053 = vst [vmem:[#allocation49_spill] sm:$0xff] %v4490_v38  ;;  %v4495_v4 = vpop.eup %3510  ;;  %3514 = vpow2.f32 %v1365_v36  ;;  %v1300_v36 = vsub.f32 %v4069_v28, %v4312_v34  ;;  %v1379_v33 = vmul.f32 1.442695, %v1291_v35  ;;  %v1307_v47 = vsub.f32 %v4079_v40, %v4325_v31 }
 0x313   :  { %7054 = vst [vmem:[#allocation50_spill] sm:$0xff] %v4495_v4  ;;  %3516 = vpow2.f32 %v1449_v37  ;;  %v1615_v63 = vsel %vm7010_vm2, %v4495_v4, 0.0  ;;  %v1407_v3 = vmul.f32 1.442695, %v1305_v21  ;;  %v1315_v28 = vsub.f32 %v4083_v45, %v4327_v32 }
 0x314   :  { %v1209_v14 = vpop.xlane.xlu0 %1208  ;;  %v4493_v1 = vpop.xlane.xlu1 %1475  ;;  %v1301_v35 = vsub.f32 %v4096_v59, %v4345_v43  ;;  %v1299_v40 = vsub.f32 %v4098_v60, %v4398_v7 }
 0x315   :  { %v1311_v10 = vsub.f32 %v4225_v11, %v1209_v14  ;;  %v4497_v17 = vpop.xlane.xlu2 %1496  ;;  %v1534_v11 = vsel %vm7010_vm2, %v4490_v38, 0.0  ;;  %v1363_v14 = vmul.f32 1.442695, %v1283_v29  ;;  %v1411_v29 = vmul.f32 1.442695, %v1307_v47 }
 0x316   :  { %v1399_v43 = vmul.f32 1.442695, %v1301_v35  ;;  %v1395_v7 = vmul.f32 1.442695, %v1299_v40  ;;  %vm1726_vm1 = vweird.f32 %v4493_v1 }
 0x317   :  { %v4499_v20 = vpop.eup %3512  ;;  %v1419_v6 = vmul.f32 1.442695, %v1311_v10 }
 0x318   :  { %7055 = vst [vmem:[#allocation51_spill] sm:$0xff] %v4499_v20  ;;  %v1570_v12 = vsel %vm7010_vm2, %v4499_v20, 0.0  ;;  %v4516_v37 = vpop.eup %3514 }
 0x319   :  { %3518 = vpow2.f32 %v1419_v6  ;;  %1535 = vadd.xlane.f32.xlu1 %v1534_v11  ;;  %1571 = vadd.xlane.f32.xlu0 %v1570_v12  ;;  %7056 = vst [vmem:[#allocation52_spill] sm:$0xff] %v4516_v37  ;;  %v4522_v10 = vpop.eup %3516  ;;  %v1397_v6 = vmul.f32 1.442695, %v1300_v36  ;;  %v1427_v11 = vmul.f32 1.442695, %v1315_v28  ;;  %v1510_v59 = vsel %vm7010_vm2, %v4516_v37, 0.0 }
 0x31a   :  { %3520 = vrcp.f32 %v4383_v15  ;;  %1616 = vadd.xlane.f32.xlu2 %v1615_v63  ;;  %7057 = vst [vmem:[#allocation53_spill] sm:$0xff] %v4522_v10  ;;  %v1636_v60 = vsel %vm7010_vm2, %v4522_v10, 0.0  ;;  %v1316_v12 = vsub.f32 %v4094_v57, %v4349_v19  ;;  %v7059_v36 = vld [vmem:[#allocation11_spill] sm:$0xff] }
 0x31b   :  { %3522 = vpow2.f32 %v1379_v33  ;;  %v1308_v63 = vsub.f32 %v7059_v36, %v4416_v22 }
 0x31c   :  { %v1212_v5 = vpop.xlane.xlu0 %1211  ;;  %v4520_v34 = vpop.xlane.xlu1 %1478  ;;  %3524 = vpow2.f32 %v1407_v3  ;;  %v1429_v35 = vmul.f32 1.442695, %v1316_v12 }
 0x31d   :  { %v4530_v31 = vpop.xlane.xlu2 %1214  ;;  %v1312_v45 = vsub.f32 %v4244_v8, %v1212_v5  ;;  %3526 = vpow2.f32 %v1363_v14  ;;  %v7061_v5 = vld [vmem:[#allocation12_spill] sm:$0xff] }
 0x31e   :  { %3528 = vpow2.f32 %v1397_v6  ;;  %v1309_v14 = vsub.f32 %v7061_v5, %v4379_v56 }
 0x31f   :  { %v4526_v25 = vpop.eup %3518  ;;  %3530 = vrcp.f32 %v4436_v53  ;;  %v1421_v33 = vmul.f32 1.442695, %v1312_v45  ;;  %v1413_v45 = vmul.f32 1.442695, %v1308_v63 }
 0x320   :  { %7058 = vst [vmem:[#allocation54_spill] sm:$0xff] %v4526_v25  ;;  %v4532_v21 = vpop.eup %3520  ;;  %v1591_v32 = vsel %vm7010_vm2, %v4526_v25, 0.0  ;;  %3532 = vpow2.f32 %v1411_v29  ;;  %v1415_v56 = vmul.f32 1.442695, %v1309_v14  ;;  %v7070_v14 = vld [vmem:[#allocation25_spill] sm:$0xff] }
 0x321   :  { %1511 = vadd.xlane.f32.xlu1 %v1510_v59  ;;  %1592 = vadd.xlane.f32.xlu0 %v1591_v32  ;;  %v1680_v8 = vmul.f32 %v4532_v21, %v4383_v15  ;;  %v4548_v3 = vpop.eup %3522  ;;  %3534 = vpow2.f32 %v1427_v11  ;;  %vm1685_vm3 = vweird.f32 %v4532_v21 }
 0x322   :  { %1637 = vadd.xlane.f32.xlu2 %v1636_v60  ;;  %7060 = vst [vmem:[#allocation11_spill] sm:$0xff] %v4548_v3  ;;  %v4553_v19 = vpop.eup %3524  ;;  %3536 = vpow2.f32 %v1399_v43  ;;  %v1531_v59 = vsel %vm7010_vm2, %v4548_v3, 0.0  ;;  %vm4614_vm5 = vmor %vm1684_vm4, %vm1685_vm3  ;;  %vm1796_vm4 = vweird.f32 %v4450_v41 }
 0x323   :  { %7062 = vst [vmem:[#allocation12_spill] sm:$0xff] %v4553_v19  ;;  %v4555_v6 = vpop.eup %3526  ;;  %3538 = vpow2.f32 %v1395_v7  ;;  %v1681_v40 = vsub.f32 1.0, %v1680_v8  ;;  %v1573_v43 = vsel %vm7010_vm2, %v4553_v19, 0.0  ;;  %v7066_v7 = vld [vmem:[#allocation14_spill] sm:$0xff] }
 0x324   :  { %v1236_v47 = vpop.xlane.xlu0 %1235  ;;  %v1194_v28 = vpop.xlane.xlu1 %1193  ;;  %7063 = vst [vmem:[#allocation55_spill] sm:$0xff] %v4555_v6  ;;  %3540 = vpow2.f32 %v1421_v33  ;;  %v1303_v12 = vsub.f32 %v7066_v7, %v4400_v44 }
 0x325   :  { %v1320_v57 = vsub.f32 %v4267_v48, %v1236_v47  ;;  %v4557_v29 = vpop.eup %3528  ;;  %v1306_v32 = vsub.f32 %v4276_v16, %v1194_v28  ;;  %v4562_v48 = vpop.xlane.xlu2 %1238  ;;  %v1682_v8 = vmul.f32 %v4532_v21, %v1681_v40 }
 0x326   :  { %7064 = vst [vmem:[#allocation56_spill] sm:$0xff] %v4557_v29  ;;  %v4560_v11 = vpop.eup %3530 }
 0x327   :  { %v1437_v22 = vmul.f32 1.442695, %v1320_v57  ;;  %v4568_v60 = vpop.eup %3532  ;;  %v1694_v63 = vmul.f32 %v4560_v11, %v4436_v53  ;;  %v1409_v33 = vmul.f32 1.442695, %v1306_v32  ;;  %vm1699_vm7 = vweird.f32 %v4560_v11 }
 0x328   :  { %7065 = vst [vmem:[#allocation57_spill] sm:$0xff] %v4568_v60  ;;  %v4573_v16 = vpop.eup %3534  ;;  %v4633_v26 = vsel %vm7010_vm2, %v4568_v60, 0.0  ;;  %vm4700_vm10 = vmor %vm1698_vm9, %vm1699_vm7  ;;  %vm1712_vm7 = vweird.f32 %v4463_v42  ;;  %vm1810_vm9 = vweird.f32 %v4478_v61 }
 0x329   :  { %3542 = vpow2.f32 %v1437_v22  ;;  %1532 = vadd.xlane.f32.xlu1 %v1531_v59  ;;  %1574 = vadd.xlane.f32.xlu0 %v1573_v43  ;;  %7067 = vst [vmem:[#allocation14_spill] sm:$0xff] %v4573_v16  ;;  %v4576_v36 = vpop.eup %3536  ;;  %v1683_v22 = vadd.f32 %v4532_v21, %v1682_v8  ;;  %v7073_v59 = vld [vmem:[#allocation22_spill] sm:$0xff]  ;;  %v1507_v8 = vsel %vm7010_vm2, %v4555_v6, 0.0 }
 0x32a   :  { %3544 = vrcp.f32 %v4434_v46  ;;  %7068 = vst [vmem:[#allocation58_spill] sm:$0xff] %v4576_v36  ;;  %v4580_v5 = vpop.eup %3538  ;;  %v1313_v43 = vsub.f32 %v7073_v59, %v4530_v31  ;;  %v1688_v31 = vand.u32 2147483647, %v4383_v15 }
 0x32b   :  { %3546 = vpow2.f32 %v1429_v35  ;;  %7069 = vst [vmem:[#allocation59_spill] sm:$0xff] %v4580_v5  ;;  %v4585_v57 = vpop.eup %3540  ;;  %v1403_v35 = vmul.f32 1.442695, %v1303_v12  ;;  %v1687_v23 = vsel %vm4614_vm5, %v4532_v21, %v1683_v22 }
 0x32c   :  { %3548 = vpow2.f32 %v1413_v45  ;;  %v1257_v47 = vpop.xlane.xlu0 %1256  ;;  %v4582_v44 = vpop.xlane.xlu1 %1460  ;;  %7071 = vst [vmem:[#allocation25_spill] sm:$0xff] %v4585_v57  ;;  %vm1689_vm6 = vcmp.eq.f32.partialorder %v1688_v31, 8.507059e+37 }
 0x32d   :  { %3550 = vpow2.f32 %v1415_v56  ;;  %v1327_v28 = vsub.f32 %v7070_v14, %v1257_v47  ;;  %v1695_v56 = vsub.f32 1.0, %v1694_v63  ;;  %v1690_v47 = vand.u32 2147483648, %v4383_v15  ;;  %v4620_v59 = vpop.xlane.xlu2 %1463 }
 0x32e   :  { %3552 = vrcp.f32 %v4450_v41  ;;  %v1594_v14 = vsel %vm7010_vm2, %v4585_v57, 0.0 }
 0x32f   :  { %v4588_v40 = vpop.eup %3542  ;;  %3554 = vrcp.f32 %v4463_v42  ;;  %v1451_v45 = vmul.f32 1.442695, %v1327_v28  ;;  %v1691_v18 = vor.u32 1.1754944e-38, %v1690_v47 }
 0x330   :  { %7072 = vst [vmem:[#allocation60_spill] sm:$0xff] %v4588_v40  ;;  %v4593_v32 = vpop.eup %3544  ;;  %3556 = vpow2.f32 %v1409_v33  ;;  %v1618_v7 = vsel %vm7010_vm2, %v4588_v40, 0.0 }
 0x331   :  { %v4599_v12 = vpop.eup %3546  ;;  %3558 = vpow2.f32 %v1451_v45  ;;  %1619 = vadd.xlane.f32.xlu2 %v1618_v7  ;;  %1508 = vadd.xlane.f32.xlu1 %v1507_v8  ;;  %v1778_v45 = vmul.f32 %v4593_v32, %v4434_v46  ;;  %v4624_v7 = vsel %vm7010_vm2, %v4557_v29, 0.0  ;;  %v1423_v8 = vmul.f32 1.442695, %v1313_v43  ;;  %v7079_v29 = vld [vmem:[#allocation24_spill] sm:$0xff] }
 0x332   :  { %7074 = vst [vmem:[#allocation22_spill] sm:$0xff] %v4599_v12  ;;  %v4606_v63 = vpop.eup %3548  ;;  %3560 = vpow2.f32 %v1403_v35  ;;  %1595 = vadd.xlane.f32.xlu0 %v1594_v14  ;;  %v1696_v35 = vmul.f32 %v4560_v11, %v1695_v56  ;;  %v1321_v0 = vsub.f32 %v7079_v29, %v4562_v48  ;;  %v4646_v56 = vsel %vm7010_vm2, %v4576_v36, 0.0 }
 0x333   :  { %7075 = vst [vmem:[#allocation61_spill] sm:$0xff] %v4606_v63  ;;  %v4610_v33 = vpop.eup %3550  ;;  %v4650_v43 = vsel %vm7010_vm2, %v4573_v16, 0.0  ;;  %3562 = vrcp.f32 %v4520_v34  ;;  %v1606_v21 = vsel %vm7010_vm2, %v4599_v12, 0.0  ;;  %v4659_v29 = vsel %vm7010_vm2, %v4580_v5, 0.0 }
 0x334   :  { %7076 = vst [vmem:[#allocation62_spill] sm:$0xff] %v4610_v33  ;;  %v4626_v15 = vpop.eup %3552  ;;  %v4629_v14 = vpop.xlane.xlu0 %1484  ;;  %v1779_v22 = vsub.f32 1.0, %v1778_v45  ;;  %3564 = vrcp.f32 %v4478_v61  ;;  %v1692_v47 = vsel %vm1689_vm6, %v1691_v18, %v1687_v23  ;;  %v1697_v31 = vadd.f32 %v4560_v11, %v1696_v35 }
 0x335   :  { %v4638_v10 = vpop.eup %3554  ;;  %v4642_v4 = vpop.xlane.xlu1 %1499  ;;  %v1792_v16 = vmul.f32 %v4626_v15, %v4450_v41  ;;  %3566 = vpow2.f32 %v1423_v8  ;;  %v1439_v45 = vmul.f32 1.442695, %v1321_v0  ;;  %v1702_v23 = vand.u32 2147483647, %v4436_v53 }
 0x336   :  { %v4652_v60 = vpop.eup %3556  ;;  %v1708_v5 = vmul.f32 %v4638_v10, %v4463_v42  ;;  %3568 = vrcp.f32 %v4493_v1  ;;  %v1704_v35 = vand.u32 2147483648, %v4436_v53  ;;  %v4681_v8 = vsel %vm7010_vm2, %v4610_v33, 0.0 }
 0x337   :  { %7080 = vst [vmem:[#allocation24_spill] sm:$0xff] %v4652_v60  ;;  %v4661_v48 = vpop.eup %3558  ;;  %v1576_v18 = vsel %vm7010_vm2, %v4652_v60, 0.0  ;;  %v1788_v33 = vand.u32 2147483648, %v4434_v46  ;;  %v1793_v40 = vsub.f32 1.0, %v1792_v16  ;;  %3570 = vrcp.f32 %v4497_v17 }
 0x338   :  { %7081 = vst [vmem:[#allocation63_spill] sm:$0xff] %v4661_v48  ;;  %v4665_v28 = vpop.eup %3560  ;;  %v1639_v12 = vsel %vm7010_vm2, %v4661_v48, 0.0  ;;  %v4685_v48 = vsel %vm7010_vm2, %v4606_v63, 0.0  ;;  %3572 = vpow2.f32 %v1439_v45  ;;  %vm1783_vm11 = vweird.f32 %v4593_v32 }
 0x339   :  { %7082 = vst [vmem:[#allocation64_spill] sm:$0xff] %v4665_v28  ;;  %1640 = vadd.xlane.f32.xlu2 %v1639_v12  ;;  %1607 = vadd.xlane.f32.xlu1 %v1606_v21  ;;  %v1567_v0 = vsel %vm7010_vm2, %v4665_v28, 0.0  ;;  %v7083_v12 = vld [vmem:[#allocation13_spill] sm:$0xff]  ;;  %v4694_v21 = vpop.eup %3562  ;;  %v1701_v28 = vsel %vm4700_vm10, %v4560_v11, %v1697_v31  ;;  %vm1703_vm12 = vcmp.eq.f32.partialorder %v1702_v23, 8.507059e+37  ;;  %v1705_v16 = vor.u32 1.1754944e-38, %v1704_v35  ;;  %vm4749_vm13 = vmor %vm1782_vm8, %vm1783_vm11 }
 0x33a   :  { %1577 = vadd.xlane.f32.xlu0 %v1576_v18  ;;  %v4692_v25 = vmul.f32 %v7083_v12, %v1692_v47  ;;  %v1780_v18 = vmul.f32 %v4593_v32, %v1779_v22  ;;  %v4705_v57 = vpop.eup %3564  ;;  %v1709_v47 = vsub.f32 1.0, %v1708_v5  ;;  %v1266_v12 = vpop.xlane.xlu2 %1265  ;;  %v7086_v22 = vld [vmem:[#allocation31_spill] sm:$0xff]  ;;  %v1802_v5 = vand.u32 2147483648, %v4450_v41  ;;  %v7088_v31 = vld [vmem:[#allocation29_spill] sm:$0xff] }
 0x33b   :  { %v4713_v20 = vpop.eup %3566  ;;  %v1718_v45 = vand.u32 2147483648, %v4463_v42  ;;  %v1794_v63 = vmul.f32 %v4626_v15, %v1793_v40  ;;  %v1330_v23 = vsub.f32 %v7088_v31, %v1266_v12  ;;  %v1706_v35 = vsel %vm1703_vm12, %v1705_v16, %v1701_v28 }
 0x33c   :  { %v1260_v53 = vpop.xlane.xlu0 %1259  ;;  %7087 = vst [vmem:[#allocation13_spill] sm:$0xff] %v4713_v20  ;;  %v4717_v19 = vpop.eup %3568  ;;  %v4724_v11 = vadd.f32 %v4593_v32, %v1780_v18  ;;  %v1710_v60 = vmul.f32 %v4638_v10, %v1709_v47  ;;  %v4731_v6 = vmul.f32 %v4705_v57, %v4478_v61  ;;  %v1597_v3 = vsel %vm7010_vm2, %v4713_v20, 0.0  ;;  %v7092_v20 = vld [vmem:[#allocation15_spill] sm:$0xff] }
 0x33d   :  { %v4707_v36 = vpop.xlane.xlu1 %1481  ;;  %v1328_v52 = vsub.f32 %v7086_v22, %v1260_v53  ;;  %v1736_v53 = vmul.f32 %v4694_v21, %v4520_v34  ;;  %v4735_v37 = vpop.eup %3570  ;;  %v4738_v18 = vor.u32 1.1754944e-38, %v1788_v33  ;;  %v1722_v28 = vmul.f32 %v4717_v19, %v4493_v1 }
 0x33e   :  { %3574 = vrcp.f32 %v4707_v36  ;;  %v4743_v47 = vpop.eup %3572  ;;  %v4753_v16 = vor.u32 1.1754944e-38, %v1802_v5  ;;  %v4764_v38 = vmul.f32 %v7092_v20, %v1706_v35  ;;  %v4771_v33 = vadd.f32 %v4638_v10, %v1710_v60 }
 0x33f   :  { %v1453_v22 = vmul.f32 1.442695, %v1328_v52  ;;  %7089 = vst [vmem:[#allocation31_spill] sm:$0xff] %v4743_v47  ;;  %v1737_v31 = vsub.f32 1.0, %v1736_v53  ;;  %v1820_v20 = vmul.f32 %v4735_v37, %v4497_v17  ;;  %v1723_v35 = vsub.f32 1.0, %v1722_v28 }
 0x340   :  { %v1621_v50 = vsel %vm7010_vm2, %v4743_v47, 0.0  ;;  %vm1797_vm14 = vweird.f32 %v4626_v15  ;;  %vm1713_vm15 = vweird.f32 %v4638_v10  ;;  %vm1811_vm5 = vweird.f32 %v4705_v57 }
 0x341   :  { %3576 = vpow2.f32 %v1453_v22  ;;  %1568 = vadd.xlane.f32.xlu1 %v1567_v0  ;;  %v4756_v22 = vor.u32 1.1754944e-38, %v1718_v45  ;;  %v1457_v0 = vmul.f32 1.442695, %v1330_v23  ;;  %v1807_v45 = vsub.f32 1.0, %v4731_v6 }
 0x342   :  { %1598 = vadd.xlane.f32.xlu0 %v1597_v3  ;;  %v4761_v3 = vadd.f32 %v4626_v15, %v1794_v63  ;;  %3578 = vrcp.f32 %v4582_v44  ;;  %v1738_v60 = vmul.f32 %v4694_v21, %v1737_v31  ;;  %v1758_v31 = vand.u32 2147483647, %v4707_v36 }
 0x343   :  { %3580 = vrcp.f32 %v4620_v59  ;;  %vm1741_vm6 = vweird.f32 %v4694_v21  ;;  %vm1754_vm8 = vweird.f32 %v4707_v36  ;;  %vm1740_vm12 = vweird.f32 %v4520_v34 }
 0x344   :  { %v4758_v40 = vpop.eup %3574  ;;  %v1242_v52 = vpop.xlane.xlu0 %1241  ;;  %3582 = vpow2.f32 %v1457_v0  ;;  %v1821_v0 = vsub.f32 1.0, %v1820_v20  ;;  %v1808_v20 = vmul.f32 %v4705_v57, %v1807_v45  ;;  %v1744_v45 = vand.u32 2147483647, %v4520_v34 }
 0x345   :  { %v1750_v53 = vmul.f32 %v4758_v40, %v4707_v36  ;;  %v1218_v63 = vpop.xlane.xlu1 %1217  ;;  %v1322_v23 = vsub.f32 %v7093_v62, %v1242_v52  ;;  %v1760_v62 = vand.u32 2147483648, %v4707_v36  ;;  %vm1755_vm3 = vweird.f32 %v4758_v40 }
 0x346   :  { %v1314_v58 = vsub.f32 %v7094_v39, %v1218_v63  ;;  %v4800_v63 = vpop.xlane.xlu2 %1520  ;;  %vm1756_vm10 = vmor %vm1754_vm8, %vm1755_vm3  ;;  %vm1759_vm0 = vcmp.eq.f32.partialorder %v1758_v31, 8.507059e+37  ;;  %vm1727_vm8 = vweird.f32 %v4717_v19 }
 0x347   :  { %v4781_v5 = vpop.eup %3576  ;;  %v1751_v6 = vsub.f32 1.0, %v1750_v53  ;;  %v1441_v28 = vmul.f32 1.442695, %v1322_v23  ;;  %v1739_v23 = vadd.f32 %v4694_v21, %v1738_v60  ;;  %vm4830_vm3 = vmor %vm1740_vm12, %vm1741_vm6 }
 0x348   :  { %7095 = vst [vmem:[#allocation29_spill] sm:$0xff] %v4781_v5  ;;  %v1425_v52 = vmul.f32 1.442695, %v1314_v58  ;;  %v1642_v53 = vsel %vm7010_vm2, %v4781_v5, 0.0  ;;  %v1724_v58 = vmul.f32 %v4717_v19, %v1723_v35  ;;  %v4806_v5 = vpop.eup %3578  ;;  %v1730_v35 = vand.u32 2147483647, %v4493_v1  ;;  %vm4872_vm12 = vmor %vm1726_vm1, %vm1727_vm8 }
 0x349   :  { %v1752_v39 = vmul.f32 %v4758_v40, %v1751_v6  ;;  %1643 = vadd.xlane.f32.xlu2 %v1642_v53  ;;  %1622 = vadd.xlane.f32.xlu1 %v1621_v50  ;;  %v1761_v50 = vor.u32 1.1754944e-38, %v1760_v62  ;;  %v4814_v60 = vpop.eup %3580  ;;  %v1822_v62 = vmul.f32 %v4735_v37, %v1821_v0  ;;  %v7103_v0 = vand.u32 2147483647, %v4450_v41 }
 0x34a   :  { %3584 = vpow2.f32 %v1425_v52  ;;  %v1746_v52 = vand.u32 2147483648, %v4520_v34  ;;  %v4825_v47 = vpop.eup %3582  ;;  %v1725_v34 = vadd.f32 %v4717_v19, %v1724_v58  ;;  %v1732_v58 = vand.u32 2147483648, %v4493_v1 }
 0x34b   :  { %v1753_v6 = vadd.f32 %v4758_v40, %v1752_v39  ;;  %3586 = vpow2.f32 %v1441_v28  ;;  %v7096_v39 = vand.u32 2147483647, %v4434_v46  ;;  %7099 = vst [vmem:[#allocation15_spill] sm:$0xff] %v4825_v47  ;;  %vm4846_vm6 = vcmp.eq.f32.partialorder %v7103_v0, 8.507059e+37 }
 0x34c   :  { %3588 = vrcp.f32 %v4629_v14  ;;  %v7107_v46 = vand.u32 2147483647, %v4463_v42  ;;  %v1648_v9 = vsel %vm7010_vm2, %v4825_v47, 0.0  ;;  %vm1825_vm1 = vweird.f32 %v4735_v37 }
 0x34d   :  { %vm4818_vm11 = vcmp.eq.f32.partialorder %v7096_v39, 8.507059e+37  ;;  %v1757_v28 = vsel %vm1756_vm10, %v4758_v40, %v1753_v6  ;;  %v1263_v53 = vpop.xlane.xlu1 %1262  ;;  %3590 = vrcp.f32 %v4642_v4  ;;  %v1743_v40 = vsel %vm4830_vm3, %v4694_v21, %v1739_v23  ;;  %v7110_v23 = vld [vmem:[#allocation32_spill] sm:$0xff]  ;;  %vm4884_vm3 = vmor %vm1796_vm4, %vm1797_vm14 }
 0x34e   :  { %v1762_v39 = vsel %vm1759_vm0, %v1761_v50, %v1757_v28  ;;  %v1329_v13 = vsub.f32 %v4366_v2, %v1263_v53  ;;  %v4851_v2 = vadd.f32 %v4705_v57, %v1808_v20  ;;  %v1747_v50 = vor.u32 1.1754944e-38, %v1746_v52  ;;  %vm4903_vm14 = vmor %vm1712_vm7, %vm1713_vm15  ;;  %v7126_v21 = vld [vmem:[#allocation16_spill] sm:$0xff] }
 0x34f   :  { %vm4858_vm0 = vcmp.eq.f32.partialorder %v7107_v46, 8.507059e+37  ;;  %vm1745_vm10 = vcmp.eq.f32.partialorder %v1744_v45, 8.507059e+37  ;;  %v2554_v0 = vmul.f32 %v7110_v23, %v1762_v39  ;;  %v1823_v52 = vadd.f32 %v4735_v37, %v1822_v62  ;;  %v4876_v45 = vpop.xlane.xlu0 %1526  ;;  %vm4918_vm4 = vmor %vm1810_vm9, %vm1811_vm5 }
 0x350   :  { %v4842_v31 = vpop.eup %3584  ;;  %v1455_v28 = vmul.f32 1.442695, %v1329_v13  ;;  %v1748_v46 = vsel %vm1745_vm10, %v1747_v50, %v1743_v40  ;;  %v1652_v1 = vmul.f32 %v4806_v5, %v4582_v44  ;;  %v1729_v40 = vsel %vm4872_vm12, %v4717_v19, %v1725_v34  ;;  %v7119_v13 = vld [vmem:[#allocation23_spill] sm:$0xff] }
 0x351   :  { %7102 = vst [vmem:[#allocation34_spill] sm:$0xff] %v4842_v31  ;;  %v4854_v53 = vpop.eup %3586  ;;  %v1600_v20 = vsel %vm7010_vm2, %v4842_v31, 0.0  ;;  %1649 = vadd.xlane.f32.xlu1 %v1648_v9  ;;  %v1666_v9 = vmul.f32 %v4814_v60, %v4620_v59  ;;  %3342 = vmatpush.xpose.msk.msra.mxu2 %vm7010_vm2, %v2554_v0  ;;  %v1816_v23 = vand.u32 2147483648, %v4478_v61  ;;  %v1830_v0 = vand.u32 2147483648, %v4497_v17 }
 0x352   :  { %7106 = vst [vmem:[#allocation35_spill] sm:$0xff] %v4854_v53  ;;  %3592 = vpow2.f32 %v1455_v28  ;;  %1601 = vadd.xlane.f32.xlu0 %v1600_v20  ;;  %v1624_v39 = vsel %vm7010_vm2, %v4854_v53, 0.0  ;;  %v4897_v41 = vpop.eup %3588  ;;  %v1814_v28 = vand.u32 2147483647, %v4478_v61  ;;  %v1733_v20 = vor.u32 1.1754944e-38, %v1732_v58 }
 0x353   :  { %1625 = vadd.xlane.f32.xlu2 %v1624_v39  ;;  %v4910_v39 = vpop.xlane.xlu2 %1547  ;;  %v4912_v19 = vpop.eup %3590  ;;  %vm1824_vm15 = vweird.f32 %v4497_v17  ;;  %v1828_v34 = vand.u32 2147483647, %v4497_v17  ;;  %vm1731_vm7 = vcmp.eq.f32.partialorder %v1730_v35, 8.507059e+37  ;;  %v2553_v47 = vmul.f32 %v7119_v13, %v1748_v46 }
 0x354   :  { %vm4929_vm8 = vmor %vm1824_vm15, %vm1825_vm1  ;;  %v1734_v61 = vsel %vm1731_vm7, %v1733_v20, %v1729_v40  ;;  %v1715_v31 = vsel %vm4903_vm14, %v4638_v10, %v4771_v33  ;;  %v1799_v17 = vsel %vm4884_vm3, %v4626_v15, %v4761_v3  ;;  %v7122_v35 = vsel %vm4749_vm13, %v4593_v32, %v4724_v11 }
 0x355   :  { %v4925_v58 = vpop.xlane.xlu1 %1502  ;;  %v1790_v46 = vsel %vm4818_vm11, %v4738_v18, %v7122_v35  ;;  %v1653_v40 = vsub.f32 1.0, %v1652_v1  ;;  %v1667_v20 = vsub.f32 1.0, %v1666_v9  ;;  %3343 = vmatpush.xpose.msk.msra.mxu2 %vm7010_vm2, %v2553_v47  ;;  %v1827_v10 = vsel %vm4929_vm8, %v4735_v37, %v1823_v52  ;;  %v7124_v47 = vld [vmem:[#allocation20_spill] sm:$0xff] }
 0x356   :  { %v1813_v15 = vsel %vm4918_vm4, %v4705_v57, %v4851_v2  ;;  %v1817_v32 = vor.u32 1.1754944e-38, %v1816_v23  ;;  %v1831_v11 = vor.u32 1.1754944e-38, %v1830_v0  ;;  %v1834_v18 = vmul.f32 %v4912_v19, %v4642_v4  ;;  %v7127_v23 = vld [vmem:[#allocation18_spill] sm:$0xff] }
 0x357   :  { %v1764_v33 = vmul.f32 %v4897_v41, %v4629_v14  ;;  %vm1815_vm13 = vcmp.eq.f32.partialorder %v1814_v28, 8.507059e+37  ;;  %vm1829_vm5 = vcmp.eq.f32.partialorder %v1828_v34, 8.507059e+37  ;;  %v2552_v3 = vmul.f32 %v7124_v47, %v1734_v61  ;;  %v4979_v62 = vpop.xlane.xlu0 %1523  ;;  %v7128_v34 = vld [vmem:[#allocation21_spill] sm:$0xff]  ;;  %v7129_v61 = vld [vmem:[#allocation19_spill] sm:$0xff] }
 0x358   :  { %v4957_v12 = vpop.eup %3592  ;;  %v1804_v37 = vsel %vm4846_vm6, %v4753_v16, %v1799_v17  ;;  %3594 = vrcp.f32 %v4800_v63  ;;  %v1720_v57 = vsel %vm4858_vm0, %v4756_v22, %v1715_v31  ;;  %v1832_v36 = vsel %vm1829_vm5, %v1831_v11, %v1827_v10  ;;  %v7125_v22 = vld [vmem:[#allocation17_spill] sm:$0xff] }
 0x359   :  { %7123 = vst [vmem:[#allocation32_spill] sm:$0xff] %v4957_v12  ;;  %1586 = vadd.xlane.f32.xlu1 %v4681_v8  ;;  %v1818_v2 = vsel %vm1815_vm13, %v1817_v32, %v1813_v15  ;;  %v1654_v53 = vmul.f32 %v4806_v5, %v1653_v40  ;;  %v1668_v52 = vmul.f32 %v4814_v60, %v1667_v20  ;;  %3596 = vrcp.f32 %v4925_v58 }
 0x35a   :  { %3344 = vmatpush.xpose.msk.msra.mxu2 %vm7010_vm2, %v2552_v3  ;;  %v1645_v16 = vsel %vm7010_vm2, %v4957_v12, 0.0  ;;  %v1835_v8 = vsub.f32 1.0, %v1834_v18  ;;  %v1765_v6 = vsub.f32 1.0, %v1764_v33  ;;  %v4982_v31 = vmul.f32 %v7125_v22, %v1804_v37 }
 0x35b   :  { %1562 = vadd.xlane.f32.xlu2 %v4646_v56  ;;  %1646 = vadd.xlane.f32.xlu0 %v1645_v16  ;;  %v4985_v1 = vmul.f32 %v7126_v21, %v1790_v46  ;;  %v1660_v9 = vand.u32 2147483647, %v4582_v44  ;;  %v1662_v50 = vand.u32 2147483648, %v4582_v44  ;;  %v1676_v28 = vand.u32 2147483648, %v4620_v59  ;;  %v4994_v42 = vpop.xlane.xlu2 %1550 }
 0x35c   :  { %v2551_v0 = vmul.f32 %v7127_v23, %v1720_v57  ;;  %vm1657_vm9 = vweird.f32 %v4806_v5  ;;  %v4998_v13 = vmul.f32 %v7128_v34, %v1832_v36  ;;  %v5001_v17 = vmul.f32 %v7129_v61, %v1818_v2 }
 0x35d   :  { %v4991_v56 = vpop.xlane.xlu1 %1505  ;;  %v1655_v35 = vadd.f32 %v4806_v5, %v1654_v53  ;;  %vm1656_vm11 = vweird.f32 %v4582_v44  ;;  %v1669_v46 = vadd.f32 %v4814_v60, %v1668_v52  ;;  %vm1671_vm6 = vweird.f32 %v4814_v60 }
 0x35e   :  { %3598 = vrcp.f32 %v4991_v56  ;;  %3345 = vmatpush.xpose.msk.msra.mxu2 %vm7010_vm2, %v2551_v0  ;;  %v5008_v40 = vpop.eup %3594  ;;  %vm1670_vm0 = vweird.f32 %v4620_v59  ;;  %v1674_v20 = vand.u32 2147483647, %v4620_v59  ;;  %v1836_v10 = vmul.f32 %v4912_v19, %v1835_v8  ;;  %vm5018_vm10 = vmor %vm1656_vm11, %vm1657_vm9 }
 0x35f   :  { %v1766_v15 = vmul.f32 %v4897_v41, %v1765_v6  ;;  %v5014_v32 = vpop.eup %3596  ;;  %vm5022_vm12 = vcmp.eq.f32.partialorder %v1660_v9, 8.507059e+37  ;;  %v1663_v18 = vor.u32 1.1754944e-38, %v1662_v50  ;;  %v1677_v33 = vor.u32 1.1754944e-38, %v1676_v28  ;;  %vm5027_vm3 = vmor %vm1670_vm0, %vm1671_vm6 }
 0x360   :  { %v1842_v59 = vand.u32 2147483647, %v4642_v4  ;;  %vm1839_vm1 = vweird.f32 %v4912_v19  ;;  %v1844_v3 = vand.u32 2147483648, %v4642_v4  ;;  %vm1769_vm14 = vweird.f32 %v4897_v41 }
 0x361   :  { %v1772_v37 = vand.u32 2147483647, %v4629_v14  ;;  %1583 = vadd.xlane.f32.xlu1 %v4685_v48  ;;  %v1932_v57 = vmul.f32 %v5008_v40, %v4800_v63  ;;  %3600 = vrcp.f32 %v4910_v39  ;;  %v1673_v36 = vsel %vm5027_vm3, %v4814_v60, %v1669_v46 }
 0x362   :  { %3346 = vmatpush.xpose.msk.msra.mxu2 %vm7010_vm2, %v4764_v38  ;;  %v1659_v2 = vsel %vm5018_vm10, %v4806_v5, %v1655_v35  ;;  %v1837_v48 = vadd.f32 %v4912_v19, %v1836_v10  ;;  %v1767_v52 = vadd.f32 %v4897_v41, %v1766_v15  ;;  %3602 = vrcp.f32 %v4876_v45  ;;  %v7145_v10 = vld [vmem:[#allocation27_spill] sm:$0xff] }
 0x363   :  { %1580 = vadd.xlane.f32.xlu2 %v4633_v26  ;;  %v1848_v38 = vmul.f32 %v5014_v32, %v4925_v58  ;;  %1604 = vadd.xlane.f32.xlu0 %v4650_v43  ;;  %vm1675_vm4 = vcmp.eq.f32.partialorder %v1674_v20, 8.507059e+37  ;;  %vm1768_vm15 = vweird.f32 %v4629_v14  ;;  %v1774_v26 = vand.u32 2147483648, %v4629_v14  ;;  %v5074_v14 = vpop.xlane.xlu0 %1541  ;;  %v5090_v0 = vpop.xlane.xlu2 %1628 }
 0x364   :  { %v5048_v53 = vpop.eup %3598  ;;  %vm1838_vm7 = vweird.f32 %v4642_v4  ;;  %vm5063_vm8 = vcmp.eq.f32.partialorder %v1842_v59, 8.507059e+37  ;;  %vm5069_vm13 = vmor %vm1768_vm15, %vm1769_vm14  ;;  %v1942_v8 = vand.u32 2147483648, %v4800_v63  ;;  %v1678_v6 = vsel %vm1675_vm4, %v1677_v33, %v1673_v36  ;;  %7144 = vst [vmem:[#allocation23_spill] sm:$0xff] %v5090_v0 }
 0x365   :  { %v1862_v5 = vmul.f32 %v5048_v53, %v4991_v56  ;;  %v5060_v60 = vpop.xlane.xlu1 %1517  ;;  %vm5078_vm5 = vmor %vm1838_vm7, %vm1839_vm1  ;;  %v1845_v4 = vor.u32 1.1754944e-38, %v1844_v3  ;;  %v1933_v21 = vsub.f32 1.0, %v1932_v57  ;;  %v1664_v50 = vsel %vm5022_vm12, %v1663_v18, %v1659_v2 }
 0x366   :  { %3347 = vmatpush.xpose.msk.msra.mxu2 %vm7010_vm2, %v4692_v25  ;;  %vm5086_vm9 = vcmp.eq.f32.partialorder %v1772_v37, 8.507059e+37  ;;  %v1849_v23 = vsub.f32 1.0, %v1848_v38  ;;  %v1841_v34 = vsel %vm5078_vm5, %v4912_v19, %v1837_v48  ;;  %v1771_v61 = vsel %vm5069_vm13, %v4897_v41, %v1767_v52  ;;  %v7146_v41 = vld [vmem:[#allocation26_spill] sm:$0xff] }
 0x367   :  { %v1863_v9 = vsub.f32 1.0, %v1862_v5  ;;  %v5098_v35 = vpop.eup %3600  ;;  %v1775_v25 = vor.u32 1.1754944e-38, %v1774_v26  ;;  %v1940_v46 = vand.u32 2147483647, %v4800_v63  ;;  %v2548_v15 = vmul.f32 %v7145_v10, %v1678_v6  ;;  %v7147_v26 = vld [vmem:[#allocation30_spill] sm:$0xff] }
 0x368   :  { %v5103_v44 = vpop.eup %3602  ;;  %v5105_v11 = vor.u32 1.1754944e-38, %v1942_v8  ;;  %v2068_v18 = vand.u32 2147483648, %v4910_v39  ;;  %3604 = vrcp.f32 %v4994_v42  ;;  %v2547_v19 = vmul.f32 %v7146_v41, %v1664_v50  ;;  %v7150_v8 = vld [vmem:[#allocation28_spill] sm:$0xff] }
 0x369   :  { %v1864_v20 = vmul.f32 %v5048_v53, %v1863_v9  ;;  %1556 = vadd.xlane.f32.xlu1 %v4659_v29  ;;  %v1934_v33 = vmul.f32 %v5008_v40, %v1933_v21  ;;  %vm1936_vm11 = vweird.f32 %v4800_v63  ;;  %3606 = vrcp.f32 %v4979_v62 }
 0x36a   :  { %3348 = vmatpush.xpose.msk.msra.mxu2 %vm7010_vm2, %v2548_v15  ;;  %v1846_v59 = vsel %vm5063_vm8, %v1845_v4, %v1841_v34  ;;  %v1776_v47 = vsel %vm5086_vm9, %v1775_v25, %v1771_v61  ;;  %v2058_v3 = vmul.f32 %v5098_v35, %v4910_v39  ;;  %v1850_v29 = vmul.f32 %v5014_v32, %v1849_v23 }
 0x36b   :  { %v1865_v37 = vadd.f32 %v5048_v53, %v1864_v20  ;;  %vm1867_vm6 = vweird.f32 %v5048_v53  ;;  %1559 = vadd.xlane.f32.xlu0 %v4624_v7  ;;  %vm1937_vm0 = vweird.f32 %v5008_v40  ;;  %v1960_v36 = vmul.f32 %v5103_v44, %v4876_v45  ;;  %v5163_v50 = vpop.xlane.xlu2 %1610  ;;  %v5165_v28 = vpop.xlane.xlu0 %1553 }
 0x36c   :  { %v1872_v2 = vand.u32 2147483648, %v4991_v56  ;;  %v5132_v52 = vor.u32 1.1754944e-38, %v2068_v18  ;;  %vm1866_vm10 = vweird.f32 %v4991_v56  ;;  %v1870_v38 = vand.u32 2147483647, %v4991_v56  ;;  %vm5191_vm8 = vmor %vm1936_vm11, %vm1937_vm0 }
 0x36d   :  { %v5130_v48 = vpop.xlane.xlu1 %1529  ;;  %v5137_v5 = vmul.f32 %v7147_v26, %v1846_v59  ;;  %v5140_v7 = vadd.f32 %v5008_v40, %v1934_v33  ;;  %v1968_v16 = vand.u32 2147483647, %v4876_v45  ;;  %vm5143_vm12 = vmor %vm1866_vm10, %vm1867_vm6  ;;  %v5150_v6 = vmul.f32 %v7150_v8, %v1776_v47 }
 0x36e   :  { %3608 = vrcp.f32 %v5130_v48  ;;  %3349 = vmatpush.xpose.msk.msra.mxu2 %vm7010_vm2, %v2547_v19  ;;  %v5152_v56 = vpop.eup %3604  ;;  %vm5154_vm3 = vcmp.eq.f32.partialorder %v1940_v46, 8.507059e+37  ;;  %v2059_v4 = vsub.f32 1.0, %v2058_v3  ;;  %v1851_v21 = vadd.f32 %v5014_v32, %v1850_v29 }
 0x36f   :  { %vm1853_vm1 = vweird.f32 %v5014_v32  ;;  %v1869_v9 = vsel %vm5143_vm12, %v5048_v53, %v1865_v37  ;;  %v5167_v23 = vpop.eup %3606  ;;  %v2082_v34 = vand.u32 2147483648, %v4994_v42  ;;  %v1961_v61 = vsub.f32 1.0, %v1960_v36  ;;  %v7153_v53 = vld [vmem:[#allocation7_spill] sm:$0xff] }
 0x370   :  { %v1858_v25 = vand.u32 2147483648, %v4925_v58  ;;  %v1873_v46 = vor.u32 1.1754944e-38, %v1872_v2  ;;  %vm1852_vm14 = vweird.f32 %v4925_v58  ;;  %v1856_v20 = vand.u32 2147483647, %v4925_v58 }
 0x371   :  { %3610 = vrcp.f32 %v5090_v0  ;;  %vm1871_vm4 = vcmp.eq.f32.partialorder %v1870_v38, 8.507059e+37  ;;  %3350 = vmatmul.msk.f32.vlgmr.msra.gmra.mxu2 %vm7010_vm2, %v7153_v53  ;;  %v2072_v10 = vmul.f32 %v5152_v56, %v4994_v42  ;;  %vm1964_vm15 = vweird.f32 %v4876_v45  ;;  %vm5182_vm7 = vmor %vm1852_vm14, %vm1853_vm1 }
 0x372   :  { %v1970_v15 = vand.u32 2147483648, %v4876_v45  ;;  %v1874_v58 = vsel %vm1871_vm4, %v1873_v46, %v1869_v9  ;;  %3612 = vrcp.f32 %v5060_v60  ;;  %v2060_v19 = vmul.f32 %v5098_v35, %v2059_v4 }
 0x373   :  { %v1946_v33 = vmul.f32 %v5167_v23, %v4979_v62  ;;  %3614 = vrcp.f32 %v5165_v28  ;;  %v1855_v59 = vsel %vm5182_vm7, %v5014_v32, %v1851_v21  ;;  %v2080_v3 = vand.u32 2147483647, %v4994_v42  ;;  %v5247_v18 = vpop.xlane.xlu0 %1565 }
 0x374   :  { %v5202_v47 = vpop.eup %3608  ;;  %v1962_v63 = vmul.f32 %v5103_v44, %v1961_v61  ;;  %v1859_v29 = vor.u32 1.1754944e-38, %v1858_v25  ;;  %v1939_v36 = vsel %vm5191_vm8, %v5008_v40, %v5140_v7  ;;  %vm2063_vm13 = vweird.f32 %v5098_v35 }
 0x375   :  { %v5206_v37 = vpop.xlane.xlu1 %1538  ;;  %vm1857_vm5 = vcmp.eq.f32.partialorder %v1856_v20, 8.507059e+37  ;;  %3616 = vrcp.f32 %v5074_v14  ;;  %v1974_v32 = vmul.f32 %v5202_v47, %v5130_v48  ;;  %v2562_v2 = vmul.f32 %v4404_v30, %v1874_v58 }
 0x376   :  { %v2073_v38 = vsub.f32 1.0, %v2072_v10  ;;  %v5217_v26 = vor.u32 1.1754944e-38, %v2082_v34  ;;  %vm5219_vm9 = vcmp.eq.f32.partialorder %v1968_v16, 8.507059e+37  ;;  %v1971_v8 = vor.u32 1.1754944e-38, %v1970_v15  ;;  %v5245_v15 = vpop.xlane.xlu2 %1589 }
 0x377   :  { %v1860_v4 = vsel %vm1857_vm5, %v1859_v29, %v1855_v59  ;;  %v5223_v40 = vpop.eup %3610  ;;  %v5226_v7 = vadd.f32 %v5098_v35, %v2060_v19  ;;  %vm2062_vm11 = vweird.f32 %v4910_v39  ;;  %vm1965_vm6 = vweird.f32 %v5103_v44  ;;  %3351 = vmatpush.xpose.msk.msra.mxu3 %vm7010_vm2, %v2562_v2  ;;  %v7161_v19 = vld [vmem:[#allocation9_spill] sm:$0xff] }
 0x378   :  { %7160 = vst [vmem:[#allocation20_spill] sm:$0xff] %v5223_v40  ;;  %v1947_v21 = vsub.f32 1.0, %v1946_v33  ;;  %v1975_v30 = vsub.f32 1.0, %v1974_v32  ;;  %v5231_v9 = vpop.eup %3612  ;;  %v1963_v16 = vadd.f32 %v5103_v44, %v1962_v63  ;;  %v1954_v34 = vand.u32 2147483647, %v4979_v62  ;;  %vm5304_vm8 = vmor %vm2062_vm11, %vm2063_vm13 }
 0x379   :  { %v1984_v61 = vand.u32 2147483648, %v5130_v48  ;;  %v1944_v25 = vsel %vm5154_vm3, %v5105_v11, %v1939_v36  ;;  %v5239_v46 = vpop.eup %3614  ;;  %vm1950_vm0 = vweird.f32 %v4979_v62  ;;  %vm1979_vm10 = vweird.f32 %v5202_v47  ;;  %vm5264_vm3 = vmor %vm1964_vm15, %vm1965_vm6 }
 0x37a   :  { %v1976_v20 = vmul.f32 %v5202_v47, %v1975_v30  ;;  %v1982_v10 = vand.u32 2147483647, %v5130_v48  ;;  %v2561_v58 = vmul.f32 %v4385_v27, %v1860_v4  ;;  %v2074_v41 = vmul.f32 %v5152_v56, %v2073_v38 }
 0x37b   :  { %vm2076_vm12 = vweird.f32 %v4994_v42  ;;  %v2436_v11 = vmul.f32 %v5223_v40, %v5090_v0  ;;  %v1956_v22 = vand.u32 2147483648, %v4979_v62  ;;  %3618 = vrcp.f32 %v5163_v50  ;;  %2910 = vrot.lane.b32.xlu2 %v7161_v19, %s3736_s21  ;;  %v5258_v33 = vpop.eup %3616 }
 0x37c   :  { %v1948_v59 = vmul.f32 %v5167_v23, %v1947_v21  ;;  %v1918_v63 = vmul.f32 %v5231_v9, %v5060_v60  ;;  %v1977_v29 = vadd.f32 %v5202_v47, %v1976_v20  ;;  %vm1978_vm1 = vweird.f32 %v5130_v48  ;;  %3352 = vmatpush.xpose.msk.msra.mxu3 %vm7010_vm2, %v2561_v58 }
 0x37d   :  { %v2086_v36 = vmul.f32 %v5239_v46, %v5165_v28  ;;  %vm1980_vm14 = vmor %vm1978_vm1, %vm1979_vm10  ;;  %v1985_v45 = vor.u32 1.1754944e-38, %v1984_v61  ;;  %3620 = vrcp.f32 %v5247_v18  ;;  %v5279_v32 = vpop.xlane.xlu1 %1544  ;;  %v1967_v2 = vsel %vm5264_vm3, %v5103_v44, %v1963_v16  ;;  %v7164_v44 = vld [vmem:[#allocation10_spill] sm:$0xff] }
 0x37e   :  { %vm2077_vm4 = vweird.f32 %v5152_v56  ;;  %vm1951_vm15 = vweird.f32 %v5167_v23  ;;  %v1981_v48 = vsel %vm1980_vm14, %v5202_v47, %v1977_v29  ;;  %vm1983_vm7 = vcmp.eq.f32.partialorder %v1982_v10, 8.507059e+37  ;;  %v5316_v27 = vpop.xlane.xlu2 %1613 }
 0x37f   :  { %v2437_v38 = vsub.f32 1.0, %v2436_v11  ;;  %v2030_v4 = vmul.f32 %v5258_v33, %v5074_v14  ;;  %v2040_v21 = vand.u32 2147483648, %v5074_v14  ;;  %v1986_v30 = vsel %vm1983_vm7, %v1985_v45, %v1981_v48  ;;  %2963 = vrot.lane.b32.xlu0 %v7164_v44, %s3736_s21  ;;  %vm5335_vm13 = vmor %vm1950_vm0, %vm1951_vm15 }
 0x380   :  { %v1949_v61 = vadd.f32 %v5167_v23, %v1948_v59  ;;  %v1919_v20 = vsub.f32 1.0, %v1918_v63  ;;  %3353 = vmatpush.xpose.msk.msra.mxu3 %vm7010_vm2, %v5137_v5  ;;  %3622 = vrcp.f32 %v5279_v32  ;;  %v1972_v47 = vsel %vm5219_vm9, %v1971_v8, %v1967_v2  ;;  %v7169_v63 = vld [vmem:[#allocation33_spill] sm:$0xff]  ;;  %vm5347_vm9 = vmor %vm2076_vm12, %vm2077_vm4 }
 0x381   :  { %v5298_v16 = vpop.eup %3618  ;;  %v5309_v5 = vadd.f32 %v5152_v56, %v2074_v41  ;;  %vm5311_vm5 = vcmp.eq.f32.partialorder %v1954_v34, 8.507059e+37  ;;  %v1957_v11 = vor.u32 1.1754944e-38, %v1956_v22  ;;  %v2087_v43 = vsub.f32 1.0, %v2086_v36 }
 0x382   :  { %v2570_v59 = vmul.f32 %v4438_v55, %v1986_v30  ;;  %v5320_v29 = vmul.f32 %v7169_v63, %v1944_v25  ;;  %v5329_v45 = vmul.f32 %v5223_v40, %v2437_v38  ;;  %v2031_v55 = vsub.f32 1.0, %v2030_v4  ;;  %v7173_v25 = vld [vmem:[#allocation8_spill] sm:$0xff] }
 0x383   :  { %v5326_v34 = vpop.eup %3620  ;;  %3624 = vrcp.f32 %v5245_v15  ;;  %2857 = vrot.lane.b32.xlu1 %v7173_v25, %s3736_s21  ;;  %v2569_v36 = vmul.f32 %v4363_v49, %v1972_v47  ;;  %v5351_v62 = vor.u32 1.1754944e-38, %v2040_v21  ;;  %v1920_v48 = vmul.f32 %v5231_v9, %v1919_v20  ;;  %v5365_v21 = vpop.xlane.xlu0 %1631 }
 0x384   :  { %7170 = vst [vmem:[#allocation17_spill] sm:$0xff] %v5329_v45  ;;  %v2352_v38 = vmul.f32 %v5298_v16, %v5163_v50  ;;  %3354 = vmatpush.xpose.msk.msra.mxu3 %vm7010_vm2, %v4998_v13  ;;  %3360 = vmatpush.xpose.msk.msrb.mxu2 %vm7010_vm2, %v2570_v59  ;;  %v1953_v49 = vsel %vm5335_vm13, %v5167_v23, %v1949_v61  ;;  %v1926_v4 = vand.u32 2147483647, %v5060_v60  ;;  %3626 = vrcp.f32 %v5206_v37 }
 0x385   :  { %v2088_v30 = vmul.f32 %v5239_v46, %v2087_v43  ;;  %7176 = vst [vmem:[#allocation16_spill] sm:$0xff] %v5365_v21  ;;  %v5367_v20 = vpop.xlane.xlu1 %1514  ;;  %v1928_v59 = vand.u32 2147483648, %v5060_v60  ;;  %vm2090_vm11 = vweird.f32 %v5165_v28  ;;  %v2142_v23 = vmul.f32 %v5326_v34, %v5247_v18 }
 0x386   :  { %v5373_v47 = vpop.eup %3622  ;;  %3628 = vrcp.f32 %v5367_v20  ;;  %v2032_v61 = vmul.f32 %v5258_v33, %v2031_v55  ;;  %v2362_v43 = vand.u32 2147483648, %v5163_v50  ;;  %v2094_v63 = vand.u32 2147483647, %v5165_v28 }
 0x387   :  { %v1958_v22 = vsel %vm5311_vm5, %v1957_v11, %v1953_v49  ;;  %v1921_v41 = vadd.f32 %v5231_v9, %v1920_v48  ;;  %vm1922_vm6 = vweird.f32 %v5060_v60  ;;  %vm1923_vm0 = vweird.f32 %v5231_v9  ;;  %2803 = vrot.lane.b32.xlu0 %v7153_v53, %s3736_s21 }
 0x388   :  { %v2353_v8 = vsub.f32 1.0, %v2352_v38  ;;  %3355 = vmatpush.xpose.msk.msra.mxu3 %vm7010_vm2, %v5001_v17  ;;  %3361 = vmatpush.xpose.msk.msrb.mxu2 %vm7010_vm2, %v2569_v36  ;;  %vm5393_vm10 = vcmp.eq.f32.partialorder %v1926_v4, 8.507059e+37  ;;  %v2089_v58 = vadd.f32 %v5239_v46, %v2088_v30  ;;  %vm2091_vm12 = vweird.f32 %v5239_v46  ;;  %vm5421_vm1 = vmor %vm1922_vm6, %vm1923_vm0 }
 0x389   :  { %v5391_v55 = vpop.eup %3624  ;;  %v2044_v11 = vmul.f32 %v5373_v47, %v5279_v32  ;;  %v2096_v36 = vand.u32 2147483648, %v5165_v28  ;;  %v2143_v48 = vsub.f32 1.0, %v2142_v23  ;;  %v2568_v38 = vmul.f32 %v4381_v54, %v1958_v22  ;;  %vm5438_vm4 = vmor %vm2090_vm11, %vm2091_vm12 }
 0x38a   :  { %v5406_v49 = vpop.eup %3626  ;;  %vm5410_vm3 = vcmp.eq.f32.partialorder %v2080_v3, 8.507059e+37  ;;  %v5415_v30 = vadd.f32 %v5258_v33, %v2032_v61  ;;  %v1929_v54 = vor.u32 1.1754944e-38, %v1928_v59  ;;  %v5425_v23 = vor.u32 1.1754944e-38, %v2362_v43  ;;  %v5447_v43 = vpop.xlane.xlu2 %1634 }
 0x38b   :  { %vm5427_vm14 = vcmp.eq.f32.partialorder %v2094_v63, 8.507059e+37  ;;  %v2354_v61 = vmul.f32 %v5298_v16, %v2353_v8  ;;  %v2254_v59 = vmul.f32 %v5391_v55, %v5245_v15  ;;  %3630 = vrcp.f32 %v5365_v21  ;;  %7188 = vst [vmem:[#allocation21_spill] sm:$0xff] %v5447_v43 }
 0x38c   :  { %7183 = vst [vmem:[#allocation18_spill] sm:$0xff] %v5425_v23  ;;  %v5431_v3 = vpop.eup %3628  ;;  %3356 = vmatpush.xpose.msk.msra.mxu3 %vm7010_vm2, %v4982_v31  ;;  %3362 = vmatpush.xpose.msk.msrb.mxu2 %vm7010_vm2, %v2568_v38  ;;  %v1925_v28 = vsel %vm5421_vm1, %v5231_v9, %v1921_v41  ;;  %v2093_v8 = vsel %vm5438_vm4, %v5239_v46, %v2089_v58  ;;  %v2264_v63 = vand.u32 2147483648, %v5245_v15  ;;  %v2045_v22 = vsub.f32 1.0, %v2044_v11  ;;  %v5461_v31 = vpop.xlane.xlu0 %1571 }
 0x38d   :  { %v1904_v17 = vmul.f32 %v5431_v3, %v5367_v20  ;;  %v5459_v57 = vpop.xlane.xlu1 %1535  ;;  %v2097_v45 = vor.u32 1.1754944e-38, %v2096_v36  ;;  %v2144_v53 = vmul.f32 %v5326_v34, %v2143_v48  ;;  %v2152_v9 = vand.u32 2147483648, %v5247_v18 }
 0x38e   :  { %v7189_v41 = vand.u32 2147483647, %v4910_v39  ;;  %v2016_v58 = vmul.f32 %v5406_v49, %v5206_v37  ;;  %3632 = vrcp.f32 %v5459_v57  ;;  %v1930_v36 = vsel %vm5393_vm10, %v1929_v54, %v1925_v28 }
 0x38f   :  { %v1905_v11 = vsub.f32 1.0, %v1904_v17  ;;  %v2098_v48 = vsel %vm5427_vm14, %v2097_v45, %v2093_v8  ;;  %v2255_v60 = vsub.f32 1.0, %v2254_v59  ;;  %v2026_v38 = vand.u32 2147483648, %v5206_v37 }
 0x390   :  { %vm5468_vm15 = vcmp.eq.f32.partialorder %v7189_v41, 8.507059e+37  ;;  %3634 = vrcp.f32 %v5316_v27  ;;  %3357 = vmatpush.xpose.msk.msra.mxu3 %vm7010_vm2, %v4985_v1  ;;  %3363 = vmatpush.xpose.msk.msrb.mxu2 %vm7010_vm2, %v5320_v29  ;;  %vm2035_vm7 = vweird.f32 %v5258_v33  ;;  %v5487_v39 = vadd.f32 %v5298_v16, %v2354_v61 }
 0x391   :  { %v5489_v13 = vor.u32 1.1754944e-38, %v2264_v63  ;;  %v2150_v45 = vand.u32 2147483647, %v5247_v18  ;;  %v2046_v17 = vmul.f32 %v5373_v47, %v2045_v22  ;;  %v5493_v54 = vpop.eup %3630  ;;  %v5495_v42 = vor.u32 1.1754944e-38, %v2152_v9 }
 0x392   :  { %7192 = vst [vmem:[#allocation19_spill] sm:$0xff] %v5487_v39  ;;  %v2024_v1 = vand.u32 2147483647, %v5206_v37  ;;  %v1906_v59 = vmul.f32 %v5431_v3, %v1905_v11  ;;  %v2566_v29 = vmul.f32 %v4419_v51, %v1930_v36  ;;  %vm2034_vm5 = vweird.f32 %v5074_v14 }
 0x393   :  { %7193 = vst [vmem:[#allocation27_spill] sm:$0xff] %v5489_v13  ;;  %v5502_v61 = vadd.f32 %v5326_v34, %v2144_v53  ;;  %v2017_v28 = vsub.f32 1.0, %v2016_v58  ;;  %v2578_v63 = vmul.f32 %v4414_v24, %v2098_v48  ;;  %v5507_v22 = vmul.f32 %v5391_v55, %v2255_v60  ;;  %v5542_v58 = vpop.xlane.xlu2 %1616  ;;  %v7250_v13 = vld [vmem:[#allocation55_spill] sm:$0xff] }
 0x394   :  { %7194 = vst [vmem:[#allocation26_spill] sm:$0xff] %v5493_v54  ;;  %vm2147_vm13 = vweird.f32 %v5326_v34  ;;  %v5510_v9 = vor.u32 1.1754944e-38, %v2026_v38  ;;  %vm2048_vm11 = vweird.f32 %v5279_v32  ;;  %3358 = vmatpush.xpose.msk.msra.mxu3 %vm7010_vm2, %v5150_v6  ;;  %3364 = vmatpush.xpose.msk.msrb.mxu2 %vm7010_vm2, %v2566_v29  ;;  %v7195_v51 = vsel %vm5347_vm9, %v5152_v56, %v5309_v5  ;;  %v5524_v53 = vpop.eup %3632  ;;  %v5534_v56 = vpop.xlane.xlu0 %1592 }
 0x395   :  { %v2084_v24 = vsel %vm5410_vm3, %v5217_v26, %v7195_v51  ;;  %v2450_v38 = vmul.f32 %v5493_v54, %v5365_v21  ;;  %v2047_v41 = vadd.f32 %v5373_v47, %v2046_v17  ;;  %vm2049_vm6 = vweird.f32 %v5373_v47  ;;  %v5532_v2 = vpop.xlane.xlu1 %1511  ;;  %v7199_v17 = vld [vmem:[#allocation37_spill] sm:$0xff] }
 0x396   :  { %v2052_v6 = vand.u32 2147483647, %v5279_v32  ;;  %v5536_v5 = vpop.eup %3634  ;;  %vm2146_vm9 = vweird.f32 %v5247_v18  ;;  %v2054_v26 = vand.u32 2147483648, %v5279_v32  ;;  %v1907_v4 = vadd.f32 %v5431_v3, %v1906_v59  ;;  %vm5562_vm3 = vmor %vm2048_vm11, %vm2049_vm6 }
 0x397   :  { %vm1909_vm0 = vweird.f32 %v5431_v3  ;;  %3636 = vrcp.f32 %v5532_v2  ;;  %v7196_v11 = vand.u32 2147483647, %v5074_v14  ;;  %v2018_v48 = vmul.f32 %v5406_v49, %v2017_v28  ;;  %3359 = vmatmul.msk.f32.vlgmr.msra.gmra.mxu3 %vm7010_vm2, %v7173_v25  ;;  %vm5612_vm6 = vmor %vm2034_vm5, %vm2035_vm7 }
 0x398   :  { %3369 = vmatpush.xpose.msk.msrb.mxu3 %vm7010_vm2, %v2578_v63  ;;  %vm2020_vm12 = vweird.f32 %v5206_v37  ;;  %v1914_v60 = vand.u32 2147483648, %v5367_v20  ;;  %3638 = vrcp.f32 %v5447_v43  ;;  %v2577_v59 = vmul.f32 %v7199_v17, %v2084_v24  ;;  %vm5641_vm7 = vmor %vm2146_vm9, %vm2147_vm13 }
 0x399   :  { %vm5547_vm10 = vcmp.eq.f32.partialorder %v7196_v11, 8.507059e+37  ;;  %vm1908_vm1 = vweird.f32 %v5367_v20  ;;  %v1912_v28 = vand.u32 2147483647, %v5367_v20  ;;  %v2002_v63 = vmul.f32 %v5524_v53, %v5459_v57 }
 0x39a   :  { %v7202_v25 = vsel %vm5304_vm8, %v5098_v35, %v5226_v7  ;;  %v2451_v51 = vsub.f32 1.0, %v2450_v38  ;;  %v2366_v11 = vmul.f32 %v5536_v5, %v5316_v27  ;;  %vm5583_vm14 = vmor %vm1908_vm1, %vm1909_vm0  ;;  %v2051_v35 = vsel %vm5562_vm3, %v5373_v47, %v2047_v41  ;;  %v7209_v41 = vld [vmem:[#allocation36_spill] sm:$0xff] }
 0x39b   :  { %v2070_v32 = vsel %vm5468_vm15, %v5132_v52, %v7202_v25  ;;  %vm5591_vm8 = vcmp.eq.f32.partialorder %v2150_v45, 8.507059e+37  ;;  %vm2021_vm4 = vweird.f32 %v5406_v49  ;;  %vm2053_vm15 = vcmp.eq.f32.partialorder %v2052_v6, 8.507059e+37 }
 0x39c   :  { %3370 = vmatpush.xpose.msk.msrb.mxu3 %vm7010_vm2, %v2577_v59  ;;  %v2055_v7 = vor.u32 1.1754944e-38, %v2054_v26  ;;  %v1911_v10 = vsel %vm5583_vm14, %v5431_v3, %v1907_v4  ;;  %v2019_v46 = vadd.f32 %v5406_v49, %v2018_v48  ;;  %vm5600_vm11 = vcmp.eq.f32.partialorder %v2024_v1, 8.507059e+37  ;;  %v5623_v14 = vpop.xlane.xlu0 %1574  ;;  %vm5653_vm5 = vmor %vm2020_vm12, %vm2021_vm4 }
 0x39d   :  { %v2376_v47 = vand.u32 2147483648, %v5316_v27  ;;  %v1915_v45 = vor.u32 1.1754944e-38, %v1914_v60  ;;  %v2576_v17 = vmul.f32 %v7209_v41, %v2070_v32  ;;  %v5606_v59 = vpop.eup %3636  ;;  %vm1913_vm0 = vcmp.eq.f32.partialorder %v1912_v28, 8.507059e+37  ;;  %v5621_v29 = vpop.xlane.xlu1 %1532 }
 0x39e   :  { %v2003_v3 = vsub.f32 1.0, %v2002_v63  ;;  %3640 = vrcp.f32 %v5542_v58  ;;  %v2056_v1 = vsel %vm2053_vm15, %v2055_v7, %v2051_v35  ;;  %v5617_v26 = vpop.eup %3638  ;;  %v2452_v4 = vmul.f32 %v5493_v54, %v2451_v51 }
 0x39f   :  { %7212 = vst [vmem:[#allocation30_spill] sm:$0xff] %v5617_v26  ;;  %v2367_v48 = vsub.f32 1.0, %v2366_v11  ;;  %v1916_v60 = vsel %vm1913_vm0, %v1915_v45, %v1911_v10  ;;  %v2037_v28 = vsel %vm5612_vm6, %v5258_v33, %v5415_v30  ;;  %v5631_v63 = vadd.f32 %v5391_v55, %v5507_v22  ;;  %v7216_v30 = vld [vmem:[#allocation47_spill] sm:$0xff]  ;;  %v7217_v11 = vld [vmem:[#allocation45_spill] sm:$0xff]  ;;  %v5660_v10 = vpop.xlane.xlu2 %1637 }
 0x3a0   :  { %3371 = vmatpush.xpose.msk.msrb.mxu3 %vm7010_vm2, %v2576_v17  ;;  %v2474_v25 = vand.u32 2147483648, %v5447_v43  ;;  %3642 = vrcp.f32 %v5461_v31  ;;  %v1890_v32 = vmul.f32 %v5606_v59, %v5532_v2  ;;  %v2565_v22 = vmul.f32 %v7216_v30, %v1916_v60 }
 0x3a1   :  { %7213 = vst [vmem:[#allocation28_spill] sm:$0xff] %v5631_v63  ;;  %v2575_v20 = vmul.f32 %v7217_v11, %v2056_v1  ;;  %3644 = vrcp.f32 %v5621_v29  ;;  %v2464_v18 = vmul.f32 %v5617_v26, %v5447_v43  ;;  %v2004_v7 = vmul.f32 %v5524_v53, %v2003_v3 }
 0x3a2   :  { %v2042_v45 = vsel %vm5547_vm10, %v5351_v62, %v2037_v28  ;;  %v2149_v37 = vsel %vm5641_vm7, %v5326_v34, %v5502_v61  ;;  %v5670_v41 = vadd.f32 %v5493_v54, %v2452_v4  ;;  %v2368_v17 = vmul.f32 %v5536_v5, %v2367_v48  ;;  %3365 = vmatpush.xpose.msk.msrb.mxu2 %vm7010_vm2, %v2565_v22  ;;  %v7223_v4 = vld [vmem:[#allocation39_spill] sm:$0xff] }
 0x3a3   :  { %v5673_v6 = vor.u32 1.1754944e-38, %v2376_v47  ;;  %v2023_v62 = vsel %vm5653_vm5, %v5406_v49, %v2019_v46  ;;  %v5683_v34 = vor.u32 1.1754944e-38, %v2474_v25  ;;  %v2010_v61 = vand.u32 2147483647, %v5459_v57 }
 0x3a4   :  { %7220 = vst [vmem:[#allocation7_spill] sm:$0xff] %v5670_v41  ;;  %3372 = vmatpush.xpose.msk.msrb.mxu3 %vm7010_vm2, %v2575_v20  ;;  %v5680_v36 = vpop.eup %3640  ;;  %v1891_v1 = vsub.f32 1.0, %v1890_v32  ;;  %v2012_v47 = vand.u32 2147483648, %v5459_v57  ;;  %3646 = vrcp.f32 %v5660_v10  ;;  %v2574_v48 = vmul.f32 %v7223_v4, %v2042_v45  ;;  %v7234_v41 = vld [vmem:[#allocation52_spill] sm:$0xff] }
 0x3a5   :  { %7221 = vst [vmem:[#allocation9_spill] sm:$0xff] %v5673_v6  ;;  %v5692_v60 = vsel %vm5591_vm8, %v5495_v42, %v2149_v37  ;;  %v2465_v46 = vsub.f32 1.0, %v2464_v18  ;;  %v2005_v28 = vadd.f32 %v5524_v53, %v2004_v7  ;;  %vm2007_vm13 = vweird.f32 %v5524_v53  ;;  %v5711_v52 = vpop.xlane.xlu1 %1508  ;;  %v5713_v30 = vpop.xlane.xlu0 %1595  ;;  %v7229_v18 = vld [vmem:[#allocation44_spill] sm:$0xff] }
 0x3a6   :  { %7222 = vst [vmem:[#allocation10_spill] sm:$0xff] %v5683_v34  ;;  %v5694_v49 = vpop.eup %3642  ;;  %v2028_v25 = vsel %vm5600_vm11, %v5510_v9, %v2023_v62  ;;  %v5704_v51 = vadd.f32 %v5536_v5, %v2368_v17  ;;  %vm2006_vm9 = vweird.f32 %v5459_v57  ;;  %v2380_v42 = vmul.f32 %v5680_v36, %v5542_v58 }
 0x3a7   :  { %v5701_v32 = vpop.eup %3644  ;;  %3648 = vrcp.f32 %v5534_v56  ;;  %vm5715_vm10 = vcmp.eq.f32.partialorder %v2010_v61, 8.507059e+37  ;;  %v1892_v38 = vmul.f32 %v5606_v59, %v1891_v1  ;;  %vm5723_vm12 = vmor %vm2006_vm9, %vm2007_vm13  ;;  %v2390_v11 = vand.u32 2147483648, %v5542_v58 }
 0x3a8   :  { %7224 = vst [vmem:[#allocation33_spill] sm:$0xff] %v5704_v51  ;;  %3373 = vmatpush.xpose.msk.msrb.mxu3 %vm7010_vm2, %v2574_v48  ;;  %v1988_v57 = vmul.f32 %v5701_v32, %v5621_v29  ;;  %3650 = vrcp.f32 %v5711_v52  ;;  %v2170_v20 = vmul.f32 %v5694_v49, %v5461_v31  ;;  %v2180_v35 = vand.u32 2147483648, %v5461_v31 }
 0x3a9   :  { %v2573_v7 = vmul.f32 %v7229_v18, %v2028_v25  ;;  %v2466_v45 = vmul.f32 %v5617_v26, %v2465_v46  ;;  %v2013_v37 = vor.u32 1.1754944e-38, %v2012_v47  ;;  %3652 = vrcp.f32 %v5623_v14  ;;  %v5752_v18 = vpop.xlane.xlu2 %1619 }
 0x3aa   :  { %v2009_v17 = vsel %vm5723_vm12, %v5524_v53, %v2005_v28  ;;  %v5737_v62 = vpop.eup %3646  ;;  %v2381_v61 = vsub.f32 1.0, %v2380_v42  ;;  %v1898_v4 = vand.u32 2147483647, %v5532_v2  ;;  %v1900_v48 = vand.u32 2147483648, %v5532_v2 }
 0x3ab   :  { %v1893_v47 = vadd.f32 %v5606_v59, %v1892_v38  ;;  %vm1895_vm3 = vweird.f32 %v5606_v59  ;;  %v1989_v25 = vsub.f32 1.0, %v1988_v57  ;;  %v5748_v53 = vor.u32 1.1754944e-38, %v2390_v11  ;;  %v7232_v57 = vld [vmem:[#allocation49_spill] sm:$0xff] }
 0x3ac   :  { %3374 = vmatpush.xpose.msk.msrb.mxu3 %vm7010_vm2, %v2573_v7  ;;  %v2171_v28 = vsub.f32 1.0, %v2170_v20  ;;  %v5750_v42 = vor.u32 1.1754944e-38, %v2180_v35  ;;  %v2014_v8 = vsel %vm5715_vm10, %v2013_v37, %v2009_v17  ;;  %v5759_v24 = vadd.f32 %v5617_v26, %v2466_v45 }
 0x3ad   :  { %v5746_v22 = vpop.eup %3648  ;;  %7230 = vst [vmem:[#allocation8_spill] sm:$0xff] %v5748_v53  ;;  %vm1894_vm1 = vweird.f32 %v5532_v2  ;;  %v2478_v38 = vmul.f32 %v5737_v62, %v5660_v10  ;;  %v2572_v11 = vmul.f32 %v7232_v57, %v2014_v8  ;;  %v2382_v20 = vmul.f32 %v5680_v36, %v2381_v61  ;;  %v5768_v37 = vpop.xlane.xlu1 %1607 }
 0x3ae   :  { %v5756_v7 = vpop.eup %3650  ;;  %7231 = vst [vmem:[#allocation37_spill] sm:$0xff] %v5759_v24  ;;  %vm1896_vm14 = vmor %vm1894_vm1, %vm1895_vm3  ;;  %vm1899_vm8 = vcmp.eq.f32.partialorder %v1898_v4, 8.507059e+37  ;;  %v1901_v35 = vor.u32 1.1754944e-38, %v1900_v48  ;;  %v2488_v45 = vand.u32 2147483648, %v5660_v10  ;;  %v2268_v2 = vmul.f32 %v5746_v22, %v5534_v56  ;;  %v5781_v57 = vpop.xlane.xlu0 %1577 }
 0x3af   :  { %v1876_v9 = vmul.f32 %v5756_v7, %v5711_v52  ;;  %7233 = vst [vmem:[#allocation36_spill] sm:$0xff] %v5768_v37  ;;  %v5770_v17 = vpop.eup %3652  ;;  %v1990_v3 = vmul.f32 %v5701_v32, %v1989_v25  ;;  %v1897_v8 = vsel %vm1896_vm14, %v5606_v59, %v1893_v47  ;;  %v2172_v61 = vmul.f32 %v5694_v49, %v2171_v28 }
 0x3b0   :  { %3375 = vmatpush.xpose.msk.msrb.mxu3 %vm7010_vm2, %v2572_v11  ;;  %v2278_v4 = vand.u32 2147483648, %v5534_v56  ;;  %3654 = vrcp.f32 %v5752_v18  ;;  %v1902_v48 = vsel %vm1899_vm8, %v1901_v35, %v1897_v8  ;;  %v2479_v33 = vsub.f32 1.0, %v2478_v38 }
 0x3b1   :  { %v1877_v46 = vsub.f32 1.0, %v1876_v9  ;;  %v2564_v34 = vmul.f32 %v7234_v41, %v1902_v48  ;;  %v5786_v25 = vadd.f32 %v5680_v36, %v2382_v20  ;;  %v1998_v47 = vand.u32 2147483648, %v5621_v29  ;;  %v5816_v48 = vpop.xlane.xlu2 %1640 }
 0x3b2   :  { %v2184_v28 = vmul.f32 %v5770_v17, %v5623_v14  ;;  %v2269_v11 = vsub.f32 1.0, %v2268_v2  ;;  %v1991_v35 = vadd.f32 %v5701_v32, %v1990_v3  ;;  %vm1993_vm4 = vweird.f32 %v5701_v32 }
 0x3b3   :  { %7235 = vst [vmem:[#allocation47_spill] sm:$0xff] %v5786_v25  ;;  %v1996_v38 = vand.u32 2147483647, %v5621_v29  ;;  %3366 = vmatpush.xpose.msk.msrb.mxu2 %vm7010_vm2, %v2564_v34  ;;  %v5797_v41 = vadd.f32 %v5694_v49, %v2172_v61  ;;  %v5799_v20 = vor.u32 1.1754944e-38, %v2488_v45  ;;  %v5801_v9 = vor.u32 1.1754944e-38, %v2278_v4 }
 0x3b4   :  { %3656 = vrcp.f32 %v5781_v57  ;;  %v2480_v8 = vmul.f32 %v5737_v62, %v2479_v33  ;;  %vm1992_vm15 = vweird.f32 %v5621_v29  ;;  %v1878_v3 = vmul.f32 %v5756_v7, %v1877_v46 }
 0x3b5   :  { %7236 = vst [vmem:[#allocation45_spill] sm:$0xff] %v5799_v20  ;;  %3658 = vrcp.f32 %v5713_v30  ;;  %vm5810_vm11 = vmor %vm1992_vm15, %vm1993_vm4  ;;  %v1999_v45 = vor.u32 1.1754944e-38, %v1998_v47  ;;  %v2185_v61 = vsub.f32 1.0, %v2184_v28  ;;  %v2194_v4 = vand.u32 2147483648, %v5623_v14  ;;  %v5818_v33 = vpop.xlane.xlu1 %1568 }
 0x3b6   :  { %7237 = vst [vmem:[#allocation39_spill] sm:$0xff] %v5801_v9  ;;  %v5808_v2 = vpop.eup %3654  ;;  %3660 = vrcp.f32 %v5768_v37  ;;  %v2270_v29 = vmul.f32 %v5746_v22, %v2269_v11  ;;  %vm1997_vm6 = vcmp.eq.f32.partialorder %v1996_v38, 8.507059e+37  ;;  %v1995_v46 = vsel %vm5810_vm11, %v5701_v32, %v1991_v35  ;;  %v7240_v38 = vld [vmem:[#allocation11_spill] sm:$0xff] }
 0x3b7   :  { %3662 = vrcp.f32 %v5818_v33  ;;  %vm2188_vm0 = vweird.f32 %v5623_v14  ;;  %v2192_v47 = vand.u32 2147483647, %v5623_v14  ;;  %v1884_v28 = vand.u32 2147483647, %v5711_v52 }
 0x3b8   :  { %v1886_v1 = vand.u32 2147483648, %v5711_v52  ;;  %v2000_v59 = vsel %vm1997_vm6, %v1999_v45, %v1995_v46  ;;  %v1879_v24 = vadd.f32 %v5756_v7, %v1878_v3  ;;  %vm1881_vm7 = vweird.f32 %v5756_v7  ;;  %v5843_v45 = vpop.xlane.xlu0 %1598 }
 0x3b9   :  { %v2394_v11 = vmul.f32 %v5808_v2, %v5752_v18  ;;  %v2571_v32 = vmul.f32 %v7240_v38, %v2000_v59  ;;  %v5837_v34 = vadd.f32 %v5737_v62, %v2480_v8  ;;  %v2186_v20 = vmul.f32 %v5770_v17, %v2185_v61 }
 0x3ba   :  { %v5834_v35 = vpop.eup %3656  ;;  %v5840_v23 = vor.u32 1.1754944e-38, %v2194_v4  ;;  %3664 = vrcp.f32 %v5816_v48  ;;  %v5848_v46 = vadd.f32 %v5746_v22, %v2270_v29  ;;  %vm2189_vm5 = vweird.f32 %v5770_v17 }
 0x3bb   :  { %7241 = vst [vmem:[#allocation44_spill] sm:$0xff] %v5837_v34  ;;  %v5845_v3 = vpop.eup %3658  ;;  %vm1880_vm13 = vweird.f32 %v5711_v52  ;;  %v2198_v59 = vmul.f32 %v5834_v35, %v5781_v57  ;;  %3376 = vmatpush.xpose.msk.msrb.mxu3 %vm7010_vm2, %v2571_v32  ;;  %vm5863_vm10 = vcmp.eq.f32.partialorder %v1884_v28, 8.507059e+37  ;;  %v1887_v29 = vor.u32 1.1754944e-38, %v1886_v1  ;;  %vm5910_vm8 = vmor %vm2188_vm0, %vm2189_vm5 }
 0x3bc   :  { %7242 = vst [vmem:[#allocation49_spill] sm:$0xff] %v5848_v46  ;;  %v5855_v8 = vpop.eup %3660  ;;  %vm5859_vm9 = vmor %vm1880_vm13, %vm1881_vm7  ;;  %v2404_v38 = vand.u32 2147483648, %v5752_v18  ;;  %vm2175_vm12 = vweird.f32 %v5694_v49  ;;  %vm5872_vm3 = vcmp.eq.f32.partialorder %v2192_v47, 8.507059e+37  ;;  %v2395_v34 = vsub.f32 1.0, %v2394_v11 }
 0x3bd   :  { %v5869_v0 = vpop.eup %3662  ;;  %v2199_v40 = vsub.f32 1.0, %v2198_v59  ;;  %3666 = vrcp.f32 %v5843_v45  ;;  %v1883_v1 = vsel %vm5859_vm9, %v5756_v7, %v1879_v24  ;;  %v2187_v28 = vadd.f32 %v5770_v17, %v2186_v20  ;;  %v5888_v11 = vpop.xlane.xlu1 %1622 }
 0x3be   :  { %v2282_v52 = vmul.f32 %v5845_v3, %v5713_v30  ;;  %v2208_v39 = vand.u32 2147483648, %v5781_v57  ;;  %3377 = vmatmul.msk.f32.vlgmr.msrb.gmra.mxu3 %vm7010_vm2, %v7164_v44  ;;  %v2156_v47 = vmul.f32 %v5869_v0, %v5818_v33  ;;  %v5890_v59 = vpop.xlane.xlu2 %1643  ;;  %vm2174_vm1 = vweird.f32 %v5461_v31 }
 0x3bf   :  { %v2200_v24 = vmul.f32 %v5834_v35, %v2199_v40  ;;  %vm2203_vm14 = vweird.f32 %v5834_v35  ;;  %v2206_v7 = vand.u32 2147483647, %v5781_v57  ;;  %v1888_v20 = vsel %vm5863_vm10, %v1887_v29, %v1883_v1  ;;  %vm5969_vm0 = vmor %vm2174_vm1, %vm2175_vm12 }
 0x3c0   :  { %v5898_v61 = vpop.eup %3664  ;;  %v5900_v44 = vor.u32 1.1754944e-38, %v2404_v38  ;;  %v2292_v6 = vand.u32 2147483648, %v5713_v30  ;;  %v2338_v21 = vmul.f32 %v5855_v8, %v5768_v37  ;;  %v2563_v51 = vmul.f32 %v7250_v13, %v1888_v20 }
 0x3c1   :  { %v2396_v4 = vmul.f32 %v5808_v2, %v2395_v34  ;;  %v2348_v29 = vand.u32 2147483648, %v5768_v37  ;;  %v2201_v38 = vadd.f32 %v5834_v35, %v2200_v24  ;;  %vm2202_vm4 = vweird.f32 %v5781_v57 }
 0x3c2   :  { %7249 = vst [vmem:[#allocation52_spill] sm:$0xff] %v5900_v44  ;;  %v2283_v1 = vsub.f32 1.0, %v2282_v52  ;;  %vm2204_vm15 = vmor %vm2202_vm4, %vm2203_vm14  ;;  %v2209_v13 = vor.u32 1.1754944e-38, %v2208_v39  ;;  %v2157_v14 = vsub.f32 1.0, %v2156_v47  ;;  %3367 = vmatpush.xpose.msk.msrb.mxu2 %vm7010_vm2, %v2563_v51  ;;  %v7253_v34 = vand.u32 2147483647, %v5461_v31 }
 0x3c3   :  { %v5922_v20 = vpop.eup %3666  ;;  %v2492_v57 = vmul.f32 %v5898_v61, %v5816_v48  ;;  %v2205_v52 = vsel %vm2204_vm15, %v5834_v35, %v2201_v38  ;;  %vm2207_vm6 = vcmp.eq.f32.partialorder %v2206_v7, 8.507059e+37  ;;  %v2191_v39 = vsel %vm5910_vm8, %v5770_v17, %v2187_v28  ;;  %v7257_v35 = vld [vmem:[#allocation24_spill] sm:$0xff] }
 0x3c4   :  { %vm5926_vm11 = vcmp.eq.f32.partialorder %v7253_v34, 8.507059e+37  ;;  %v5936_v47 = vor.u32 1.1754944e-38, %v2292_v6  ;;  %v2339_v51 = vsub.f32 1.0, %v2338_v21  ;;  %v2210_v63 = vsel %vm2207_vm6, %v2209_v13, %v2205_v52 }
 0x3c5   :  { %v5940_v34 = vadd.f32 %v5808_v2, %v2396_v4  ;;  %v5942_v53 = vor.u32 1.1754944e-38, %v2348_v29  ;;  %3368 = vmatmul.msk.f32.vlgmr.msrb.gmra.mxu2 %vm7010_vm2, %v7161_v19  ;;  %v2586_v7 = vmul.f32 %v7257_v35, %v2210_v63  ;;  %v2158_v17 = vmul.f32 %v5869_v0, %v2157_v14  ;;  %v5952_v6 = vpop.xlane.xlu1 %1649  ;;  %v5957_v40 = vpop.xlane.xlu0 %1601  ;;  %v7260_v14 = vld [vmem:[#allocation12_spill] sm:$0xff] }
 0x3c6   :  { %v2296_v21 = vmul.f32 %v5922_v20, %v5843_v45  ;;  %3668 = vrcp.f32 %v5888_v11  ;;  %v2196_v28 = vsel %vm5872_vm3, %v5840_v23, %v2191_v39  ;;  %v2284_v4 = vmul.f32 %v5845_v3, %v2283_v1  ;;  %v5963_v29 = vpop.xlane.xlu2 %1625 }
 0x3c7   :  { %7256 = vst [vmem:[#allocation11_spill] sm:$0xff] %v5942_v53  ;;  %v2493_v19 = vsub.f32 1.0, %v2492_v57  ;;  %v2502_v63 = vand.u32 2147483648, %v5816_v48  ;;  %3378 = vmatpush.xpose.msk.msra.mxu0 %vm7010_vm2, %v2586_v7  ;;  %3670 = vrcp.f32 %v5952_v6  ;;  %v2340_v23 = vmul.f32 %v5855_v8, %v2339_v51 }
 0x3c8   :  { %v2164_v38 = vand.u32 2147483647, %v5818_v33  ;;  %v2166_v1 = vand.u32 2147483648, %v5818_v33  ;;  %3672 = vrcp.f32 %v5963_v29  ;;  %v2306_v13 = vand.u32 2147483648, %v5843_v45 }
 0x3c9   :  { %3674 = vrcp.f32 %v5890_v59  ;;  %v2585_v57 = vmul.f32 %v7260_v14, %v2196_v28  ;;  %v2177_v31 = vsel %vm5969_vm0, %v5694_v49, %v5797_v41  ;;  %v2159_v52 = vadd.f32 %v5869_v0, %v2158_v17  ;;  %v7270_v49 = vld [vmem:[#allocation64_spill] sm:$0xff] }
 0x3ca   :  { %vm2161_vm7 = vweird.f32 %v5869_v0  ;;  %v2297_v39 = vsub.f32 1.0, %v2296_v21  ;;  %3676 = vrcp.f32 %v5957_v40  ;;  %v5988_v51 = vadd.f32 %v5845_v3, %v2284_v4 }
 0x3cb   :  { %v2494_v35 = vmul.f32 %v5898_v61, %v2493_v19  ;;  %v5991_v7 = vor.u32 1.1754944e-38, %v2502_v63  ;;  %vm2160_vm5 = vweird.f32 %v5818_v33  ;;  %3379 = vmatpush.xpose.msk.msra.mxu0 %vm7010_vm2, %v2585_v57  ;;  %vm5997_vm13 = vcmp.eq.f32.partialorder %v2164_v38, 8.507059e+37  ;;  %v7267_v38 = vld [vmem:[#allocation51_spill] sm:$0xff] }
 0x3cc   :  { %v5995_v28 = vpop.eup %3668  ;;  %v2418_v41 = vand.u32 2147483648, %v5888_v11  ;;  %v2516_v17 = vand.u32 2147483648, %v5890_v59  ;;  %v2182_v21 = vsel %vm5926_vm11, %v5750_v42, %v2177_v31  ;;  %v6009_v33 = vadd.f32 %v5855_v8, %v2340_v23  ;;  %vm6013_vm9 = vmor %vm2160_vm5, %vm2161_vm7 }
 0x3cd   :  { %7261 = vst [vmem:[#allocation55_spill] sm:$0xff] %v5991_v7  ;;  %v6006_v4 = vpop.eup %3670  ;;  %v2167_v63 = vor.u32 1.1754944e-38, %v2166_v1  ;;  %v2584_v14 = vmul.f32 %v7267_v38, %v2182_v21  ;;  %v2298_v54 = vmul.f32 %v5922_v20, %v2297_v39  ;;  %v6022_v42 = vor.u32 1.1754944e-38, %v2306_v13  ;;  %v6026_v31 = vpop.xlane.xlu1 %1586 }
 0x3ce   :  { %7264 = vst [vmem:[#allocation24_spill] sm:$0xff] %v6009_v33  ;;  %v6019_v57 = vpop.eup %3672  ;;  %v2534_v23 = vmul.f32 %v6006_v4, %v5952_v6  ;;  %v2163_v24 = vsel %vm6013_vm9, %v5869_v0, %v2159_v52  ;;  %v6034_v9 = vadd.f32 %v5898_v61, %v2494_v35  ;;  %v2408_v21 = vmul.f32 %v5995_v28, %v5888_v11  ;;  %v6042_v38 = vpop.xlane.xlu2 %1562 }
 0x3cf   :  { %v6031_v1 = vpop.eup %3674  ;;  %v2422_v39 = vmul.f32 %v6019_v57, %v5963_v29  ;;  %3380 = vmatpush.xpose.msk.msra.mxu0 %vm7010_vm2, %v2584_v14  ;;  %v6046_v0 = vor.u32 1.1754944e-38, %v2418_v41  ;;  %v6049_v35 = vor.u32 1.1754944e-38, %v2516_v17  ;;  %v6051_v53 = vpop.xlane.xlu0 %1646  ;;  %3678 = vrcp.f32 %v6042_v38 }
 0x3d0   :  { %7268 = vst [vmem:[#allocation12_spill] sm:$0xff] %v6034_v9  ;;  %v6044_v32 = vpop.eup %3676  ;;  %v2535_v19 = vsub.f32 1.0, %v2534_v23  ;;  %v2168_v14 = vsel %vm5997_vm13, %v2167_v63, %v2163_v24  ;;  %v6059_v7 = vadd.f32 %v5922_v20, %v2298_v54  ;;  %v2506_v41 = vmul.f32 %v6031_v1, %v5890_v59 }
 0x3d1   :  { %7269 = vst [vmem:[#allocation51_spill] sm:$0xff] %v6049_v35  ;;  %v2423_v33 = vsub.f32 1.0, %v2422_v39  ;;  %v2310_v13 = vmul.f32 %v6044_v32, %v5957_v40  ;;  %v2542_v17 = vand.u32 2147483647, %v5952_v6  ;;  %3680 = vrcp.f32 %v6026_v31 }
 0x3d2   :  { %v2409_v23 = vsub.f32 1.0, %v2408_v21  ;;  %vm2538_vm10 = vweird.f32 %v5952_v6  ;;  %v2536_v9 = vmul.f32 %v6006_v4, %v2535_v19  ;;  %v2544_v24 = vand.u32 2147483648, %v5952_v6 }
 0x3d3   :  { %v2424_v39 = vmul.f32 %v6019_v57, %v2423_v33  ;;  %v2311_v52 = vsub.f32 1.0, %v2310_v13  ;;  %v2583_v63 = vmul.f32 %v7270_v49, %v2168_v14  ;;  %3682 = vrcp.f32 %v6051_v53 }
 0x3d4   :  { %vm2426_vm12 = vweird.f32 %v5963_v29  ;;  %vm2427_vm3 = vweird.f32 %v6019_v57  ;;  %v2430_v54 = vand.u32 2147483647, %v5963_v29  ;;  %v2507_v35 = vsub.f32 1.0, %v2506_v41 }
 0x3d5   :  { %v2312_v21 = vmul.f32 %v6044_v32, %v2311_v52  ;;  %vm6075_vm1 = vcmp.eq.f32.partialorder %v2542_v17, 8.507059e+37  ;;  %v2425_v13 = vadd.f32 %v6019_v57, %v2424_v39  ;;  %vm2315_vm14 = vweird.f32 %v6044_v32  ;;  %3381 = vmatpush.xpose.msk.msra.mxu0 %vm7010_vm2, %v2583_v63  ;;  %v6082_v19 = vpop.xlane.xlu1 %1583  ;;  %v6084_v14 = vpop.eup %3678  ;;  %vm6100_vm11 = vmor %vm2426_vm12, %vm2427_vm3 }
 0x3d6   :  { %vm2301_vm8 = vweird.f32 %v5922_v20  ;;  %v2410_v49 = vmul.f32 %v5995_v28, %v2409_v23  ;;  %v2432_v52 = vand.u32 2147483648, %v5963_v29  ;;  %v2320_v17 = vand.u32 2147483648, %v5957_v40  ;;  %v6123_v46 = vpop.xlane.xlu2 %1580 }
 0x3d7   :  { %v2313_v41 = vadd.f32 %v6044_v32, %v2312_v21  ;;  %v6091_v12 = vpop.eup %3680  ;;  %vm2413_vm4 = vweird.f32 %v5995_v28  ;;  %v2537_v39 = vadd.f32 %v6006_v4, %v2536_v9  ;;  %vm2539_vm15 = vweird.f32 %v6006_v4  ;;  %v6106_v21 = vpop.xlane.xlu0 %1604 }
 0x3d8   :  { %vm2314_vm6 = vweird.f32 %v5957_v40  ;;  %v2318_v63 = vand.u32 2147483647, %v5957_v40  ;;  %7275 = vst [vmem:[#allocation64_spill] sm:$0xff] %v6106_v21  ;;  %vm2300_vm0 = vweird.f32 %v5843_v45  ;;  %v2545_v43 = vor.u32 1.1754944e-38, %v2544_v24  ;;  %v7280_v40 = vld [vmem:[#allocation41_spill] sm:$0xff]  ;;  %vm6140_vm9 = vmor %vm2538_vm10, %vm2539_vm15 }
 0x3d9   :  { %vm6109_vm7 = vcmp.eq.f32.partialorder %v2430_v54, 8.507059e+37  ;;  %vm6115_vm5 = vmor %vm2314_vm6, %vm2315_vm14  ;;  %v2128_v37 = vmul.f32 %v6084_v14, %v6042_v38  ;;  %v2582_v25 = vmul.f32 %v7280_v40, %v5692_v60  ;;  %v6125_v44 = vpop.eup %3682  ;;  %vm2412_vm13 = vweird.f32 %v5888_v11  ;;  %v7292_v60 = vld [vmem:[#allocation35_spill] sm:$0xff] }
 0x3da   :  { %v2508_v24 = vmul.f32 %v6031_v1, %v2507_v35  ;;  %v2429_v54 = vsel %vm6100_vm11, %v6019_v57, %v2425_v13  ;;  %v2317_v26 = vsel %vm6115_vm5, %v6044_v32, %v2313_v41  ;;  %3684 = vrcp.f32 %v6082_v19 }
 0x3db   :  { %v2433_v40 = vor.u32 1.1754944e-38, %v2432_v52  ;;  %v2321_v35 = vor.u32 1.1754944e-38, %v2320_v17  ;;  %v2240_v23 = vmul.f32 %v6091_v12, %v6026_v31  ;;  %v2250_v57 = vand.u32 2147483648, %v6026_v31  ;;  %3382 = vmatpush.xpose.msk.msra.mxu0 %vm7010_vm2, %v2582_v25  ;;  %v7321_v52 = vld [vmem:[#allocation31_spill] sm:$0xff] }
 0x3dc   :  { %v2541_v32 = vsel %vm6140_vm9, %v6006_v4, %v2537_v39  ;;  %vm2319_vm12 = vcmp.eq.f32.partialorder %v2318_v63, 8.507059e+37  ;;  %v2520_v6 = vmul.f32 %v6125_v44, %v6051_v53  ;;  %3686 = vrcp.f32 %v6123_v46  ;;  %vm6208_vm9 = vmor %vm2300_vm0, %vm2301_vm8  ;;  %v7314_v4 = vld [vmem:[#allocation13_spill] sm:$0xff] }
 0x3dd   :  { %vm2287_vm10 = vweird.f32 %v5845_v3  ;;  %v7283_v13 = vand.u32 2147483647, %v5843_v45  ;;  %v6162_v25 = vadd.f32 %v5995_v28, %v2410_v49  ;;  %v7286_v41 = vand.u32 2147483647, %v5888_v11 }
 0x3de   :  { %v2434_v17 = vsel %vm6109_vm7, %v2433_v40, %v2429_v54  ;;  %v2322_v39 = vsel %vm2319_vm12, %v2321_v35, %v2317_v26  ;;  %v2129_v63 = vsub.f32 1.0, %v2128_v37  ;;  %v6173_v29 = vadd.f32 %v6031_v1, %v2508_v24  ;;  %v6185_v37 = vpop.xlane.xlu1 %1556  ;;  %v7291_v35 = vld [vmem:[#allocation34_spill] sm:$0xff]  ;;  %vm6232_vm7 = vmor %vm2412_vm13, %vm2413_vm4 }
 0x3df   :  { %vm6157_vm3 = vcmp.eq.f32.partialorder %v7283_v13, 8.507059e+37  ;;  %vm6166_vm14 = vcmp.eq.f32.partialorder %v7286_v41, 8.507059e+37  ;;  %v2138_v13 = vand.u32 2147483648, %v6042_v38  ;;  %3688 = vrcp.f32 %v6106_v21 }
 0x3e0   :  { %7289 = vst [vmem:[#allocation41_spill] sm:$0xff] %v6173_v29  ;;  %vm2399_vm15 = vweird.f32 %v5808_v2  ;;  %vm2286_vm11 = vweird.f32 %v5713_v30  ;;  %v2546_v49 = vsel %vm6075_vm1, %v2545_v43, %v2541_v32  ;;  %v2241_v9 = vsub.f32 1.0, %v2240_v23  ;;  %v6187_v24 = vpop.eup %3684  ;;  %v6199_v32 = vpop.xlane.xlu0 %1559 }
 0x3e1   :  { %v6182_v54 = vor.u32 1.1754944e-38, %v2250_v57  ;;  %v2136_v26 = vand.u32 2147483647, %v6042_v38  ;;  %vm2132_vm6 = vweird.f32 %v6042_v38  ;;  %v2521_v40 = vsub.f32 1.0, %v2520_v6  ;;  %vm6313_vm13 = vmor %vm2286_vm11, %vm2287_vm10 }
 0x3e2   :  { %v2594_v41 = vmul.f32 %v7291_v35, %v2322_v39  ;;  %v2602_v29 = vmul.f32 %v7292_v60, %v2434_v17  ;;  %v2130_v43 = vmul.f32 %v6084_v14, %v2129_v63  ;;  %v2528_v33 = vand.u32 2147483647, %v6051_v53  ;;  %v6201_v6 = vpop.eup %3686  ;;  %v7295_v63 = vld [vmem:[#allocation15_spill] sm:$0xff]  ;;  %v7352_v35 = vld [vmem:[#allocation25_spill] sm:$0xff] }
 0x3e3   :  { %7290 = vst [vmem:[#allocation65_spill] sm:$0xff] %v6182_v54  ;;  %v2530_v23 = vand.u32 2147483648, %v6051_v53  ;;  %v2226_v57 = vmul.f32 %v6187_v24, %v6082_v19  ;;  %vm2133_vm12 = vweird.f32 %v6084_v14  ;;  %v6213_v39 = vor.u32 1.1754944e-38, %v2138_v13 }
 0x3e4   :  { %3387 = vmatpush.xpose.msk.msrb.mxu1 %vm7010_vm2, %v2594_v41  ;;  %3396 = vmatpush.xpose.msk.msra.mxu2 %vm7010_vm2, %v2602_v29  ;;  %v2610_v60 = vmul.f32 %v7295_v63, %v2546_v49  ;;  %3690 = vrcp.f32 %v6185_v37  ;;  %v7296_v45 = vand.u32 2147483647, %v5713_v30  ;;  %v2242_v13 = vmul.f32 %v6091_v12, %v2241_v9  ;;  %vm6334_vm11 = vmor %vm2132_vm6, %vm2133_vm12  ;;  %v7382_v49 = vld [vmem:[#allocation32_spill] sm:$0xff] }
 0x3e5   :  { %vm6237_vm1 = vcmp.eq.f32.partialorder %v2136_v26, 8.507059e+37  ;;  %v2227_v41 = vsub.f32 1.0, %v2226_v57  ;;  %v2236_v63 = vand.u32 2147483648, %v6082_v19  ;;  %v6244_v54 = vpop.eup %3688  ;;  %v2522_v11 = vmul.f32 %v6125_v44, %v2521_v40  ;;  %v7364_v57 = vld [vmem:[#allocation36_spill] sm:$0xff] }
 0x3e6   :  { %vm6224_vm0 = vcmp.eq.f32.partialorder %v7296_v45, 8.507059e+37  ;;  %v2212_v45 = vmul.f32 %v6201_v6, %v6123_v46  ;;  %3405 = vmatpush.xpose.msk.msra.mxu3 %vm7010_vm2, %v2610_v60  ;;  %v2303_v9 = vsel %vm6208_vm9, %v5922_v20, %v6059_v7  ;;  %v2415_v26 = vsel %vm6232_vm7, %v5995_v28, %v6162_v25  ;;  %v7404_v20 = vld [vmem:[#allocation33_spill] sm:$0xff] }
 0x3e7   :  { %3692 = vrcp.f32 %v6199_v32  ;;  %v7303_v40 = vand.u32 2147483647, %v5752_v18  ;;  %v2131_v17 = vadd.f32 %v6084_v14, %v2130_v43  ;;  %vm6269_vm8 = vcmp.eq.f32.partialorder %v2528_v33, 8.507059e+37 }
 0x3e8   :  { %v6273_v7 = vor.u32 1.1754944e-38, %v2530_v23  ;;  %v2324_v28 = vmul.f32 %v6244_v54, %v6106_v21  ;;  %v2228_v25 = vmul.f32 %v6187_v24, %v2227_v41  ;;  %v2213_v60 = vsub.f32 1.0, %v2212_v45 }
 0x3e9   :  { %vm6263_vm5 = vcmp.eq.f32.partialorder %v7303_v40, 8.507059e+37  ;;  %v2308_v43 = vsel %vm6157_vm3, %v6022_v42, %v2303_v9  ;;  %v2420_v33 = vsel %vm6166_vm14, %v6046_v0, %v2415_v26  ;;  %v7308_v23 = vand.u32 2147483647, %v5542_v58 }
 0x3ea   :  { %v7311_v40 = vand.u32 2147483647, %v5534_v56  ;;  %v6300_v42 = vadd.f32 %v6091_v12, %v2242_v13  ;;  %v2593_v45 = vmul.f32 %v7314_v4, %v2308_v43  ;;  %v6306_v9 = vpop.eup %3690  ;;  %v7317_v13 = vand.u32 2147483647, %v5890_v59 }
 0x3eb   :  { %vm6289_vm9 = vcmp.eq.f32.partialorder %v7308_v23, 8.507059e+37  ;;  %v2523_v43 = vadd.f32 %v6125_v44, %v2522_v11  ;;  %v2601_v30 = vmul.f32 %v7321_v52, %v2420_v33  ;;  %v2100_v11 = vmul.f32 %v6306_v9, %v6185_v37  ;;  %v7420_v52 = vld [vmem:[#allocation29_spill] sm:$0xff] }
 0x3ec   :  { %vm6295_vm7 = vcmp.eq.f32.partialorder %v7311_v40, 8.507059e+37  ;;  %vm6320_vm4 = vcmp.eq.f32.partialorder %v7317_v13, 8.507059e+37  ;;  %v6325_v40 = vor.u32 1.1754944e-38, %v2236_v63  ;;  %v2325_v13 = vsub.f32 1.0, %v2324_v28  ;;  %3388 = vmatpush.xpose.msk.msrb.mxu1 %vm7010_vm2, %v2593_v45  ;;  %v7358_v28 = vld [vmem:[#allocation52_spill] sm:$0xff] }
 0x3ed   :  { %v2108_v63 = vand.u32 2147483647, %v6185_v37  ;;  %v6343_v33 = vpop.eup %3692  ;;  %v7324_v38 = vand.u32 2147483647, %v5245_v15  ;;  %vm7327_vm10 = vweird.f32 %v5752_v18  ;;  %v6362_v45 = vadd.f32 %v6187_v24, %v2228_v25  ;;  %3397 = vmatpush.xpose.msk.msra.mxu2 %vm7010_vm2, %v2601_v30 }
 0x3ee   :  { %7320 = vst [vmem:[#allocation34_spill] sm:$0xff] %v6325_v40  ;;  %vm6357_vm3 = vmor %vm7327_vm10, %vm2399_vm15  ;;  %v6365_v4 = vmul.f32 %v6201_v6, %v2213_v60  ;;  %v2289_v18 = vsel %vm6313_vm13, %v5845_v3, %v5988_v51  ;;  %v7330_v40 = vand.u32 2147483647, %v5316_v27  ;;  %v7331_v21 = vmov 0 }
 0x3ef   :  { %vm6348_vm6 = vcmp.eq.f32.partialorder %v7324_v38, 8.507059e+37  ;;  %v2135_v38 = vsel %vm6334_vm11, %v6084_v14, %v2131_v17  ;;  %v7333_v25 = vand.u32 2147483647, %v5816_v48  ;;  %v7334_v60 = vmov 0  ;;  %v7360_v14 = vld [vmem:[#allocation47_spill] sm:$0xff] }
 0x3f0   :  { %vm6377_vm15 = vcmp.eq.f32.partialorder %v7330_v40, 8.507059e+37  ;;  %vm7336_vm12 = vweird.f32 %v6125_v44  ;;  %vm7337_vm11 = vweird.f32 %v6051_v53  ;;  %v2101_v3 = vsub.f32 1.0, %v2100_v11 }
 0x3f1   :  { %v7332_v21 = vsel %vm6377_vm15, 4294967295, %v7331_v21  ;;  %vm6383_vm10 = vcmp.eq.f32.partialorder %v7333_v25, 8.507059e+37  ;;  %vm6391_vm14 = vmor %vm7337_vm11, %vm7336_vm12  ;;  %v2114_v51 = vmul.f32 %v6343_v33, %v6199_v32  ;;  %v2122_v17 = vand.u32 2147483647, %v6199_v32 }
 0x3f2   :  { %v7335_v60 = vsel %vm6383_vm10, 4294967295, %v7334_v60  ;;  %v2124_v0 = vand.u32 2147483648, %v6199_v32  ;;  %vm7340_vm10 = vweird.f32 %v5680_v36  ;;  %vm7341_vm15 = vweird.f32 %v5542_v58 }
 0x3f3   :  { %vm6405_vm12 = vmor %vm7341_vm15, %vm7340_vm10  ;;  %v7344_v26 = vand.u32 2147483647, %v6026_v31  ;;  %v2140_v30 = vsel %vm6237_vm1, %v6213_v39, %v2135_v38  ;;  %v2294_v58 = vsel %vm6224_vm0, %v5936_v47, %v2289_v18  ;;  %v2401_v11 = vsel %vm6357_vm3, %v5808_v2, %v5940_v34  ;;  %v7351_v34 = vld [vmem:[#allocation58_spill] sm:$0xff]  ;;  %v7359_v18 = vld [vmem:[#allocation49_spill] sm:$0xff] }
 0x3f4   :  { %v2527_v25 = vsel %vm6391_vm14, %v6125_v44, %v2523_v43  ;;  %vm7347_vm15 = vweird.f32 %v5746_v22  ;;  %vm7348_vm10 = vweird.f32 %v5534_v56  ;;  %v6440_v47 = vmul.f32 %v6244_v54, %v2325_v13  ;;  %v7357_v43 = vld [vmem:[#allocation30_spill] sm:$0xff] }
 0x3f5   :  { %vm6412_vm13 = vcmp.eq.f32.partialorder %v7344_v26, 8.507059e+37  ;;  %vm6433_vm11 = vmor %vm7348_vm10, %vm7347_vm15  ;;  %v2115_v2 = vsub.f32 1.0, %v2114_v51  ;;  %v2581_v39 = vmul.f32 %v7351_v34, %v2140_v30  ;;  %v2592_v44 = vmul.f32 %v7352_v35, %v2294_v58  ;;  %v7376_v58 = vld [vmem:[#allocation21_spill] sm:$0xff]  ;;  %v7383_v34 = vld [vmem:[#allocation39_spill] sm:$0xff] }
 0x3f6   :  { %vm7353_vm3 = vweird.f32 %v5391_v55  ;;  %vm7354_vm14 = vweird.f32 %v5245_v15  ;;  %v2406_v13 = vsel %vm6263_vm5, %v7358_v28, %v2401_v11  ;;  %v2532_v38 = vsel %vm6269_vm8, %v6273_v7, %v2527_v25  ;;  %v7371_v7 = vld [vmem:[#allocation60_spill] sm:$0xff]  ;;  %v7461_v30 = vld [vmem:[#allocation45_spill] sm:$0xff] }
 0x3f7   :  { %vm6448_vm15 = vmor %vm7354_vm14, %vm7353_vm3  ;;  %v2275_v15 = vsel %vm6433_vm11, %v5746_v22, %v7359_v18  ;;  %v2387_v51 = vsel %vm6405_vm12, %v5680_v36, %v7360_v14  ;;  %v7361_v26 = vand.u32 2147483647, %v5163_v50  ;;  %vm7365_vm8 = vweird.f32 %v6031_v1  ;;  %v7445_v14 = vld [vmem:[#allocation46_spill] sm:$0xff]  ;;  %v7468_v11 = vld [vmem:[#allocation64_spill] sm:$0xff] }
 0x3f8   :  { %vm7366_vm14 = vweird.f32 %v5890_v59  ;;  %v2102_v36 = vmul.f32 %v6306_v9, %v2101_v3  ;;  %v2116_v22 = vmul.f32 %v6343_v33, %v2115_v2  ;;  %vm7369_vm1 = vcmask 523264   ;;  %v7472_v25 = vld [vmem:[#allocation37_spill] sm:$0xff] }
 0x3f9   :  { %vm6470_vm3 = vcmp.eq.f32.partialorder %v7361_v26, 8.507059e+37  ;;  %vm6479_vm10 = vmor %vm7366_vm14, %vm7365_vm8  ;;  %3383 = vmatpush.xpose.msk.msra.mxu0 %vm7369_vm1, %v2581_v39  ;;  %v2600_v53 = vmul.f32 %v7371_v7, %v2406_v13  ;;  %vm7372_vm5 = vweird.f32 %v5536_v5  ;;  %vm7373_vm8 = vweird.f32 %v5316_v27  ;;  %v7384_v39 = vld [vmem:[#allocation8_spill] sm:$0xff]  ;;  %v7454_v7 = vld [vmem:[#allocation18_spill] sm:$0xff] }
 0x3fa   :  { %vm7370_vm0 = vmmov %vm7369_vm1  ;;  %v7377_v3 = vand.u32 2147483647, %v5660_v10  ;;  %vm6505_vm1 = vcmp.eq.f32.partialorder %v2108_v63, 8.507059e+37  ;;  %v2609_v2 = vmul.f32 %v7382_v49, %v2532_v38  ;;  %v2280_v27 = vsel %vm6295_vm7, %v7383_v34, %v2275_v15  ;;  %v7395_v38 = vld [vmem:[#allocation51_spill] sm:$0xff]  ;;  %v7396_v15 = vld [vmem:[#allocation26_spill] sm:$0xff]  ;;  %v6591_v49 = vpop.permute.xlu0 %2963 }
 0x3fb   :  { %3389 = vmatpush.xpose.msk.msrb.mxu1 %vm7370_vm0, %v2592_v44  ;;  %vm6494_vm14 = vmor %vm7373_vm8, %vm7372_vm5  ;;  %v2392_v35 = vsel %vm6289_vm9, %v7384_v39, %v2387_v51  ;;  %v7385_v44 = vld [vmem:[#allocation41_spill] sm:$0xff]  ;;  %vm7386_vm0 = vweird.f32 %v5898_v61  ;;  %vm7387_vm5 = vweird.f32 %v5816_v48  ;;  %v7390_v41 = vand.u32 2147483647, %v6082_v19  ;;  %v7403_v26 = vld [vmem:[#allocation28_spill] sm:$0xff] }
 0x3fc   :  { %vm6501_vm12 = vcmp.eq.f32.partialorder %v7377_v3, 8.507059e+37  ;;  %v2513_v28 = vsel %vm6479_vm10, %v6031_v1, %v7385_v44  ;;  %vm6524_vm8 = vmor %vm7387_vm5, %vm7386_vm0  ;;  %v7391_v13 = vmov 0  ;;  %v2117_v29 = vadd.f32 %v6343_v33, %v2116_v22  ;;  %v7394_v1 = vld [vmem:[#allocation54_spill] sm:$0xff]  ;;  %v7405_v22 = vld [vmem:[#allocation12_spill] sm:$0xff] }
 0x3fd   :  { %vm6530_vm7 = vcmp.eq.f32.partialorder %v7390_v41, 8.507059e+37  ;;  %vm2119_vm10 = vweird.f32 %v6343_v33  ;;  %vm7393_vm11 = vcmask 523264   ;;  %v2591_v48 = vmul.f32 %v7394_v1, %v2280_v27  ;;  %v7421_v39 = vld [vmem:[#allocation9_spill] sm:$0xff]  ;;  %v7432_v63 = vld [vmem:[#allocation19_spill] sm:$0xff]  ;;  %v7433_v41 = vld [vmem:[#allocation20_spill] sm:$0xff] }
 0x3fe   :  { %v7392_v13 = vsel %vm6530_vm7, 4294967295, %v7391_v13  ;;  %3398 = vmatpush.xpose.msk.msra.mxu2 %vm7393_vm11, %v2600_v53  ;;  %v2518_v18 = vsel %vm6320_vm4, %v7395_v38, %v2513_v28  ;;  %vm2455_vm0 = vweird.f32 %v7396_v15  ;;  %vm7397_vm5 = vweird.f32 %v6091_v12  ;;  %3406 = vmatpush.xpose.msk.msra.mxu3 %vm7393_vm11, %v2609_v2  ;;  %v7414_v53 = vld [vmem:[#allocation50_spill] sm:$0xff]  ;;  %v7416_v2 = vld [vmem:[#allocation16_spill] sm:$0xff]  ;;  %v7431_v28 = vld [vmem:[#allocation65_spill] sm:$0xff] }
 0x3ff   :  { %vm7398_vm2 = vweird.f32 %v6026_v31  ;;  %vm6551_vm9 = vcmp.eq.f32.partialorder %v2122_v17, 8.507059e+37  ;;  %v2261_v23 = vsel %vm6448_vm15, %v5391_v55, %v7403_v26  ;;  %v2373_v31 = vsel %vm6494_vm14, %v5536_v5, %v7404_v20  ;;  %vm7413_vm14 = vmmov %vm7393_vm11  ;;  %v7440_v38 = vld [vmem:[#allocation44_spill] sm:$0xff]  ;;  %v7452_v20 = vld [vmem:[#allocation63_spill] sm:$0xff] }
 0x400   :  { %vm6547_vm7 = vmor %vm7398_vm2, %vm7397_vm5  ;;  %v2499_v17 = vsel %vm6524_vm8, %v5898_v61, %v7405_v22  ;;  %vm7406_vm2 = vweird.f32 %v5298_v16  ;;  %vm7407_vm4 = vweird.f32 %v5163_v50  ;;  %v7410_v55 = vand.u32 2147483647, %v7364_v57  ;;  %3390 = vmatpush.xpose.msk.msrb.mxu1 %vm7413_vm14, %v2591_v48  ;;  %v7415_v61 = vld [vmem:[#allocation27_spill] sm:$0xff]  ;;  %v7453_v22 = vld [vmem:[#allocation62_spill] sm:$0xff] }
 0x401   :  { %vm6572_vm5 = vmor %vm7407_vm4, %vm7406_vm2  ;;  %v2125_v5 = vor.u32 1.1754944e-38, %v2124_v0  ;;  %v2599_v59 = vmul.f32 %v7414_v53, %v2392_v35  ;;  %v2266_v3 = vsel %vm6348_vm6, %v7415_v61, %v2261_v23  ;;  %v2247_v50 = vsel %vm6547_vm7, %v6091_v12, %v6300_v42  ;;  %v7423_v42 = vld [vmem:[#allocation55_spill] sm:$0xff]  ;;  %v7474_v0 = vld [vmem:[#allocation40_spill] sm:$0xff] }
 0x402   :  { %vm6578_vm15 = vcmp.eq.f32.partialorder %v7410_v55, 8.507059e+37  ;;  %v2103_v34 = vadd.f32 %v6306_v9, %v2102_v36  ;;  %vm7417_vm11 = vweird.f32 %v6199_v32  ;;  %v2608_v27 = vmul.f32 %v7420_v52, %v2518_v18  ;;  %v7430_v36 = vld [vmem:[#allocation42_spill] sm:$0xff]  ;;  %v7480_v32 = vld [vmem:[#allocation53_spill] sm:$0xff]  ;;  %v2804_v1 = vpop.permute.xlu0 %2803 }
 0x403   :  { %vm6599_vm2 = vmor %vm7417_vm11, %vm2119_vm10  ;;  %vm7422_vm6 = vnez %v7332_v21  ;;  %vm7424_vm7 = vnez %v7335_v60  ;;  %vm7425_vm4 = vweird.f32 %v5737_v62  ;;  %vm7426_vm14 = vweird.f32 %v5660_v10 }
 0x404   :  { %v2378_v12 = vsel %vm7422_vm6, %v7421_v39, %v2373_v31  ;;  %v2504_v35 = vsel %vm7424_vm7, %v7423_v42, %v2499_v17  ;;  %vm6614_vm8 = vmor %vm7426_vm14, %vm7425_vm4  ;;  %vm7429_vm10 = vcmask 523264   ;;  %v2590_v44 = vmul.f32 %v7430_v36, %v2266_v3  ;;  %v7470_v3 = vld [vmem:[#allocation34_spill] sm:$0xff] }
 0x405   :  { %3399 = vmatpush.xpose.msk.msra.mxu2 %vm7429_vm10, %v2599_v59  ;;  %v2252_v21 = vsel %vm6412_vm13, %v7431_v28, %v2247_v50  ;;  %v2359_v60 = vsel %vm6572_vm5, %v5298_v16, %v7432_v63  ;;  %v2121_v10 = vsel %vm6599_vm2, %v6343_v33, %v2117_v29  ;;  %vm2441_vm11 = vweird.f32 %v7433_v41  ;;  %vm7439_vm13 = vmmov %vm7429_vm10  ;;  %v2655_v29 = vpop.f32.mrf.mxu2 }
 0x406   :  { %vm7434_vm6 = vweird.f32 %v6187_v24  ;;  %vm7435_vm7 = vweird.f32 %v6082_v19  ;;  %v2215_v40 = vadd.f32 %v6201_v6, %v6365_v4  ;;  %v7438_v48 = vand.u32 2147483648, %v6185_v37  ;;  %3407 = vmatpush.xpose.msk.msra.mxu3 %vm7439_vm13, %v2608_v27  ;;  %3391 = vmatpush.xpose.msk.msrb.mxu1 %vm7429_vm10, %v2590_v44  ;;  %vm7455_vm13 = vmmov %vm7429_vm10  ;;  %v7475_v27 = vld [vmem:[#allocation59_spill] sm:$0xff] }
 0x407   :  { %vm6635_vm4 = vmor %vm7435_vm7, %vm7434_vm6  ;;  %v2485_v33 = vsel %vm6614_vm8, %v5737_v62, %v7440_v38  ;;  %v2126_v19 = vsel %vm6551_vm9, %v2125_v5, %v2121_v10  ;;  %v2327_v18 = vadd.f32 %v6244_v54, %v6440_v47  ;;  %vm7441_vm5 = vweird.f32 %v6306_v9  ;;  %v7446_v62 = vld [vmem:[#allocation56_spill] sm:$0xff]  ;;  %v7447_v47 = vld [vmem:[#allocation23_spill] sm:$0xff]  ;;  %2658 = vst.msk [vmem:[#allocation3] sm:$0xff] %vm7455_vm13, %v2655_v29 }
 0x408   :  { %v2111_v16 = vor.u32 1.1754944e-38, %v7438_v48  ;;  %vm7442_vm2 = vweird.f32 %v6185_v37  ;;  %v2598_v26 = vmul.f32 %v7445_v14, %v2378_v12  ;;  %v2580_v23 = vmul.f32 %v7446_v62, %v2126_v19  ;;  %v7463_v5 = vld [vmem:[#allocation24_spill] sm:$0xff]  ;;  %v7481_v44 = vld [vmem:[#allocation11_spill] sm:$0xff] }
 0x409   :  { %vm6656_vm14 = vmor %vm7442_vm2, %vm7441_vm5  ;;  %v2233_v51 = vsel %vm6635_vm4, %v6187_v24, %v6362_v45  ;;  %vm2440_vm9 = vweird.f32 %v7447_v47  ;;  %vm7448_vm8 = vweird.f32 %v5855_v8  ;;  %vm7449_vm6 = vweird.f32 %v7364_v57  ;;  %v7492_v38 = vld [vmem:[#allocation7_spill] sm:$0xff]  ;;  %v7497_v62 = vld [vmem:[#allocation48_spill] sm:$0xff]  ;;  %v2911_v45 = vpop.permute.xlu2 %2910 }
 0x40a   :  { %vm6672_vm7 = vmor %vm7449_vm6, %vm7448_vm8  ;;  %v2607_v31 = vmul.f32 %v7452_v20, %v2504_v35  ;;  %v2589_v17 = vmul.f32 %v7453_v22, %v2252_v21  ;;  %v2364_v55 = vsel %vm6470_vm3, %v7454_v7, %v2359_v60  ;;  %v2107_v24 = vsel %vm6656_vm14, %v6306_v9, %v2103_v34  ;;  %v7487_v21 = vld [vmem:[#allocation61_spill] sm:$0xff]  ;;  %v7488_v60 = vld [vmem:[#allocation10_spill] sm:$0xff] }
 0x40b   :  { %vm7456_vm4 = vweird.f32 %v7357_v43  ;;  %vm7457_vm5 = vweird.f32 %v7376_v58  ;;  %vm2329_vm10 = vweird.f32 %v6244_v54  ;;  %vm7460_vm8 = vmmov %vm7455_vm13  ;;  %v2490_v57 = vsel %vm6501_vm12, %v7461_v30, %v2485_v33  ;;  %v7503_v22 = vld [vmem:[#allocation14_spill] sm:$0xff]  ;;  %v7504_v7 = vld [vmem:[#allocation43_spill] sm:$0xff] }
 0x40c   :  { %vm6689_vm2 = vmor %vm7457_vm5, %vm7456_vm4  ;;  %3400 = vmatpush.xpose.msk.msra.mxu2 %vm7460_vm8, %v2598_v26  ;;  %v2345_v9 = vsel %vm6672_vm7, %v5855_v8, %v7463_v5  ;;  %v2112_v53 = vsel %vm6505_vm1, %v2111_v16, %v2107_v24  ;;  %vm7464_vm14 = vweird.f32 %v6201_v6  ;;  %vm7465_vm6 = vweird.f32 %v6123_v46  ;;  %v2858_v24 = vpop.permute.xlu1 %2857 }
 0x40d   :  { %vm7462_vm3 = vmmov %vm7460_vm8  ;;  %vm2328_vm12 = vweird.f32 %v7468_v11  ;;  %v2334_v61 = vand.u32 2147483648, %v7468_v11  ;;  %vm7471_vm7 = vnez %v7392_v13  ;;  %v2471_v50 = vsel %vm6689_vm2, %v7357_v43, %v7472_v25  ;;  %v3029_v25 = vld [vmem:[%s6918_s3 + $0x8] sm:$0xff]  ;;  %v3028_v43 = vld [vmem:[%s6918_s3] sm:$0xff] }
 0x40e   :  { %3384 = vmatpush.xpose.msk.msra.mxu0 %vm7462_vm3, %v2580_v23  ;;  %vm6709_vm13 = vmor %vm7465_vm6, %vm7464_vm14  ;;  %v2238_v8 = vsel %vm7471_vm7, %v7470_v3, %v2233_v51  ;;  %v2332_v34 = vand.u32 2147483647, %v7468_v11  ;;  %v2597_v52 = vmul.f32 %v7474_v0, %v2364_v55  ;;  %v2579_v39 = vmul.f32 %v7475_v27, %v2112_v53  ;;  %v6814_v27 = vld [vmem:[%s6915_s0 + $0x18] sm:$0xff] }
 0x40f   :  { %vm7469_vm4 = vmmov %vm7462_vm3  ;;  %v2219_v12 = vsel %vm6709_vm13, %v6201_v6, %v2215_v40  ;;  %v7476_v13 = vand.u32 2147483647, %v7376_v58  ;;  %v7477_v42 = vand.u32 2147483648, %v6123_v46  ;;  %v2606_v36 = vmul.f32 %v7480_v32, %v2490_v57  ;;  %v7490_v40 = vld [vmem:[#allocation17_spill] sm:$0xff]  ;;  %v3180_v32 = vld [vmem:[%s6919_s4] sm:$0xff] }
 0x410   :  { %3408 = vmatpush.xpose.msk.msra.mxu3 %vm7469_vm4, %v2607_v31  ;;  %vm7473_vm1 = vmmov %vm7462_vm3  ;;  %v2350_v28 = vsel %vm6578_vm15, %v7481_v44, %v2345_v9  ;;  %vm7482_vm8 = vweird.f32 %v7416_v2  ;;  %v7485_v58 = vand.u32 2147483647, %v6123_v46  ;;  %v2588_v63 = vmul.f32 %v7487_v21, %v2238_v8  ;;  %v6841_v6 = vld [vmem:[%s6915_s0] sm:$0xff] }
 0x411   :  { %3392 = vmatpush.xpose.msk.msrb.mxu1 %vm7473_vm1, %v2589_v17  ;;  %vm2473_vm5 = vcmp.eq.f32.partialorder %v7476_v13, 8.507059e+37  ;;  %v2223_v35 = vor.u32 1.1754944e-38, %v7477_v42  ;;  %vm6736_vm2 = vmor %vm2328_vm12, %vm2329_vm10  ;;  %v2439_v48 = vadd.f32 %v7433_v41, %v7490_v40  ;;  %v2335_v16 = vor.u32 1.1754944e-38, %v2334_v61  ;;  %v6820_v13 = vld [vmem:[%s6915_s0 + $0x10] sm:$0xff]  ;;  %v3016_v21 = vld [vmem:[%s6917_s2] sm:$0xff] }
 0x412   :  { %vm6748_vm3 = vmor %vm7482_vm8, %vm2455_vm0  ;;  %vm2221_vm10 = vcmp.eq.f32.partialorder %v7485_v58, 8.507059e+37  ;;  %v2476_v10 = vsel %vm2473_vm5, %v7488_v60, %v2471_v50  ;;  %v2331_v56 = vsel %vm6736_vm2, %v6244_v54, %v2327_v18  ;;  %v2446_v19 = vand.u32 2147483648, %v7447_v47  ;;  %v7495_v54 = vld [vmem:[#allocation22_spill] sm:$0xff] }
 0x413   :  { %vm7486_vm14 = vmmov %vm7473_vm1  ;;  %v2224_v46 = vsel %vm2221_vm10, %v2223_v35, %v2219_v12  ;;  %v2457_v33 = vsel %vm6748_vm3, %v7396_v15, %v7492_v38  ;;  %v7493_v29 = vand.u32 2147483648, %v7416_v2  ;;  %vm2333_vm15 = vcmp.eq.f32.partialorder %v2332_v34, 8.507059e+37  ;;  %v7500_v15 = vld [vmem:[#allocation57_spill] sm:$0xff]  ;;  %v3031_v60 = vld [vmem:[%s6918_s3 + $0x18] sm:$0xff] }
 0x414   :  { %3401 = vmatpush.xpose.msk.msra.mxu2 %vm7486_vm14, %v2597_v52  ;;  %vm7489_vm6 = vmmov %vm7473_vm1  ;;  %v2596_v18 = vmul.f32 %v7495_v54, %v2350_v28  ;;  %v2444_v14 = vand.u32 2147483647, %v7447_v47  ;;  %v7496_v26 = vand.u32 2147483647, %v7416_v2  ;;  %v2605_v23 = vmul.f32 %v7497_v62, %v2476_v10  ;;  %v3030_v35 = vld [vmem:[%s6918_s3 + $0x10] sm:$0xff]  ;;  %v3017_v10 = vld [vmem:[%s6917_s2 + $0x8] sm:$0xff] }
 0x415   :  { %3385 = vmatpush.xpose.msk.msra.mxu0 %vm7489_vm6, %v2579_v39  ;;  %vm7491_vm0 = vmmov %vm7473_vm1  ;;  %v2461_v4 = vor.u32 1.1754944e-38, %v7493_v29  ;;  %v2336_v51 = vsel %vm2333_vm15, %v2335_v16, %v2331_v56  ;;  %v2587_v37 = vmul.f32 %v7500_v15, %v2224_v46  ;;  %v2447_v31 = vor.u32 1.1754944e-38, %v2446_v19  ;;  %v3018_v56 = vld [vmem:[%s6917_s2 + $0x10] sm:$0xff]  ;;  %v3183_v62 = vld [vmem:[%s6919_s4 + $0x18] sm:$0xff] }
 0x416   :  { %3409 = vmatpush.xpose.msk.msra.mxu3 %vm7491_vm0, %v2606_v36  ;;  %vm7494_vm13 = vmmov %vm7491_vm0  ;;  %vm2459_vm12 = vcmp.eq.f32.partialorder %v7496_v26, 8.507059e+37  ;;  %v2595_v17 = vmul.f32 %v7503_v22, %v2336_v51  ;;  %vm2445_vm8 = vcmp.eq.f32.partialorder %v2444_v14, 8.507059e+37  ;;  %v3737_v50 = vmov 0   ;;  %v6835_v36 = vld [vmem:[%s6915_s0 + $0x8] sm:$0xff]  ;;  %v3182_v26 = vld [vmem:[%s6919_s4 + $0x10] sm:$0xff] }
 0x417   :  { %3393 = vmatpush.xpose.msk.msrb.mxu1 %vm7494_vm13, %v2588_v63  ;;  %vm7498_vm4 = vmmov %vm7491_vm0  ;;  %v2462_v20 = vsel %vm2459_vm12, %v2461_v4, %v2457_v33  ;;  %vm2855_vm12 = vcmask 1048064   ;;  %3436 = vset.pattern.permute.xlu1 %v3737_v50  ;;  %v3181_v63 = vld [vmem:[%s6919_s4 + $0x8] sm:$0xff]  ;;  %v3738_v51 = vmov 128.0  }
 0x418   :  { %3386 = vmatmul.msk.f32.vlgmr.msra.gmra.mxu0 %vm7498_vm4, %v2804_v1  ;;  %vm2442_vm7 = vmor %vm2440_vm9, %vm2441_vm11  ;;  %v2604_v55 = vmul.f32 %v7504_v7, %v2462_v20  ;;  %3437 = vset.pattern.permute.xlu0 %v3737_v50  ;;  %vm7514_vm4 = vcmask 261120   ;;  %v3019_v1 = vld [vmem:[%s6917_s2 + $0x18] sm:$0xff]  ;;  %3694 = vrcp.f32 %v3738_v51 }
 0x419   :  { %vm7499_vm1 = vmmov %vm7491_vm0  ;;  %v2443_v2 = vsel %vm2442_vm7, %v7433_v41, %v2439_v48  ;;  %v7509_v41 = vld [vmem:[#allocation38_spill] sm:$0xff]  ;;  %3435 = vset.pattern.permute.xlu2 %v3737_v50  ;;  %v3210_v50 = vld [vmem:[%s6920_s5 + $0x10] sm:$0xff] }
 0x41a   :  { %3402 = vmatpush.xpose.msk.msra.mxu2 %vm7499_vm1, %v2596_v18  ;;  %vm7501_vm5 = vmmov %vm7491_vm0  ;;  %v2448_v47 = vsel %vm2445_vm8, %v2447_v31, %v2443_v2  ;;  %v2703_v57 = vpop.f32.mrf.mxu3 }
 0x41b   :  { %3410 = vmatpush.xpose.msk.msra.mxu3 %vm7501_vm5, %v2605_v23  ;;  %vm7502_vm2 = vmmov %vm7491_vm0  ;;  %v2603_v30 = vmul.f32 %v7509_v41, %v2448_v47  ;;  %2706 = vst.msk [vmem:[#allocation3 + $0x8] sm:$0xff] %vm7491_vm0, %v2703_v57  ;;  %v3208_v23 = vld [vmem:[%s6920_s5] sm:$0xff] }
 0x41c   :  { %3394 = vmatpush.xpose.msk.msrb.mxu1 %vm7502_vm2, %v2587_v37  ;;  %vm7505_vm3 = vmmov %vm7491_vm0 }
 0x41d   :  { %vm7506_vm11 = vmmov %vm7491_vm0 }
 0x41e   :  { %3403 = vmatpush.xpose.msk.msra.mxu2 %vm7505_vm3, %v2595_v17  ;;  %vm7507_vm9 = vmmov %vm7491_vm0  ;;  %v3695_v15 = vpop.eup %3694 }
 0x41f   :  { %3411 = vmatpush.xpose.msk.msra.mxu3 %vm7506_vm11, %v2604_v55  ;;  %3395 = vmatmul.msk.f32.vlgmr.msrb.gmra.mxu1 %vm7507_vm9, %v2858_v24  ;;  %vm7508_vm10 = vmmov %vm7491_vm0  ;;  %v3102_v37 = vmul.f32 128.0, %v3695_v15  ;;  %vm3106_vm2 = vweird.f32 %v3695_v15 }
 0x420   :  { %vm7510_vm14 = vmmov %vm7491_vm0 }
 0x421   :  { %3404 = vmatmul.msk.f32.vlgmr.msra.gmra.mxu2 %vm7508_vm10, %v2911_v45  ;;  %vm7511_vm6 = vmmov %vm7491_vm0  ;;  %v3103_v20 = vsub.f32 1.0, %v3102_v37 }
 0x422   :  { %vm7512_vm15 = vmmov %vm7491_vm0 }
 0x423   :  { %3412 = vmatpush.xpose.msk.msra.mxu3 %vm7510_vm14, %v2603_v30  ;;  %vm7513_vm13 = vmmov %vm7491_vm0  ;;  %v3104_v2 = vmul.f32 %v3695_v15, %v3103_v20 }
 0x424   :  { %vm7515_vm7 = vmmov %vm7514_vm4 }
 0x425   :  { %vm7516_vm1 = vmmov %vm7514_vm4  ;;  %v3105_v22 = vadd.f32 %v3695_v15, %v3104_v2 }
 0x426   :  { %3413 = vmatmul.msk.f32.vlgmr.msra.gmra.mxu3 %vm7511_vm6, %v6591_v49  ;;  %vm7517_vm5 = vmmov %vm7516_vm1 }
 0x427   :  { %v3107_v17 = vsel %vm3106_vm2, %v3695_v15, %v3105_v22 }
 0x441   :  { %v2799_v5 = vpop.f32.mrf.mxu3 }
 0x442   :  { %2802 = vst.msk [vmem:[#allocation3 + $0x18] sm:$0xff] %vm7512_vm15, %v2799_v5 }
 0x448   :  { %v2751_v9 = vpop.f32.mrf.mxu2 }
 0x449   :  { %2754 = vst.msk [vmem:[#allocation3 + $0x10] sm:$0xff] %vm7513_vm13, %v2751_v9 }
 0x495   :  { %v2848_v61 = vpop.f32.mrf.mxu0 }
 0x49c   :  { %v2902_v53 = vpop.f32.mrf.mxu1 }
 0x49d   :  { %2906 = vrot.lane.b32.xlu1 %v2902_v53, %s3736_s21 }
 0x4a4   :  { %v2955_v59 = vpop.f32.mrf.mxu2 }
 0x4a5   :  { %2959 = vrot.lane.b32.xlu2 %v2955_v59, %s3736_s21  ;;  %3039 = vperm.xlu1 %3436, %v3029_v25   ;;  %v3211_v25 = vld [vmem:[%s6920_s5 + $0x18] sm:$0xff] }
 0x4a9   :  { %v3008_v11 = vpop.f32.mrf.mxu3 }
 0x4aa   :  { %3012 = vrot.lane.b32.xlu0 %v3008_v11, %s3736_s21 }
 0x4ad   :  { %3034 = vperm.xlu2 %3435, %v3028_v43   ;;  %3186 = vperm.xlu1 %3436, %v3180_v32  }
 0x4b2   :  { %2852 = vrot.lane.b32.xlu0 %v2848_v61, %s3736_s21  ;;  %s3741_s21 = smov 8  }
 0x4b5   :  { %3049 = vperm.xlu2 %3435, %v3031_v60  }
 0x4ba   :  { %3044 = vperm.xlu0 %3437, %v3030_v35  }
 0x4c2   :  { %3191 = vperm.xlu0 %3437, %v3181_v63  }
 0x4ff   :  { %v2960_v49 = vpop.permute.xlu2 %2959 }
 0x500   :  { %2962 = vst.msk [vmem:[#allocation3 + $0x10] sm:$0xff] %vm2855_vm12, %v2960_v49 }
 0x507   :  { %v3022_v52 = vld [vmem:[#allocation3 + $0x10] sm:$0xff]  ;;  %v3035_v40 = vpop.permute.xlu2 %3034 }
 0x508   :  { %v3026_v42 = vsub.f32 %v3022_v52, %v6820_v13 }
 0x50f   :  { %v2907_v3 = vpop.permute.xlu1 %2906  ;;  %v3050_v54 = vpop.permute.xlu2 %3049 }
 0x510   :  { %2909 = vst.msk [vmem:[#allocation3 + $0x8] sm:$0xff] %vm2855_vm12, %v2907_v3 }
 0x517   :  { %v3021_v12 = vld [vmem:[#allocation3 + $0x8] sm:$0xff]  ;;  %v3040_v46 = vpop.permute.xlu1 %3039 }
 0x518   :  { %v3025_v44 = vsub.f32 %v3021_v12, %v6835_v36 }
 0x51c   :  { %v3013_v8 = vpop.permute.xlu0 %3012 }
 0x51d   :  { %3015 = vst.msk [vmem:[#allocation3 + $0x18] sm:$0xff] %vm2855_vm12, %v3013_v8 }
 0x51f   :  { %v3187_v31 = vpop.permute.xlu1 %3186 }
 0x524   :  { %v2853_v34 = vpop.permute.xlu0 %2852  ;;  %v3023_v0 = vld [vmem:[#allocation3 + $0x18] sm:$0xff] }
 0x525   :  { %2856 = vst.msk [vmem:[#allocation3] sm:$0xff] %vm2855_vm12, %v2853_v34  ;;  %v3027_v39 = vsub.f32 %v3023_v0, %v6814_v27  ;;  %v3209_v34 = vld [vmem:[%s6920_s5 + $0x8] sm:$0xff]  ;;  %s3739_s5 = smov [#allocation4]  }
 0x526   :  { %s3252_s16 = sshll.u32 %s3739_s5, 4  ;;  %s3253_s16 = int_to_ptr.vmem [resolvable:$true] %s3252_s16 }
 0x527   :  { %3076 = vmatpush.msrb.mxu0 %v3027_v39 }
 0x529   :  { %3077 = vmatpush.msrb.mxu0 %v3026_v42 }
 0x52b   :  { %3078 = vmatpush.msrb.mxu0 %v3025_v44 }
 0x52c   :  { %v3020_v28 = vld [vmem:[#allocation3] sm:$0xff]  ;;  %v3045_v19 = vpop.permute.xlu0 %3044 }
 0x52d   :  { %v3024_v58 = vsub.f32 %v3020_v28, %v6841_v6 }
 0x52f   :  { %3079 = vmatpush.msrb.mxu0 %v3024_v58 }
 0x530   :  { %3414 = vmatmul.msk.f32.vlgmr.msrb.gmra.mxu0 %vm7514_vm4, %v3016_v21 }
 0x534   :  { %v6875_v45 = vpop.permute.xlu0 %3191 }
 0x538   :  { %3415 = vmatmul.msk.f32.gmra.mxu0 %vm7515_vm7, %v3017_v10 }
 0x540   :  { %3416 = vmatmul.msk.f32.gmra.mxu0 %vm7516_vm1, %v3018_v56 }
 0x548   :  { %3417 = vmatmul.msk.f32.gmra.mxu0 %vm7517_vm5, %v3019_v1 }
 0x5ad   :  { %v3081_v48 = vpop.f32.mrf.mxu0 }
 0x5ae   :  { %v3082_v16 = vadd.f32 %v3081_v48, %v3035_v40 }
 0x5b0   :  { %3093 = vadd.xlane.f32.xlu1 %v3082_v16 }
 0x5b5   :  { %v3084_v38 = vpop.f32.mrf.mxu0 }
 0x5b6   :  { %v3085_v33 = vadd.f32 %v3084_v38, %v3040_v46 }
 0x5b8   :  { %3095 = vadd.xlane.f32.xlu2 %v3085_v33 }
 0x5bd   :  { %v3087_v29 = vpop.f32.mrf.mxu0 }
 0x5be   :  { %v3088_v4 = vadd.f32 %v3087_v29, %v3045_v19 }
 0x5c0   :  { %3097 = vadd.xlane.f32.xlu0 %v3088_v4 }
 0x5c5   :  { %v3090_v18 = vpop.f32.mrf.mxu0 }
 0x5c6   :  { %v3091_v14 = vadd.f32 %v3090_v18, %v3050_v54 }
 0x5c8   :  { %3099 = vadd.xlane.f32.xlu1 %v3091_v14 }
 0x5d0   :  { %3196 = vperm.xlu2 %3435, %v3182_v26  }
 0x5d4   :  { %3201 = vperm.xlu0 %3437, %v3183_v62  }
 0x5e1   :  { %3214 = vperm.xlu1 %3436, %v3208_v23  }
 0x623   :  { %v3094_v7 = vpop.xlane.xlu1 %3093 }
 0x624   :  { %v3108_v55 = vmul.f32 %v3107_v17, %v3094_v7 }
 0x626   :  { %v3112_v24 = vsub.f32 %v3082_v16, %v3108_v55 }
 0x628   :  { %v3116_v47 = vmul.f32 %v3112_v24, %v3112_v24 }
 0x62a   :  { %3120 = vadd.xlane.f32.xlu2 %v3116_v47 }
 0x62b   :  { %v3096_v41 = vpop.xlane.xlu2 %3095 }
 0x62c   :  { %v3109_v30 = vmul.f32 %v3107_v17, %v3096_v41 }
 0x62e   :  { %v6877_v57 = vsub.f32 %v3085_v33, %v3109_v30 }
 0x630   :  { %v3117_v5 = vmul.f32 %v6877_v57, %v6877_v57 }
 0x632   :  { %3122 = vadd.xlane.f32.xlu1 %v3117_v5 }
 0x633   :  { %v3098_v9 = vpop.xlane.xlu0 %3097  ;;  %v6898_v0 = vpop.permute.xlu2 %3196 }
 0x634   :  { %v3110_v53 = vmul.f32 %v3107_v17, %v3098_v9 }
 0x636   :  { %v6881_v59 = vsub.f32 %v3088_v4, %v3110_v53 }
 0x638   :  { %v3118_v11 = vmul.f32 %v6881_v59, %v6881_v59 }
 0x63a   :  { %3124 = vadd.xlane.f32.xlu0 %v3118_v11 }
 0x63b   :  { %v3100_v61 = vpop.xlane.xlu1 %3099 }
 0x63c   :  { %v3111_v49 = vmul.f32 %v3107_v17, %v3100_v61 }
 0x63e   :  { %v6885_v3 = vsub.f32 %v3091_v14, %v3111_v49 }
 0x640   :  { %v3119_v8 = vmul.f32 %v6885_v3, %v6885_v3 }
 0x642   :  { %3126 = vadd.xlane.f32.xlu2 %v3119_v8 }
 0x646   :  { %v6900_v35 = vpop.permute.xlu0 %3201 }
 0x64b   :  { %3229 = vperm.xlu1 %3436, %v3211_v25  }
 0x64e   :  { %3224 = vperm.xlu0 %3437, %v3210_v50  }
 0x653   :  { %v3215_v52 = vpop.permute.xlu1 %3214 }
 0x65a   :  { %3219 = vperm.xlu2 %3435, %v3209_v34  }
 0x69d   :  { %v3121_v39 = vpop.xlane.xlu2 %3120 }
 0x69e   :  { %v3128_v12 = vmul.f32 %v3121_v39, %v3107_v17 }
 0x6a0   :  { %v3132_v42 = vadd.f32 1e-05, %v3128_v12 }
 0x6a2   :  { %3696 = vrsqrt.f32 %v3132_v42  ;;  %vm3142_vm3 = vweird.f32 %v3132_v42 }
 0x6a5   :  { %v3123_v43 = vpop.xlane.xlu1 %3122 }
 0x6a6   :  { %v3129_v32 = vmul.f32 %v3123_v43, %v3107_v17 }
 0x6a8   :  { %v3697_v44 = vpop.eup %3696  ;;  %v3133_v28 = vadd.f32 1e-05, %v3129_v32 }
 0x6a9   :  { %v3137_v58 = vmul.f32 %v3697_v44, %v3132_v42  ;;  %vm3143_vm8 = vweird.f32 %v3697_v44 }
 0x6aa   :  { %3698 = vrsqrt.f32 %v3133_v28  ;;  %vm3144_vm11 = vmor %vm3142_vm3, %vm3143_vm8  ;;  %vm3152_vm10 = vweird.f32 %v3133_v28 }
 0x6ab   :  { %v3138_v21 = vmul.f32 %v3697_v44, %v3137_v58 }
 0x6ad   :  { %v3139_v63 = vmul.f32 0.5, %v3138_v21  ;;  %v3125_v60 = vpop.xlane.xlu0 %3124 }
 0x6ae   :  { %v3130_v10 = vmul.f32 %v3125_v60, %v3107_v17 }
 0x6af   :  { %v3140_v56 = vsub.f32 1.5, %v3139_v63 }
 0x6b0   :  { %v3699_v1 = vpop.eup %3698  ;;  %v3134_v40 = vadd.f32 1e-05, %v3130_v10 }
 0x6b1   :  { %v3141_v48 = vmul.f32 %v3697_v44, %v3140_v56  ;;  %v3147_v16 = vmul.f32 %v3699_v1, %v3133_v28  ;;  %vm3153_vm9 = vweird.f32 %v3699_v1 }
 0x6b2   :  { %3700 = vrsqrt.f32 %v3134_v40  ;;  %vm3154_vm14 = vmor %vm3152_vm10, %vm3153_vm9  ;;  %vm3162_vm0 = vweird.f32 %v3134_v40 }
 0x6b3   :  { %v3145_v46 = vsel %vm3144_vm11, %v3697_v44, %v3141_v48  ;;  %v3148_v38 = vmul.f32 %v3699_v1, %v3147_v16 }
 0x6b4   :  { %v3176_v33 = vmul.f32 %v3145_v46, %v3112_v24 }
 0x6b5   :  { %v3149_v19 = vmul.f32 0.5, %v3148_v38  ;;  %v3127_v29 = vpop.xlane.xlu2 %3126 }
 0x6b6   :  { %v3204_v4 = vmul.f32 %v3187_v31, %v3176_v33  ;;  %v3131_v54 = vmul.f32 %v3127_v29, %v3107_v17 }
 0x6b7   :  { %v3150_v18 = vsub.f32 1.5, %v3149_v19 }
 0x6b8   :  { %v3701_v14 = vpop.eup %3700  ;;  %v3232_v26 = vadd.f32 %v3215_v52, %v3204_v4  ;;  %v3135_v62 = vadd.f32 1e-05, %v3131_v54 }
 0x6b9   :  { %v3157_v23 = vmul.f32 %v3701_v14, %v3134_v40  ;;  %v3151_v51 = vmul.f32 %v3699_v1, %v3150_v18  ;;  %vm3163_vm6 = vweird.f32 %v3701_v14 }
 0x6ba   :  { %v3236_v15 = vmax.f32 %v3232_v26, 0.0  ;;  %3702 = vrsqrt.f32 %v3135_v62  ;;  %vm3164_vm15 = vmor %vm3162_vm0, %vm3163_vm6  ;;  %vm3172_vm12 = vweird.f32 %v3135_v62 }
 0x6bb   :  { %v3158_v37 = vmul.f32 %v3701_v14, %v3157_v23  ;;  %v3155_v20 = vsel %vm3154_vm14, %v3699_v1, %v3151_v51 }
 0x6bc   :  { %v3240_v2 = vadd.f32 %v6841_v6, %v3236_v15  ;;  %v3177_v22 = vmul.f32 %v3155_v20, %v6877_v57 }
 0x6bd   :  { %v3159_v7 = vmul.f32 0.5, %v3158_v37  ;;  %v3220_v55 = vpop.permute.xlu2 %3219 }
 0x6be   :  { %3244 = vst [vmem:[#allocation4] sm:$0xff] %v3240_v2  ;;  %v3205_v31 = vmul.f32 %v6875_v45, %v3177_v22 }
 0x6bf   :  { %v3160_v17 = vsub.f32 1.5, %v3159_v7 }
 0x6c0   :  { %v3703_v24 = vpop.eup %3702  ;;  %v3233_v47 = vadd.f32 %v3220_v55, %v3205_v31  ;;  %v3225_v49 = vpop.permute.xlu0 %3224 }
 0x6c1   :  { %v3167_v41 = vmul.f32 %v3703_v24, %v3135_v62  ;;  %v3161_v30 = vmul.f32 %v3701_v14, %v3160_v17  ;;  %vm3173_vm13 = vweird.f32 %v3703_v24 }
 0x6c2   :  { %v3237_v5 = vmax.f32 %v3233_v47, 0.0  ;;  %vm3174_vm4 = vmor %vm3172_vm12, %vm3173_vm13 }
 0x6c3   :  { %v3168_v9 = vmul.f32 %v3703_v24, %v3167_v41  ;;  %v3165_v53 = vsel %vm3164_vm15, %v3701_v14, %v3161_v30 }
 0x6c4   :  { %v3241_v6 = vadd.f32 %v6835_v36, %v3237_v5  ;;  %v3178_v57 = vmul.f32 %v3165_v53, %v6881_v59  ;;  %v3230_v59 = vpop.permute.xlu1 %3229 }
 0x6c5   :  { %v3169_v11 = vmul.f32 0.5, %v3168_v9 }
 0x6c6   :  { %3245 = vst [vmem:[#allocation4 + $0x8] sm:$0xff] %v3241_v6  ;;  %v3206_v45 = vmul.f32 %v6898_v0, %v3178_v57 }
 0x6c7   :  { %v3170_v61 = vsub.f32 1.5, %v3169_v11 }
 0x6c8   :  { %v3234_v8 = vadd.f32 %v3225_v49, %v3206_v45 }
 0x6c9   :  { %v3171_v25 = vmul.f32 %v3703_v24, %v3170_v61 }
 0x6ca   :  { %v3238_v50 = vmax.f32 %v3234_v8, 0.0 }
 0x6cb   :  { %v3175_v34 = vsel %vm3174_vm4, %v3703_v24, %v3171_v25 }
 0x6cc   :  { %v3179_v52 = vmul.f32 %v3175_v34, %v6885_v3  ;;  %v3242_v39 = vadd.f32 %v6820_v13, %v3238_v50 }
 0x6ce   :  { %v3207_v36 = vmul.f32 %v6900_v35, %v3179_v52  ;;  %3246 = vst [vmem:[#allocation4 + $0x10] sm:$0xff] %v3242_v39 }
 0x6d0   :  { %v3235_v12 = vadd.f32 %v3230_v59, %v3207_v36 }
 0x6d2   :  { %v3239_v0 = vmax.f32 %v3235_v12, 0.0 }
 0x6d4   :  { %v3243_v42 = vadd.f32 %v6814_v27, %v3239_v0 }
 0x6d6   :  { %3247 = vst [vmem:[#allocation4 + $0x18] sm:$0xff] %v3243_v42 }
 0x6d7   :  { %3260 = dma.vmem_to_hbm [thread:$0]  %s3253_s16, 512, %s3255_s19, [#allocation5], %s3740_s20, %s3740_s20, %s3741_s21  }
 0x6d8   :  { %3734 = dma.done.wait [#allocation5], 512  }
 0x6d9   :  { %3735 = vsyncadd [#allocation5], 4294966784 }
 0x6da   :  { %3265 = vsyncpa [#allocation5], 1 }

</bundles_post_ra>
